<compile_context>
chip_gen: v5e
topology: v5e:2x2
jax: 0.10.0
libtpu: 0.0.40
codegen_flags: <defaults>
</compile_context>

<pallas_src>
import math
from functools import partial

import jax
import jax.numpy as jnp
from jax.experimental import pallas as pl
from jax.experimental.pallas import tpu as pltpu

_VMEM_LIMIT = 32 * 1024 * 1024   # safe scoped-VMEM budget on v5e / v6e / v7x


def _round_up(x, m):
    return (x + m - 1) // m * m


# ------------------------------ kernels ------------------------------

def _linear_kernel(x_ref, w_ref, b_ref, o_ref, *, activation=None):
    """Single-K-block matmul: y = x @ w + b (+ ReLU); no accumulator scratch."""
    y = jnp.dot(x_ref[...], w_ref[...],
                preferred_element_type=jnp.float32) + b_ref[...]
    if activation == "relu":
        y = jnp.maximum(y, 0.0)
    o_ref[...] = y.astype(o_ref.dtype)


def _attn_sublayer_kernel(x_ref, kv_ref, wq_ref, bq_ref, wkv_ref, bkv_ref,
                          wo_ref, bo_ref, g_ref, b_ref, o_ref,
                          *, batch, num_heads, causal):
    """Fused attention sub-layer:  LayerNorm(x + MHA(x, kv_src) @ wo + bo).

    All-2D matmuls (no in-kernel reshape, no transpose, no concat): the output
    projection is accumulated per head into a lane-dense (Lq, D) value, and the
    result rows for each batch element are stored at their sublane offset.
    """
    M, D = x_ref.shape
    Mk = kv_ref.shape[0]
    Lq = M // batch
    Lk = Mk // batch
    Dh = D // num_heads
    scale = 1.0 / math.sqrt(Dh)

    x = x_ref[...]
    # q / fused-kv projections (single MXU pushes, bias fused)
    q = (jnp.dot(x, wq_ref[...], preferred_element_type=jnp.float32)
         + bq_ref[...]) * scale                       # 1/sqrt(Dh) folded into q
    kv = jnp.dot(kv_ref[...], wkv_ref[...],
                 preferred_element_type=jnp.float32) + bkv_ref[...]
    k = kv[:, :D]
    v = kv[:, D:]

    if causal:
        row = jax.lax.broadcasted_iota(jnp.int32, (Lq, Lk), 0)
        col = jax.lax.broadcasted_iota(jnp.int32, (Lq, Lk), 1)
        neg = jnp.where(col > row, jnp.float32(-1e9), jnp.float32(0.0))

    gamma = g_ref[...]
    beta = b_ref[...]
    bo = bo_ref[...]

    for b in range(batch):                            # static unroll (B small)
        rq = slice(b * Lq, (b + 1) * Lq)
        rk = slice(b * Lk, (b + 1) * Lk)
        proj = jnp.zeros((Lq, D), jnp.float32)
        for h in range(num_heads):                    # static unroll over heads
            c = slice(h * Dh, (h + 1) * Dh)
            # scores: contract the last dims of q and k (no explicit k.T)
            s = jax.lax.dot_general(q[rq, c], k[rk, c],
                                    (((1,), (1,)), ((), ())),
                                    preferred_element_type=jnp.float32)
            if causal:
                s = s + neg
            s = s - jnp.max(s, axis=-1, keepdims=True)
            p = jnp.exp(s)
            p = p / jnp.sum(p, axis=-1, keepdims=True)
            a = jnp.dot(p, v[rk, c], preferred_element_type=jnp.float32)
            # fold the output projection per head -> no head concat needed
            proj = proj + jnp.dot(a, wo_ref[c, :],
                                  preferred_element_type=jnp.float32)
        y = x[rq, :] + proj + bo                      # residual + out-proj bias
        mu = jnp.mean(y, axis=-1, keepdims=True)
        var = jnp.mean((y - mu) ** 2, axis=-1, keepdims=True)
        o_ref[rq, :] = ((y - mu) * jax.lax.rsqrt(var + 1e-5) * gamma
                        + beta).astype(o_ref.dtype)


def _ffn_sublayer_kernel(x_ref, w1_ref, b1_ref, w2_ref, b2_ref,
                         g_ref, b_ref, o_ref):
    """Fused FFN sub-layer:  LayerNorm(x + relu(x @ w1 + b1) @ w2 + b2)."""
    x = x_ref[...]
    h = jnp.dot(x, w1_ref[...], preferred_element_type=jnp.float32) + b1_ref[...]
    h = jnp.maximum(h, 0.0)
    y = x + jnp.dot(h, w2_ref[...], preferred_element_type=jnp.float32) + b2_ref[...]
    mu = jnp.mean(y, axis=-1, keepdims=True)
    var = jnp.mean((y - mu) ** 2, axis=-1, keepdims=True)
    o_ref[...] = ((y - mu) * jax.lax.rsqrt(var + 1e-5) * g_ref[...]
                  + b_ref[...]).astype(o_ref.dtype)


# --------------------------- kernel wrappers ---------------------------

def linear(x, w, b, activation=None):
    """x:(M,K) @ w:(K,N) + b:(1,N).  Single block when M is small; only the
    row axis is tiled for large M.  K / N are never padded (full-dim blocks)."""
    M, K = x.shape
    N = w.shape[1]
    tm = _round_up(M, 8) if M <= 256 else 256
    Mp = _round_up(M, tm)
    if Mp != M:
        x = jnp.pad(x, ((0, Mp - M), (0, 0)))
    out = pl.pallas_call(
        partial(_linear_kernel, activation=activation),
        out_shape=jax.ShapeDtypeStruct((Mp, N), jnp.float32),
        grid=(Mp // tm,),
        in_specs=[
            pl.BlockSpec((tm, K), lambda i: (i, 0)),
            pl.BlockSpec((K, N), lambda i: (0, 0)),
            pl.BlockSpec((1, N), lambda i: (0, 0)),
        ],
        out_specs=pl.BlockSpec((tm, N), lambda i: (i, 0)),
        compiler_params=pltpu.CompilerParams(
            dimension_semantics=("parallel",),
            vmem_limit_bytes=_VMEM_LIMIT),
    )(x, w, b)
    return out[:M] if Mp != M else out


def attn_sublayer(x, kv_src, p, batch, num_heads, causal):
    """x:(B*Lq, D), kv_src:(B*Lk, D) -> LayerNorm(x + MHA(...) Wo + bo)."""
    M, D = x.shape
    Mk = kv_src.shape[0]
    return pl.pallas_call(
        partial(_attn_sublayer_kernel, batch=batch,
                num_heads=num_heads, causal=causal),
        out_shape=jax.ShapeDtypeStruct((M, D), jnp.float32),
        grid=(1,),
        in_specs=[
            pl.BlockSpec((M, D), lambda i: (0, 0)),        # x (residual / q src)
            pl.BlockSpec((Mk, D), lambda i: (0, 0)),       # kv source
            pl.BlockSpec((D, D), lambda i: (0, 0)),        # wq
            pl.BlockSpec((1, D), lambda i: (0, 0)),        # bq
            pl.BlockSpec((D, 2 * D), lambda i: (0, 0)),    # wkv (fused)
            pl.BlockSpec((1, 2 * D), lambda i: (0, 0)),    # bkv
            pl.BlockSpec((D, D), lambda i: (0, 0)),        # wo
            pl.BlockSpec((1, D), lambda i: (0, 0)),        # bo
            pl.BlockSpec((1, D), lambda i: (0, 0)),        # ln gamma
            pl.BlockSpec((1, D), lambda i: (0, 0)),        # ln beta
        ],
        out_specs=pl.BlockSpec((M, D), lambda i: (0, 0)),
        compiler_params=pltpu.CompilerParams(
            dimension_semantics=("arbitrary",),
            vmem_limit_bytes=_VMEM_LIMIT),
    )(x, kv_src, p["wq"], p["bq"], p["wkv"], p["bkv"],
      p["wo"], p["bo"], p["ln_g"], p["ln_b"])


def ffn_sublayer(x, p):
    """x:(M, D) -> LayerNorm(x + relu(x W1 + b1) W2 + b2)."""
    M, D = x.shape
    F = p["w1"].shape[1]
    return pl.pallas_call(
        _ffn_sublayer_kernel,
        out_shape=jax.ShapeDtypeStruct((M, D), jnp.float32),
        grid=(1,),
        in_specs=[
            pl.BlockSpec((M, D), lambda i: (0, 0)),
            pl.BlockSpec((D, F), lambda i: (0, 0)),
            pl.BlockSpec((1, F), lambda i: (0, 0)),
            pl.BlockSpec((F, D), lambda i: (0, 0)),
            pl.BlockSpec((1, D), lambda i: (0, 0)),
            pl.BlockSpec((1, D), lambda i: (0, 0)),
            pl.BlockSpec((1, D), lambda i: (0, 0)),
        ],
        out_specs=pl.BlockSpec((M, D), lambda i: (0, 0)),
        compiler_params=pltpu.CompilerParams(
            dimension_semantics=("arbitrary",),
            vmem_limit_bytes=_VMEM_LIMIT),
    )(x, p["w1"], p["b1"], p["w2"], p["b2"], p["ln_g"], p["ln_b"])


# --------------------------- model pieces ---------------------------

def sinusoidal_pe(max_len, d):
    pos = jnp.arange(max_len, dtype=jnp.float32)[:, None]
    div = jnp.exp(jnp.arange(0, d, 2, dtype=jnp.float32) * (-math.log(10000.0) / d))
    pe = jnp.zeros((max_len, d), jnp.float32)
    pe = pe.at[:, 0::2].set(jnp.sin(pos * div))
    pe = pe.at[:, 1::2].set(jnp.cos(pos * div))
    return pe


def transformer_forward(params, src, tgt, num_heads):
    D = params["src_emb"].shape[1]
    B, Ls = src.shape
    Lt = tgt.shape[1]
    scale_e = math.sqrt(D)

    # embeddings + positional encoding (XLA glue: gather + add)
    x = (jnp.take(params["src_emb"], src, axis=0) * scale_e
         + params["pe"][:Ls]).reshape(B * Ls, D)
    y = (jnp.take(params["tgt_emb"], tgt, axis=0) * scale_e
         + params["pe"][:Lt]).reshape(B * Lt, D)

    for lp in params["enc_layers"]:
        x = attn_sublayer(x, x, lp["attn"], B, num_heads, causal=False)
        x = ffn_sublayer(x, lp["ffn"])
    memory = x

    for lp in params["dec_layers"]:
        y = attn_sublayer(y, y, lp["self_attn"], B, num_heads, causal=True)
        y = attn_sublayer(y, memory, lp["cross_attn"], B, num_heads, causal=False)
        y = ffn_sublayer(y, lp["ffn"])

    logits = linear(y, params["gen_w"], params["gen_b"])
    return logits.reshape(B, Lt, -1)


# --------------------------- deterministic init ---------------------------

def _init_linear(key, din, dout):
    k1, k2 = jax.random.split(key)
    return (jax.random.normal(k1, (din, dout), jnp.float32) * 0.02,
            jax.random.normal(k2, (dout,), jnp.float32) * 0.02)


def _init_attn(key, d):
    ks = jax.random.split(key, 4)
    wq, bq = _init_linear(ks[0], d, d)
    wk, bk = _init_linear(ks[1], d, d)
    wv, bv = _init_linear(ks[2], d, d)
    wo, bo = _init_linear(ks[3], d, d)
    return dict(wq=wq, bq=bq.reshape(1, d),
                wkv=jnp.concatenate([wk, wv], axis=1),
                bkv=jnp.concatenate([bk, bv]).reshape(1, 2 * d),
                wo=wo, bo=bo.reshape(1, d),
                ln_g=jnp.ones((1, d), jnp.float32),
                ln_b=jnp.zeros((1, d), jnp.float32))


def _init_ffn(key, d, h):
    k1, k2 = jax.random.split(key)
    w1, b1 = _init_linear(k1, d, h)
    w2, b2 = _init_linear(k2, h, d)
    return dict(w1=w1, b1=b1.reshape(1, h), w2=w2, b2=b2.reshape(1, d),
                ln_g=jnp.ones((1, d), jnp.float32),
                ln_b=jnp.zeros((1, d), jnp.float32))


def _init_enc_layer(key, d, h):
    k1, k2 = jax.random.split(key)
    return dict(attn=_init_attn(k1, d), ffn=_init_ffn(k2, d, h))


def _init_dec_layer(key, d, h):
    k1, k2, k3 = jax.random.split(key, 3)
    return dict(self_attn=_init_attn(k1, d), cross_attn=_init_attn(k2, d),
                ffn=_init_ffn(k3, d, h))


def init_params(key, vocab, tgt_vocab, d, n_enc, n_dec, ffh, max_len):
    keys = jax.random.split(key, 4 + n_enc + n_dec)
    gw, gb = _init_linear(keys[2], d, tgt_vocab)
    return dict(
        src_emb=jax.random.normal(keys[0], (vocab, d), jnp.float32) * 0.02,
        tgt_emb=jax.random.normal(keys[1], (tgt_vocab, d), jnp.float32) * 0.02,
        pe=sinusoidal_pe(max_len, d),
        enc_layers=[_init_enc_layer(keys[4 + i], d, ffh) for i in range(n_enc)],
        dec_layers=[_init_dec_layer(keys[4 + n_enc + i], d, ffh) for i in range(n_dec)],
        gen_w=gw, gen_b=gb.reshape(1, tgt_vocab),
    )


# --------------------------- main ---------------------------

if __name__ == "__main__":
    vocab_size = 50
    tgt_vocab_size = 60
    embed_dim = 32
    num_heads = 4
    num_encoder_layers = 2
    num_decoder_layers = 2
    ff_hidden_dim = 64
    max_len = 64
    B, Ls, Lt = 2, 8, 8

    key = jax.random.PRNGKey(0)
    kp, ks, kt = jax.random.split(key, 3)
    params = init_params(kp, vocab_size, tgt_vocab_size, embed_dim,
                         num_encoder_layers, num_decoder_layers,
                         ff_hidden_dim, max_len)

    src = jax.random.randint(ks, (B, Ls), 0, vocab_size, dtype=jnp.int32)
    tgt = jax.random.randint(kt, (B, Lt), 0, tgt_vocab_size, dtype=jnp.int32)

    # TODO(synk): dropout(p=0.1) is a no-op here (inference mode).
    fwd = jax.jit(lambda p, s, t: transformer_forward(p, s, t, num_heads))
    logits = jax.block_until_ready(fwd(params, src, tgt))

    assert logits.shape == (B, Lt, tgt_vocab_size)
    assert bool(jnp.all(jnp.isfinite(logits)))
    print("KERNEL_OK")
</pallas_src>

<mosaic_0001>
module attributes {stable_mosaic.version = 11 : i64} {
  func.func @_ffn_sublayer_kernel(%arg0: i32, %arg1: memref<16x32xf32, #tpu.memory_space<vmem>>, %arg2: memref<32x64xf32, #tpu.memory_space<vmem>>, %arg3: memref<1x64xf32, #tpu.memory_space<vmem>>, %arg4: memref<64x32xf32, #tpu.memory_space<vmem>>, %arg5: memref<1x32xf32, #tpu.memory_space<vmem>>, %arg6: memref<1x32xf32, #tpu.memory_space<vmem>>, %arg7: memref<1x32xf32, #tpu.memory_space<vmem>>, %arg8: memref<16x32xf32, #tpu.memory_space<vmem>>) attributes {dimension_semantics = [#tpu.dimension_semantics<arbitrary>], iteration_bounds = array<i64: 1>, scalar_prefetch = 0 : i64, scratch_operands = 0 : i64, tpu.core_type = #tpu.core_type<tc>, window_params = [{pipeline_mode = #tpu.pipeline_mode<synchronous>, transform_indices = @transform_0, window_bounds = array<i64: 16, 32>}, {pipeline_mode = #tpu.pipeline_mode<synchronous>, transform_indices = @transform_1, window_bounds = array<i64: 32, 64>}, {pipeline_mode = #tpu.pipeline_mode<synchronous>, transform_indices = @transform_2, window_bounds = array<i64: 1, 64>}, {pipeline_mode = #tpu.pipeline_mode<synchronous>, transform_indices = @transform_3, window_bounds = array<i64: 64, 32>}, {pipeline_mode = #tpu.pipeline_mode<synchronous>, transform_indices = @transform_4, window_bounds = array<i64: 1, 32>}, {pipeline_mode = #tpu.pipeline_mode<synchronous>, transform_indices = @transform_5, window_bounds = array<i64: 1, 32>}, {pipeline_mode = #tpu.pipeline_mode<synchronous>, transform_indices = @transform_6, window_bounds = array<i64: 1, 32>}, {pipeline_mode = #tpu.pipeline_mode<synchronous>, transform_indices = @transform_7, window_bounds = array<i64: 16, 32>}]} {
    %c0 = arith.constant 0 : index
    %c0_0 = arith.constant 0 : index
    %0 = vector.load %arg1[%c0, %c0_0] : memref<16x32xf32, #tpu.memory_space<vmem>>, vector<16x32xf32>
    %c0_1 = arith.constant 0 : index
    %c0_2 = arith.constant 0 : index
    %1 = vector.load %arg2[%c0_1, %c0_2] : memref<32x64xf32, #tpu.memory_space<vmem>>, vector<32x64xf32>
    %cst = arith.constant dense<0.000000e+00> : vector<16x64xf32>
    %2 = tpu.matmul %0, %1, %cst {dimension_numbers = #tpu.dot_dimension_numbers<[1], [0], [0], [1], [0, 0, 1, 1], [], []>} : vector<16x32xf32>, vector<32x64xf32>, vector<16x64xf32> -> vector<16x64xf32>
    %c0_3 = arith.constant 0 : index
    %c0_4 = arith.constant 0 : index
    %3 = vector.load %arg3[%c0_3, %c0_4] : memref<1x64xf32, #tpu.memory_space<vmem>>, vector<1x64xf32>
    %4 = vector.broadcast %3 : vector<1x64xf32> to vector<16x64xf32>
    %5 = arith.addf %2, %4 : vector<16x64xf32>
    %cst_5 = arith.constant 0.000000e+00 : f32
    %6 = vector.broadcast %cst_5 : f32 to vector<16x64xf32>
    %7 = arith.maximumf %5, %6 : vector<16x64xf32>
    %c0_6 = arith.constant 0 : index
    %c0_7 = arith.constant 0 : index
    %8 = vector.load %arg4[%c0_6, %c0_7] : memref<64x32xf32, #tpu.memory_space<vmem>>, vector<64x32xf32>
    %cst_8 = arith.constant dense<0.000000e+00> : vector<16x32xf32>
    %9 = tpu.matmul %7, %8, %cst_8 {dimension_numbers = #tpu.dot_dimension_numbers<[1], [0], [0], [1], [0, 0, 1, 1], [], []>} : vector<16x64xf32>, vector<64x32xf32>, vector<16x32xf32> -> vector<16x32xf32>
    %10 = arith.addf %0, %9 : vector<16x32xf32>
    %c0_9 = arith.constant 0 : index
    %c0_10 = arith.constant 0 : index
    %11 = vector.load %arg5[%c0_9, %c0_10] : memref<1x32xf32, #tpu.memory_space<vmem>>, vector<1x32xf32>
    %12 = vector.broadcast %11 : vector<1x32xf32> to vector<16x32xf32>
    %13 = arith.addf %10, %12 : vector<16x32xf32>
    %cst_11 = arith.constant dense<0.000000e+00> : vector<16xf32>
    %14 = vector.multi_reduction <add>, %13, %cst_11 [1] : vector<16x32xf32> to vector<16xf32>
    %15 = vector.shape_cast %14 : vector<16xf32> to vector<16x1xf32>
    %cst_12 = arith.constant 3.200000e+01 : f32
    %16 = vector.broadcast %cst_12 : f32 to vector<16x1xf32>
    %17 = arith.divf %15, %16 : vector<16x1xf32>
    %18 = vector.broadcast %17 : vector<16x1xf32> to vector<16x32xf32>
    %19 = arith.subf %13, %18 : vector<16x32xf32>
    %20 = arith.mulf %19, %19 : vector<16x32xf32>
    %cst_13 = arith.constant dense<0.000000e+00> : vector<16xf32>
    %21 = vector.multi_reduction <add>, %20, %cst_13 [1] : vector<16x32xf32> to vector<16xf32>
    %22 = vector.shape_cast %21 : vector<16xf32> to vector<16x1xf32>
    %cst_14 = arith.constant 3.200000e+01 : f32
    %23 = vector.broadcast %cst_14 : f32 to vector<16x1xf32>
    %24 = arith.divf %22, %23 : vector<16x1xf32>
    %25 = vector.broadcast %17 : vector<16x1xf32> to vector<16x32xf32>
    %26 = arith.subf %13, %25 : vector<16x32xf32>
    %cst_15 = arith.constant 9.99999974E-6 : f32
    %27 = vector.broadcast %cst_15 : f32 to vector<16x1xf32>
    %28 = arith.addf %24, %27 : vector<16x1xf32>
    %29 = math.rsqrt %28 : vector<16x1xf32>
    %30 = vector.broadcast %29 : vector<16x1xf32> to vector<16x32xf32>
    %31 = arith.mulf %26, %30 : vector<16x32xf32>
    %c0_16 = arith.constant 0 : index
    %c0_17 = arith.constant 0 : index
    %32 = vector.load %arg6[%c0_16, %c0_17] : memref<1x32xf32, #tpu.memory_space<vmem>>, vector<1x32xf32>
    %33 = vector.broadcast %32 : vector<1x32xf32> to vector<16x32xf32>
    %34 = arith.mulf %31, %33 : vector<16x32xf32>
    %c0_18 = arith.constant 0 : index
    %c0_19 = arith.constant 0 : index
    %35 = vector.load %arg7[%c0_18, %c0_19] : memref<1x32xf32, #tpu.memory_space<vmem>>, vector<1x32xf32>
    %36 = vector.broadcast %35 : vector<1x32xf32> to vector<16x32xf32>
    %37 = arith.addf %34, %36 : vector<16x32xf32>
    %c0_20 = arith.constant 0 : index
    %c0_21 = arith.constant 0 : index
    %38 = vector.load %arg8[%c0_20, %c0_21] : memref<16x32xf32, #tpu.memory_space<vmem>>, vector<16x32xf32>
    tpu.vector_store %arg8[%c0_20, %c0_21], %37 {strides = array<i32>} : memref<16x32xf32, #tpu.memory_space<vmem>>, vector<16x32xf32>,
    return
  }
  func.func @transform_0(%arg0: i32) -> (i32, i32) {
    %c0_i32 = arith.constant 0 : i32
    %c0_i32_0 = arith.constant 0 : i32
    %c0_i32_1 = arith.constant 0 : i32
    return %c0_i32, %c0_i32_0 : i32, i32
  }
  func.func @transform_1(%arg0: i32) -> (i32, i32) {
    %c0_i32 = arith.constant 0 : i32
    %c0_i32_0 = arith.constant 0 : i32
    %c0_i32_1 = arith.constant 0 : i32
    return %c0_i32, %c0_i32_0 : i32, i32
  }
  func.func @transform_2(%arg0: i32) -> (i32, i32) {
    %c0_i32 = arith.constant 0 : i32
    %c0_i32_0 = arith.constant 0 : i32
    %c0_i32_1 = arith.constant 0 : i32
    return %c0_i32, %c0_i32_0 : i32, i32
  }
  func.func @transform_3(%arg0: i32) -> (i32, i32) {
    %c0_i32 = arith.constant 0 : i32
    %c0_i32_0 = arith.constant 0 : i32
    %c0_i32_1 = arith.constant 0 : i32
    return %c0_i32, %c0_i32_0 : i32, i32
  }
  func.func @transform_4(%arg0: i32) -> (i32, i32) {
    %c0_i32 = arith.constant 0 : i32
    %c0_i32_0 = arith.constant 0 : i32
    %c0_i32_1 = arith.constant 0 : i32
    return %c0_i32, %c0_i32_0 : i32, i32
  }
  func.func @transform_5(%arg0: i32) -> (i32, i32) {
    %c0_i32 = arith.constant 0 : i32
    %c0_i32_0 = arith.constant 0 : i32
    %c0_i32_1 = arith.constant 0 : i32
    return %c0_i32, %c0_i32_0 : i32, i32
  }
  func.func @transform_6(%arg0: i32) -> (i32, i32) {
    %c0_i32 = arith.constant 0 : i32
    %c0_i32_0 = arith.constant 0 : i32
    %c0_i32_1 = arith.constant 0 : i32
    return %c0_i32, %c0_i32_0 : i32, i32
  }
  func.func @transform_7(%arg0: i32) -> (i32, i32) {
    %c0_i32 = arith.constant 0 : i32
    %c0_i32_0 = arith.constant 0 : i32
    %c0_i32_1 = arith.constant 0 : i32
    return %c0_i32, %c0_i32_0 : i32, i32
  }
}

module attributes {stable_mosaic.version = 11 : i64} {
  func.func @_ffn_sublayer_kernel(%arg0: i32, %arg1: memref<16x32xf32, #tpu.memory_space<vmem>>, %arg2: memref<32x64xf32, #tpu.memory_space<vmem>>, %arg3: memref<1x64xf32, #tpu.memory_space<vmem>>, %arg4: memref<64x32xf32, #tpu.memory_space<vmem>>, %arg5: memref<1x32xf32, #tpu.memory_space<vmem>>, %arg6: memref<1x32xf32, #tpu.memory_space<vmem>>, %arg7: memref<1x32xf32, #tpu.memory_space<vmem>>, %arg8: memref<16x32xf32, #tpu.memory_space<vmem>>) attributes {dimension_semantics = [#tpu.dimension_semantics<arbitrary>], iteration_bounds = array<i64: 1>, scalar_prefetch = 0 : i64, scratch_operands = 0 : i64, tpu.core_type = #tpu.core_type<tc>, window_params = [{pipeline_mode = #tpu.pipeline_mode<synchronous>, transform_indices = @transform_0, window_bounds = array<i64: 16, 32>}, {pipeline_mode = #tpu.pipeline_mode<synchronous>, transform_indices = @transform_1, window_bounds = array<i64: 32, 64>}, {pipeline_mode = #tpu.pipeline_mode<synchronous>, transform_indices = @transform_2, window_bounds = array<i64: 1, 64>}, {pipeline_mode = #tpu.pipeline_mode<synchronous>, transform_indices = @transform_3, window_bounds = array<i64: 64, 32>}, {pipeline_mode = #tpu.pipeline_mode<synchronous>, transform_indices = @transform_4, window_bounds = array<i64: 1, 32>}, {pipeline_mode = #tpu.pipeline_mode<synchronous>, transform_indices = @transform_5, window_bounds = array<i64: 1, 32>}, {pipeline_mode = #tpu.pipeline_mode<synchronous>, transform_indices = @transform_6, window_bounds = array<i64: 1, 32>}, {pipeline_mode = #tpu.pipeline_mode<synchronous>, transform_indices = @transform_7, window_bounds = array<i64: 16, 32>}]} {
    %c0 = arith.constant 0 : index
    %c0_0 = arith.constant 0 : index
    %0 = vector.load %arg1[%c0, %c0_0] : memref<16x32xf32, #tpu.memory_space<vmem>>, vector<16x32xf32>
    %c0_1 = arith.constant 0 : index
    %c0_2 = arith.constant 0 : index
    %1 = vector.load %arg2[%c0_1, %c0_2] : memref<32x64xf32, #tpu.memory_space<vmem>>, vector<32x64xf32>
    %cst = arith.constant dense<0.000000e+00> : vector<16x64xf32>
    %2 = tpu.matmul %0, %1, %cst {dimension_numbers = #tpu.dot_dimension_numbers<[1], [0], [0], [1], [0, 0, 1, 1], [], []>} : vector<16x32xf32>, vector<32x64xf32>, vector<16x64xf32> -> vector<16x64xf32>
    %c0_3 = arith.constant 0 : index
    %c0_4 = arith.constant 0 : index
    %3 = vector.load %arg3[%c0_3, %c0_4] : memref<1x64xf32, #tpu.memory_space<vmem>>, vector<1x64xf32>
    %4 = vector.broadcast %3 : vector<1x64xf32> to vector<16x64xf32>
    %5 = arith.addf %2, %4 : vector<16x64xf32>
    %cst_5 = arith.constant 0.000000e+00 : f32
    %6 = vector.broadcast %cst_5 : f32 to vector<16x64xf32>
    %7 = arith.maximumf %5, %6 : vector<16x64xf32>
    %c0_6 = arith.constant 0 : index
    %c0_7 = arith.constant 0 : index
    %8 = vector.load %arg4[%c0_6, %c0_7] : memref<64x32xf32, #tpu.memory_space<vmem>>, vector<64x32xf32>
    %cst_8 = arith.constant dense<0.000000e+00> : vector<16x32xf32>
    %9 = tpu.matmul %7, %8, %cst_8 {dimension_numbers = #tpu.dot_dimension_numbers<[1], [0], [0], [1], [0, 0, 1, 1], [], []>} : vector<16x64xf32>, vector<64x32xf32>, vector<16x32xf32> -> vector<16x32xf32>
    %10 = arith.addf %0, %9 : vector<16x32xf32>
    %c0_9 = arith.constant 0 : index
    %c0_10 = arith.constant 0 : index
    %11 = vector.load %arg5[%c0_9, %c0_10] : memref<1x32xf32, #tpu.memory_space<vmem>>, vector<1x32xf32>
    %12 = vector.broadcast %11 : vector<1x32xf32> to vector<16x32xf32>
    %13 = arith.addf %10, %12 : vector<16x32xf32>
    %cst_11 = arith.constant dense<0.000000e+00> : vector<16xf32>
    %14 = vector.multi_reduction <add>, %13, %cst_11 [1] : vector<16x32xf32> to vector<16xf32>
    %15 = vector.shape_cast %14 : vector<16xf32> to vector<16x1xf32>
    %cst_12 = arith.constant 3.200000e+01 : f32
    %16 = vector.broadcast %cst_12 : f32 to vector<16x1xf32>
    %17 = arith.divf %15, %16 : vector<16x1xf32>
    %18 = vector.broadcast %17 : vector<16x1xf32> to vector<16x32xf32>
    %19 = arith.subf %13, %18 : vector<16x32xf32>
    %20 = arith.mulf %19, %19 : vector<16x32xf32>
    %cst_13 = arith.constant dense<0.000000e+00> : vector<16xf32>
    %21 = vector.multi_reduction <add>, %20, %cst_13 [1] : vector<16x32xf32> to vector<16xf32>
    %22 = vector.shape_cast %21 : vector<16xf32> to vector<16x1xf32>
    %cst_14 = arith.constant 3.200000e+01 : f32
    %23 = vector.broadcast %cst_14 : f32 to vector<16x1xf32>
    %24 = arith.divf %22, %23 : vector<16x1xf32>
    %25 = vector.broadcast %17 : vector<16x1xf32> to vector<16x32xf32>
    %26 = arith.subf %13, %25 : vector<16x32xf32>
    %cst_15 = arith.constant 9.99999974E-6 : f32
    %27 = vector.broadcast %cst_15 : f32 to vector<16x1xf32>
    %28 = arith.addf %24, %27 : vector<16x1xf32>
    %29 = math.rsqrt %28 : vector<16x1xf32>
    %30 = vector.broadcast %29 : vector<16x1xf32> to vector<16x32xf32>
    %31 = arith.mulf %26, %30 : vector<16x32xf32>
    %c0_16 = arith.constant 0 : index
    %c0_17 = arith.constant 0 : index
    %32 = vector.load %arg6[%c0_16, %c0_17] : memref<1x32xf32, #tpu.memory_space<vmem>>, vector<1x32xf32>
    %33 = vector.broadcast %32 : vector<1x32xf32> to vector<16x32xf32>
    %34 = arith.mulf %31, %33 : vector<16x32xf32>
    %c0_18 = arith.constant 0 : index
    %c0_19 = arith.constant 0 : index
    %35 = vector.load %arg7[%c0_18, %c0_19] : memref<1x32xf32, #tpu.memory_space<vmem>>, vector<1x32xf32>
    %36 = vector.broadcast %35 : vector<1x32xf32> to vector<16x32xf32>
    %37 = arith.addf %34, %36 : vector<16x32xf32>
    %c0_20 = arith.constant 0 : index
    %c0_21 = arith.constant 0 : index
    %38 = vector.load %arg8[%c0_20, %c0_21] : memref<16x32xf32, #tpu.memory_space<vmem>>, vector<16x32xf32>
    tpu.vector_store %arg8[%c0_20, %c0_21], %37 {strides = array<i32>} : memref<16x32xf32, #tpu.memory_space<vmem>>, vector<16x32xf32>,
    return
  }
  func.func @transform_0(%arg0: i32) -> (i32, i32) {
    %c0_i32 = arith.constant 0 : i32
    %c0_i32_0 = arith.constant 0 : i32
    %c0_i32_1 = arith.constant 0 : i32
    return %c0_i32, %c0_i32_0 : i32, i32
  }
  func.func @transform_1(%arg0: i32) -> (i32, i32) {
    %c0_i32 = arith.constant 0 : i32
    %c0_i32_0 = arith.constant 0 : i32
    %c0_i32_1 = arith.constant 0 : i32
    return %c0_i32, %c0_i32_0 : i32, i32
  }
  func.func @transform_2(%arg0: i32) -> (i32, i32) {
    %c0_i32 = arith.constant 0 : i32
    %c0_i32_0 = arith.constant 0 : i32
    %c0_i32_1 = arith.constant 0 : i32
    return %c0_i32, %c0_i32_0 : i32, i32
  }
  func.func @transform_3(%arg0: i32) -> (i32, i32) {
    %c0_i32 = arith.constant 0 : i32
    %c0_i32_0 = arith.constant 0 : i32
    %c0_i32_1 = arith.constant 0 : i32
    return %c0_i32, %c0_i32_0 : i32, i32
  }
  func.func @transform_4(%arg0: i32) -> (i32, i32) {
    %c0_i32 = arith.constant 0 : i32
    %c0_i32_0 = arith.constant 0 : i32
    %c0_i32_1 = arith.constant 0 : i32
    return %c0_i32, %c0_i32_0 : i32, i32
  }
  func.func @transform_5(%arg0: i32) -> (i32, i32) {
    %c0_i32 = arith.constant 0 : i32
    %c0_i32_0 = arith.constant 0 : i32
    %c0_i32_1 = arith.constant 0 : i32
    return %c0_i32, %c0_i32_0 : i32, i32
  }
  func.func @transform_6(%arg0: i32) -> (i32, i32) {
    %c0_i32 = arith.constant 0 : i32
    %c0_i32_0 = arith.constant 0 : i32
    %c0_i32_1 = arith.constant 0 : i32
    return %c0_i32, %c0_i32_0 : i32, i32
  }
  func.func @transform_7(%arg0: i32) -> (i32, i32) {
    %c0_i32 = arith.constant 0 : i32
    %c0_i32_0 = arith.constant 0 : i32
    %c0_i32_1 = arith.constant 0 : i32
    return %c0_i32, %c0_i32_0 : i32, i32
  }
}

module attributes {stable_mosaic.version = 11 : i64} {
  func.func @_attn_sublayer_kernel(%arg0: i32, %arg1: memref<16x32xf32, #tpu.memory_space<vmem>>, %arg2: memref<16x32xf32, #tpu.memory_space<vmem>>, %arg3: memref<32x32xf32, #tpu.memory_space<vmem>>, %arg4: memref<1x32xf32, #tpu.memory_space<vmem>>, %arg5: memref<32x64xf32, #tpu.memory_space<vmem>>, %arg6: memref<1x64xf32, #tpu.memory_space<vmem>>, %arg7: memref<32x32xf32, #tpu.memory_space<vmem>>, %arg8: memref<1x32xf32, #tpu.memory_space<vmem>>, %arg9: memref<1x32xf32, #tpu.memory_space<vmem>>, %arg10: memref<1x32xf32, #tpu.memory_space<vmem>>, %arg11: memref<16x32xf32, #tpu.memory_space<vmem>>) attributes {dimension_semantics = [#tpu.dimension_semantics<arbitrary>], iteration_bounds = array<i64: 1>, scalar_prefetch = 0 : i64, scratch_operands = 0 : i64, tpu.core_type = #tpu.core_type<tc>, window_params = [{pipeline_mode = #tpu.pipeline_mode<synchronous>, transform_indices = @transform_0, window_bounds = array<i64: 16, 32>}, {pipeline_mode = #tpu.pipeline_mode<synchronous>, transform_indices = @transform_1, window_bounds = array<i64: 16, 32>}, {pipeline_mode = #tpu.pipeline_mode<synchronous>, transform_indices = @transform_2, window_bounds = array<i64: 32, 32>}, {pipeline_mode = #tpu.pipeline_mode<synchronous>, transform_indices = @transform_3, window_bounds = array<i64: 1, 32>}, {pipeline_mode = #tpu.pipeline_mode<synchronous>, transform_indices = @transform_4, window_bounds = array<i64: 32, 64>}, {pipeline_mode = #tpu.pipeline_mode<synchronous>, transform_indices = @transform_5, window_bounds = array<i64: 1, 64>}, {pipeline_mode = #tpu.pipeline_mode<synchronous>, transform_indices = @transform_6, window_bounds = array<i64: 32, 32>}, {pipeline_mode = #tpu.pipeline_mode<synchronous>, transform_indices = @transform_7, window_bounds = array<i64: 1, 32>}, {pipeline_mode = #tpu.pipeline_mode<synchronous>, transform_indices = @transform_8, window_bounds = array<i64: 1, 32>}, {pipeline_mode = #tpu.pipeline_mode<synchronous>, transform_indices = @transform_9, window_bounds = array<i64: 1, 32>}, {pipeline_mode = #tpu.pipeline_mode<synchronous>, transform_indices = @transform_10, window_bounds = array<i64: 16, 32>}]} {
    %c0 = arith.constant 0 : index
    %c0_0 = arith.constant 0 : index
    %0 = vector.load %arg1[%c0, %c0_0] : memref<16x32xf32, #tpu.memory_space<vmem>>, vector<16x32xf32>
    %c0_1 = arith.constant 0 : index
    %c0_2 = arith.constant 0 : index
    %1 = vector.load %arg3[%c0_1, %c0_2] : memref<32x32xf32, #tpu.memory_space<vmem>>, vector<32x32xf32>
    %cst = arith.constant dense<0.000000e+00> : vector<16x32xf32>
    %2 = tpu.matmul %0, %1, %cst {dimension_numbers = #tpu.dot_dimension_numbers<[1], [0], [0], [1], [0, 0, 1, 1], [], []>} : vector<16x32xf32>, vector<32x32xf32>, vector<16x32xf32> -> vector<16x32xf32>
    %c0_3 = arith.constant 0 : index
    %c0_4 = arith.constant 0 : index
    %3 = vector.load %arg4[%c0_3, %c0_4] : memref<1x32xf32, #tpu.memory_space<vmem>>, vector<1x32xf32>
    %4 = vector.broadcast %3 : vector<1x32xf32> to vector<16x32xf32>
    %5 = arith.addf %2, %4 : vector<16x32xf32>
    %cst_5 = arith.constant 0.353553385 : f32
    %6 = vector.broadcast %cst_5 : f32 to vector<16x32xf32>
    %7 = arith.mulf %5, %6 : vector<16x32xf32>
    %c0_6 = arith.constant 0 : index
    %c0_7 = arith.constant 0 : index
    %8 = vector.load %arg2[%c0_6, %c0_7] : memref<16x32xf32, #tpu.memory_space<vmem>>, vector<16x32xf32>
    %c0_8 = arith.constant 0 : index
    %c0_9 = arith.constant 0 : index
    %9 = vector.load %arg5[%c0_8, %c0_9] : memref<32x64xf32, #tpu.memory_space<vmem>>, vector<32x64xf32>
    %cst_10 = arith.constant dense<0.000000e+00> : vector<16x64xf32>
    %10 = tpu.matmul %8, %9, %cst_10 {dimension_numbers = #tpu.dot_dimension_numbers<[1], [0], [0], [1], [0, 0, 1, 1], [], []>} : vector<16x32xf32>, vector<32x64xf32>, vector<16x64xf32> -> vector<16x64xf32>
    %c0_11 = arith.constant 0 : index
    %c0_12 = arith.constant 0 : index
    %11 = vector.load %arg6[%c0_11, %c0_12] : memref<1x64xf32, #tpu.memory_space<vmem>>, vector<1x64xf32>
    %12 = vector.broadcast %11 : vector<1x64xf32> to vector<16x64xf32>
    %13 = arith.addf %10, %12 : vector<16x64xf32>
    %14 = vector.extract_strided_slice %13 {offsets = [0, 0], sizes = [16, 32], strides = [1, 1]} : vector<16x64xf32> to vector<16x32xf32>
    %15 = vector.extract_strided_slice %13 {offsets = [0, 32], sizes = [16, 32], strides = [1, 1]} : vector<16x64xf32> to vector<16x32xf32>
    %c0_13 = arith.constant 0 : index
    %c0_14 = arith.constant 0 : index
    %16 = vector.load %arg9[%c0_13, %c0_14] : memref<1x32xf32, #tpu.memory_space<vmem>>, vector<1x32xf32>
    %c0_15 = arith.constant 0 : index
    %c0_16 = arith.constant 0 : index
    %17 = vector.load %arg10[%c0_15, %c0_16] : memref<1x32xf32, #tpu.memory_space<vmem>>, vector<1x32xf32>
    %c0_17 = arith.constant 0 : index
    %c0_18 = arith.constant 0 : index
    %18 = vector.load %arg8[%c0_17, %c0_18] : memref<1x32xf32, #tpu.memory_space<vmem>>, vector<1x32xf32>
    %cst_19 = arith.constant 0.000000e+00 : f32
    %19 = vector.broadcast %cst_19 : f32 to vector<8x32xf32>
    %20 = vector.extract_strided_slice %7 {offsets = [0, 0], sizes = [8, 8], strides = [1, 1]} : vector<16x32xf32> to vector<8x8xf32>
    %21 = vector.extract_strided_slice %14 {offsets = [0, 0], sizes = [8, 8], strides = [1, 1]} : vector<16x32xf32> to vector<8x8xf32>
    %cst_20 = arith.constant dense<0.000000e+00> : vector<8x8xf32>
    %22 = tpu.matmul %20, %21, %cst_20 {dimension_numbers = #tpu.dot_dimension_numbers<[1], [1], [0], [0], [0, 0, 1, 0], [], []>} : vector<8x8xf32>, vector<8x8xf32>, vector<8x8xf32> -> vector<8x8xf32>
    %cst_21 = arith.constant dense<0xFF800000> : vector<8xf32>
    %23 = vector.multi_reduction <maximumf>, %22, %cst_21 [1] : vector<8x8xf32> to vector<8xf32>
    %24 = vector.shape_cast %23 : vector<8xf32> to vector<8x1xf32>
    %25 = vector.broadcast %24 : vector<8x1xf32> to vector<8x8xf32>
    %26 = arith.subf %22, %25 : vector<8x8xf32>
    %27 = math.exp %26 : vector<8x8xf32>
    %cst_22 = arith.constant dense<0.000000e+00> : vector<8xf32>
    %28 = vector.multi_reduction <add>, %27, %cst_22 [1] : vector<8x8xf32> to vector<8xf32>
    %29 = vector.shape_cast %28 : vector<8xf32> to vector<8x1xf32>
    %30 = vector.broadcast %29 : vector<8x1xf32> to vector<8x8xf32>
    %31 = arith.divf %27, %30 : vector<8x8xf32>
    %32 = vector.extract_strided_slice %15 {offsets = [0, 0], sizes = [8, 8], strides = [1, 1]} : vector<16x32xf32> to vector<8x8xf32>
    %cst_23 = arith.constant dense<0.000000e+00> : vector<8x8xf32>
    %33 = tpu.matmul %31, %32, %cst_23 {dimension_numbers = #tpu.dot_dimension_numbers<[1], [0], [0], [1], [0, 0, 1, 1], [], []>} : vector<8x8xf32>, vector<8x8xf32>, vector<8x8xf32> -> vector<8x8xf32>
    %c0_24 = arith.constant 0 : index
    %c0_25 = arith.constant 0 : index
    %34 = vector.load %arg7[%c0_24, %c0_25] : memref<32x32xf32, #tpu.memory_space<vmem>>, vector<8x32xf32>
    %cst_26 = arith.constant dense<0.000000e+00> : vector<8x32xf32>
    %35 = tpu.matmul %33, %34, %cst_26 {dimension_numbers = #tpu.dot_dimension_numbers<[1], [0], [0], [1], [0, 0, 1, 1], [], []>} : vector<8x8xf32>, vector<8x32xf32>, vector<8x32xf32> -> vector<8x32xf32>
    %36 = arith.addf %19, %35 : vector<8x32xf32>
    %37 = vector.extract_strided_slice %7 {offsets = [0, 8], sizes = [8, 8], strides = [1, 1]} : vector<16x32xf32> to vector<8x8xf32>
    %38 = vector.extract_strided_slice %14 {offsets = [0, 8], sizes = [8, 8], strides = [1, 1]} : vector<16x32xf32> to vector<8x8xf32>
    %cst_27 = arith.constant dense<0.000000e+00> : vector<8x8xf32>
    %39 = tpu.matmul %37, %38, %cst_27 {dimension_numbers = #tpu.dot_dimension_numbers<[1], [1], [0], [0], [0, 0, 1, 0], [], []>} : vector<8x8xf32>, vector<8x8xf32>, vector<8x8xf32> -> vector<8x8xf32>
    %cst_28 = arith.constant dense<0xFF800000> : vector<8xf32>
    %40 = vector.multi_reduction <maximumf>, %39, %cst_28 [1] : vector<8x8xf32> to vector<8xf32>
    %41 = vector.shape_cast %40 : vector<8xf32> to vector<8x1xf32>
    %42 = vector.broadcast %41 : vector<8x1xf32> to vector<8x8xf32>
    %43 = arith.subf %39, %42 : vector<8x8xf32>
    %44 = math.exp %43 : vector<8x8xf32>
    %cst_29 = arith.constant dense<0.000000e+00> : vector<8xf32>
    %45 = vector.multi_reduction <add>, %44, %cst_29 [1] : vector<8x8xf32> to vector<8xf32>
    %46 = vector.shape_cast %45 : vector<8xf32> to vector<8x1xf32>
    %47 = vector.broadcast %46 : vector<8x1xf32> to vector<8x8xf32>
    %48 = arith.divf %44, %47 : vector<8x8xf32>
    %49 = vector.extract_strided_slice %15 {offsets = [0, 8], sizes = [8, 8], strides = [1, 1]} : vector<16x32xf32> to vector<8x8xf32>
    %cst_30 = arith.constant dense<0.000000e+00> : vector<8x8xf32>
    %50 = tpu.matmul %48, %49, %cst_30 {dimension_numbers = #tpu.dot_dimension_numbers<[1], [0], [0], [1], [0, 0, 1, 1], [], []>} : vector<8x8xf32>, vector<8x8xf32>, vector<8x8xf32> -> vector<8x8xf32>
    %c8 = arith.constant 8 : index
    %c0_31 = arith.constant 0 : index
    %51 = vector.load %arg7[%c8, %c0_31] : memref<32x32xf32, #tpu.memory_space<vmem>>, vector<8x32xf32>
    %cst_32 = arith.constant dense<0.000000e+00> : vector<8x32xf32>
    %52 = tpu.matmul %50, %51, %cst_32 {dimension_numbers = #tpu.dot_dimension_numbers<[1], [0], [0], [1], [0, 0, 1, 1], [], []>} : vector<8x8xf32>, vector<8x32xf32>, vector<8x32xf32> -> vector<8x32xf32>
    %53 = arith.addf %36, %52 : vector<8x32xf32>
    %54 = vector.extract_strided_slice %7 {offsets = [0, 16], sizes = [8, 8], strides = [1, 1]} : vector<16x32xf32> to vector<8x8xf32>
    %55 = vector.extract_strided_slice %14 {offsets = [0, 16], sizes = [8, 8], strides = [1, 1]} : vector<16x32xf32> to vector<8x8xf32>
    %cst_33 = arith.constant dense<0.000000e+00> : vector<8x8xf32>
    %56 = tpu.matmul %54, %55, %cst_33 {dimension_numbers = #tpu.dot_dimension_numbers<[1], [1], [0], [0], [0, 0, 1, 0], [], []>} : vector<8x8xf32>, vector<8x8xf32>, vector<8x8xf32> -> vector<8x8xf32>
    %cst_34 = arith.constant dense<0xFF800000> : vector<8xf32>
    %57 = vector.multi_reduction <maximumf>, %56, %cst_34 [1] : vector<8x8xf32> to vector<8xf32>
    %58 = vector.shape_cast %57 : vector<8xf32> to vector<8x1xf32>
    %59 = vector.broadcast %58 : vector<8x1xf32> to vector<8x8xf32>
    %60 = arith.subf %56, %59 : vector<8x8xf32>
    %61 = math.exp %60 : vector<8x8xf32>
    %cst_35 = arith.constant dense<0.000000e+00> : vector<8xf32>
    %62 = vector.multi_reduction <add>, %61, %cst_35 [1] : vector<8x8xf32> to vector<8xf32>
    %63 = vector.shape_cast %62 : vector<8xf32> to vector<8x1xf32>
    %64 = vector.broadcast %63 : vector<8x1xf32> to vector<8x8xf32>
    %65 = arith.divf %61, %64 : vector<8x8xf32>
    %66 = vector.extract_strided_slice %15 {offsets = [0, 16], sizes = [8, 8], strides = [1, 1]} : vector<16x32xf32> to vector<8x8xf32>
    %cst_36 = arith.constant dense<0.000000e+00> : vector<8x8xf32>
    %67 = tpu.matmul %65, %66, %cst_36 {dimension_numbers = #tpu.dot_dimension_numbers<[1], [0], [0], [1], [0, 0, 1, 1], [], []>} : vector<8x8xf32>, vector<8x8xf32>, vector<8x8xf32> -> vector<8x8xf32>
    %c16 = arith.constant 16 : index
    %c0_37 = arith.constant 0 : index
    %68 = vector.load %arg7[%c16, %c0_37] : memref<32x32xf32, #tpu.memory_space<vmem>>, vector<8x32xf32>
    %cst_38 = arith.constant dense<0.000000e+00> : vector<8x32xf32>
    %69 = tpu.matmul %67, %68, %cst_38 {dimension_numbers = #tpu.dot_dimension_numbers<[1], [0], [0], [1], [0, 0, 1, 1], [], []>} : vector<8x8xf32>, vector<8x32xf32>, vector<8x32xf32> -> vector<8x32xf32>
    %70 = arith.addf %53, %69 : vector<8x32xf32>
    %71 = vector.extract_strided_slice %7 {offsets = [0, 24], sizes = [8, 8], strides = [1, 1]} : vector<16x32xf32> to vector<8x8xf32>
    %72 = vector.extract_strided_slice %14 {offsets = [0, 24], sizes = [8, 8], strides = [1, 1]} : vector<16x32xf32> to vector<8x8xf32>
    %cst_39 = arith.constant dense<0.000000e+00> : vector<8x8xf32>
    %73 = tpu.matmul %71, %72, %cst_39 {dimension_numbers = #tpu.dot_dimension_numbers<[1], [1], [0], [0], [0, 0, 1, 0], [], []>} : vector<8x8xf32>, vector<8x8xf32>, vector<8x8xf32> -> vector<8x8xf32>
    %cst_40 = arith.constant dense<0xFF800000> : vector<8xf32>
    %74 = vector.multi_reduction <maximumf>, %73, %cst_40 [1] : vector<8x8xf32> to vector<8xf32>
    %75 = vector.shape_cast %74 : vector<8xf32> to vector<8x1xf32>
    %76 = vector.broadcast %75 : vector<8x1xf32> to vector<8x8xf32>
    %77 = arith.subf %73, %76 : vector<8x8xf32>
    %78 = math.exp %77 : vector<8x8xf32>
    %cst_41 = arith.constant dense<0.000000e+00> : vector<8xf32>
    %79 = vector.multi_reduction <add>, %78, %cst_41 [1] : vector<8x8xf32> to vector<8xf32>
    %80 = vector.shape_cast %79 : vector<8xf32> to vector<8x1xf32>
    %81 = vector.broadcast %80 : vector<8x1xf32> to vector<8x8xf32>
    %82 = arith.divf %78, %81 : vector<8x8xf32>
    %83 = vector.extract_strided_slice %15 {offsets = [0, 24], sizes = [8, 8], strides = [1, 1]} : vector<16x32xf32> to vector<8x8xf32>
    %cst_42 = arith.constant dense<0.000000e+00> : vector<8x8xf32>
    %84 = tpu.matmul %82, %83, %cst_42 {dimension_numbers = #tpu.dot_dimension_numbers<[1], [0], [0], [1], [0, 0, 1, 1], [], []>} : vector<8x8xf32>, vector<8x8xf32>, vector<8x8xf32> -> vector<8x8xf32>
    %c24 = arith.constant 24 : index
    %c0_43 = arith.constant 0 : index
    %85 = vector.load %arg7[%c24, %c0_43] : memref<32x32xf32, #tpu.memory_space<vmem>>, vector<8x32xf32>
    %cst_44 = arith.constant dense<0.000000e+00> : vector<8x32xf32>
    %86 = tpu.matmul %84, %85, %cst_44 {dimension_numbers = #tpu.dot_dimension_numbers<[1], [0], [0], [1], [0, 0, 1, 1], [], []>} : vector<8x8xf32>, vector<8x32xf32>, vector<8x32xf32> -> vector<8x32xf32>
    %87 = arith.addf %70, %86 : vector<8x32xf32>
    %88 = vector.extract_strided_slice %0 {offsets = [0, 0], sizes = [8, 32], strides = [1, 1]} : vector<16x32xf32> to vector<8x32xf32>
    %89 = arith.addf %88, %87 : vector<8x32xf32>
    %90 = vector.broadcast %18 : vector<1x32xf32> to vector<8x32xf32>
    %91 = arith.addf %89, %90 : vector<8x32xf32>
    %cst_45 = arith.constant dense<0.000000e+00> : vector<8xf32>
    %92 = vector.multi_reduction <add>, %91, %cst_45 [1] : vector<8x32xf32> to vector<8xf32>
    %93 = vector.shape_cast %92 : vector<8xf32> to vector<8x1xf32>
    %cst_46 = arith.constant 3.200000e+01 : f32
    %94 = vector.broadcast %cst_46 : f32 to vector<8x1xf32>
    %95 = arith.divf %93, %94 : vector<8x1xf32>
    %96 = vector.broadcast %95 : vector<8x1xf32> to vector<8x32xf32>
    %97 = arith.subf %91, %96 : vector<8x32xf32>
    %98 = arith.mulf %97, %97 : vector<8x32xf32>
    %cst_47 = arith.constant dense<0.000000e+00> : vector<8xf32>
    %99 = vector.multi_reduction <add>, %98, %cst_47 [1] : vector<8x32xf32> to vector<8xf32>
    %100 = vector.shape_cast %99 : vector<8xf32> to vector<8x1xf32>
    %cst_48 = arith.constant 3.200000e+01 : f32
    %101 = vector.broadcast %cst_48 : f32 to vector<8x1xf32>
    %102 = arith.divf %100, %101 : vector<8x1xf32>
    %103 = vector.broadcast %95 : vector<8x1xf32> to vector<8x32xf32>
    %104 = arith.subf %91, %103 : vector<8x32xf32>
    %cst_49 = arith.constant 9.99999974E-6 : f32
    %105 = vector.broadcast %cst_49 : f32 to vector<8x1xf32>
    %106 = arith.addf %102, %105 : vector<8x1xf32>
    %107 = math.rsqrt %106 : vector<8x1xf32>
    %108 = vector.broadcast %107 : vector<8x1xf32> to vector<8x32xf32>
    %109 = arith.mulf %104, %108 : vector<8x32xf32>
    %110 = vector.broadcast %16 : vector<1x32xf32> to vector<8x32xf32>
    %111 = arith.mulf %109, %110 : vector<8x32xf32>
    %112 = vector.broadcast %17 : vector<1x32xf32> to vector<8x32xf32>
    %113 = arith.addf %111, %112 : vector<8x32xf32>
    %c0_50 = arith.constant 0 : index
    %c0_51 = arith.constant 0 : index
    %114 = vector.load %arg11[%c0_50, %c0_51] : memref<16x32xf32, #tpu.memory_space<vmem>>, vector<8x32xf32>
    tpu.vector_store %arg11[%c0_50, %c0_51], %113 {strides = array<i32>} : memref<16x32xf32, #tpu.memory_space<vmem>>, vector<8x32xf32>,
    %cst_52 = arith.constant 0.000000e+00 : f32
    %115 = vector.broadcast %cst_52 : f32 to vector<8x32xf32>
    %116 = vector.extract_strided_slice %7 {offsets = [8, 0], sizes = [8, 8], strides = [1, 1]} : vector<16x32xf32> to vector<8x8xf32>
    %117 = vector.extract_strided_slice %14 {offsets = [8, 0], sizes = [8, 8], strides = [1, 1]} : vector<16x32xf32> to vector<8x8xf32>
    %cst_53 = arith.constant dense<0.000000e+00> : vector<8x8xf32>
    %118 = tpu.matmul %116, %117, %cst_53 {dimension_numbers = #tpu.dot_dimension_numbers<[1], [1], [0], [0], [0, 0, 1, 0], [], []>} : vector<8x8xf32>, vector<8x8xf32>, vector<8x8xf32> -> vector<8x8xf32>
    %cst_54 = arith.constant dense<0xFF800000> : vector<8xf32>
    %119 = vector.multi_reduction <maximumf>, %118, %cst_54 [1] : vector<8x8xf32> to vector<8xf32>
    %120 = vector.shape_cast %119 : vector<8xf32> to vector<8x1xf32>
    %121 = vector.broadcast %120 : vector<8x1xf32> to vector<8x8xf32>
    %122 = arith.subf %118, %121 : vector<8x8xf32>
    %123 = math.exp %122 : vector<8x8xf32>
    %cst_55 = arith.constant dense<0.000000e+00> : vector<8xf32>
    %124 = vector.multi_reduction <add>, %123, %cst_55 [1] : vector<8x8xf32> to vector<8xf32>
    %125 = vector.shape_cast %124 : vector<8xf32> to vector<8x1xf32>
    %126 = vector.broadcast %125 : vector<8x1xf32> to vector<8x8xf32>
    %127 = arith.divf %123, %126 : vector<8x8xf32>
    %128 = vector.extract_strided_slice %15 {offsets = [8, 0], sizes = [8, 8], strides = [1, 1]} : vector<16x32xf32> to vector<8x8xf32>
    %cst_56 = arith.constant dense<0.000000e+00> : vector<8x8xf32>
    %129 = tpu.matmul %127, %128, %cst_56 {dimension_numbers = #tpu.dot_dimension_numbers<[1], [0], [0], [1], [0, 0, 1, 1], [], []>} : vector<8x8xf32>, vector<8x8xf32>, vector<8x8xf32> -> vector<8x8xf32>
    %c0_57 = arith.constant 0 : index
    %c0_58 = arith.constant 0 : index
    %130 = vector.load %arg7[%c0_57, %c0_58] : memref<32x32xf32, #tpu.memory_space<vmem>>, vector<8x32xf32>
    %cst_59 = arith.constant dense<0.000000e+00> : vector<8x32xf32>
    %131 = tpu.matmul %129, %130, %cst_59 {dimension_numbers = #tpu.dot_dimension_numbers<[1], [0], [0], [1], [0, 0, 1, 1], [], []>} : vector<8x8xf32>, vector<8x32xf32>, vector<8x32xf32> -> vector<8x32xf32>
    %132 = arith.addf %115, %131 : vector<8x32xf32>
    %133 = vector.extract_strided_slice %7 {offsets = [8, 8], sizes = [8, 8], strides = [1, 1]} : vector<16x32xf32> to vector<8x8xf32>
    %134 = vector.extract_strided_slice %14 {offsets = [8, 8], sizes = [8, 8], strides = [1, 1]} : vector<16x32xf32> to vector<8x8xf32>
    %cst_60 = arith.constant dense<0.000000e+00> : vector<8x8xf32>
    %135 = tpu.matmul %133, %134, %cst_60 {dimension_numbers = #tpu.dot_dimension_numbers<[1], [1], [0], [0], [0, 0, 1, 0], [], []>} : vector<8x8xf32>, vector<8x8xf32>, vector<8x8xf32> -> vector<8x8xf32>
    %cst_61 = arith.constant dense<0xFF800000> : vector<8xf32>
    %136 = vector.multi_reduction <maximumf>, %135, %cst_61 [1] : vector<8x8xf32> to vector<8xf32>
    %137 = vector.shape_cast %136 : vector<8xf32> to vector<8x1xf32>
    %138 = vector.broadcast %137 : vector<8x1xf32> to vector<8x8xf32>
    %139 = arith.subf %135, %138 : vector<8x8xf32>
    %140 = math.exp %139 : vector<8x8xf32>
    %cst_62 = arith.constant dense<0.000000e+00> : vector<8xf32>
    %141 = vector.multi_reduction <add>, %140, %cst_62 [1] : vector<8x8xf32> to vector<8xf32>
    %142 = vector.shape_cast %141 : vector<8xf32> to vector<8x1xf32>
    %143 = vector.broadcast %142 : vector<8x1xf32> to vector<8x8xf32>
    %144 = arith.divf %140, %143 : vector<8x8xf32>
    %145 = vector.extract_strided_slice %15 {offsets = [8, 8], sizes = [8, 8], strides = [1, 1]} : vector<16x32xf32> to vector<8x8xf32>
    %cst_63 = arith.constant dense<0.000000e+00> : vector<8x8xf32>
    %146 = tpu.matmul %144, %145, %cst_63 {dimension_numbers = #tpu.dot_dimension_numbers<[1], [0], [0], [1], [0, 0, 1, 1], [], []>} : vector<8x8xf32>, vector<8x8xf32>, vector<8x8xf32> -> vector<8x8xf32>
    %c8_64 = arith.constant 8 : index
    %c0_65 = arith.constant 0 : index
    %147 = vector.load %arg7[%c8_64, %c0_65] : memref<32x32xf32, #tpu.memory_space<vmem>>, vector<8x32xf32>
    %cst_66 = arith.constant dense<0.000000e+00> : vector<8x32xf32>
    %148 = tpu.matmul %146, %147, %cst_66 {dimension_numbers = #tpu.dot_dimension_numbers<[1], [0], [0], [1], [0, 0, 1, 1], [], []>} : vector<8x8xf32>, vector<8x32xf32>, vector<8x32xf32> -> vector<8x32xf32>
    %149 = arith.addf %132, %148 : vector<8x32xf32>
    %150 = vector.extract_strided_slice %7 {offsets = [8, 16], sizes = [8, 8], strides = [1, 1]} : vector<16x32xf32> to vector<8x8xf32>
    %151 = vector.extract_strided_slice %14 {offsets = [8, 16], sizes = [8, 8], strides = [1, 1]} : vector<16x32xf32> to vector<8x8xf32>
    %cst_67 = arith.constant dense<0.000000e+00> : vector<8x8xf32>
    %152 = tpu.matmul %150, %151, %cst_67 {dimension_numbers = #tpu.dot_dimension_numbers<[1], [1], [0], [0], [0, 0, 1, 0], [], []>} : vector<8x8xf32>, vector<8x8xf32>, vector<8x8xf32> -> vector<8x8xf32>
    %cst_68 = arith.constant dense<0xFF800000> : vector<8xf32>
    %153 = vector.multi_reduction <maximumf>, %152, %cst_68 [1] : vector<8x8xf32> to vector<8xf32>
    %154 = vector.shape_cast %153 : vector<8xf32> to vector<8x1xf32>
    %155 = vector.broadcast %154 : vector<8x1xf32> to vector<8x8xf32>
    %156 = arith.subf %152, %155 : vector<8x8xf32>
    %157 = math.exp %156 : vector<8x8xf32>
    %cst_69 = arith.constant dense<0.000000e+00> : vector<8xf32>
    %158 = vector.multi_reduction <add>, %157, %cst_69 [1] : vector<8x8xf32> to vector<8xf32>
    %159 = vector.shape_cast %158 : vector<8xf32> to vector<8x1xf32>
    %160 = vector.broadcast %159 : vector<8x1xf32> to vector<8x8xf32>
    %161 = arith.divf %157, %160 : vector<8x8xf32>
    %162 = vector.extract_strided_slice %15 {offsets = [8, 16], sizes = [8, 8], strides = [1, 1]} : vector<16x32xf32> to vector<8x8xf32>
    %cst_70 = arith.constant dense<0.000000e+00> : vector<8x8xf32>
    %163 = tpu.matmul %161, %162, %cst_70 {dimension_numbers = #tpu.dot_dimension_numbers<[1], [0], [0], [1], [0, 0, 1, 1], [], []>} : vector<8x8xf32>, vector<8x8xf32>, vector<8x8xf32> -> vector<8x8xf32>
    %c16_71 = arith.constant 16 : index
    %c0_72 = arith.constant 0 : index
    %164 = vector.load %arg7[%c16_71, %c0_72] : memref<32x32xf32, #tpu.memory_space<vmem>>, vector<8x32xf32>
    %cst_73 = arith.constant dense<0.000000e+00> : vector<8x32xf32>
    %165 = tpu.matmul %163, %164, %cst_73 {dimension_numbers = #tpu.dot_dimension_numbers<[1], [0], [0], [1], [0, 0, 1, 1], [], []>} : vector<8x8xf32>, vector<8x32xf32>, vector<8x32xf32> -> vector<8x32xf32>
    %166 = arith.addf %149, %165 : vector<8x32xf32>
    %167 = vector.extract_strided_slice %7 {offsets = [8, 24], sizes = [8, 8], strides = [1, 1]} : vector<16x32xf32> to vector<8x8xf32>
    %168 = vector.extract_strided_slice %14 {offsets = [8, 24], sizes = [8, 8], strides = [1, 1]} : vector<16x32xf32> to vector<8x8xf32>
    %cst_74 = arith.constant dense<0.000000e+00> : vector<8x8xf32>
    %169 = tpu.matmul %167, %168, %cst_74 {dimension_numbers = #tpu.dot_dimension_numbers<[1], [1], [0], [0], [0, 0, 1, 0], [], []>} : vector<8x8xf32>, vector<8x8xf32>, vector<8x8xf32> -> vector<8x8xf32>
    %cst_75 = arith.constant dense<0xFF800000> : vector<8xf32>
    %170 = vector.multi_reduction <maximumf>, %169, %cst_75 [1] : vector<8x8xf32> to vector<8xf32>
    %171 = vector.shape_cast %170 : vector<8xf32> to vector<8x1xf32>
    %172 = vector.broadcast %171 : vector<8x1xf32> to vector<8x8xf32>
    %173 = arith.subf %169, %172 : vector<8x8xf32>
    %174 = math.exp %173 : vector<8x8xf32>
    %cst_76 = arith.constant dense<0.000000e+00> : vector<8xf32>
    %175 = vector.multi_reduction <add>, %174, %cst_76 [1] : vector<8x8xf32> to vector<8xf32>
    %176 = vector.shape_cast %175 : vector<8xf32> to vector<8x1xf32>
    %177 = vector.broadcast %176 : vector<8x1xf32> to vector<8x8xf32>
    %178 = arith.divf %174, %177 : vector<8x8xf32>
    %179 = vector.extract_strided_slice %15 {offsets = [8, 24], sizes = [8, 8], strides = [1, 1]} : vector<16x32xf32> to vector<8x8xf32>
    %cst_77 = arith.constant dense<0.000000e+00> : vector<8x8xf32>
    %180 = tpu.matmul %178, %179, %cst_77 {dimension_numbers = #tpu.dot_dimension_numbers<[1], [0], [0], [1], [0, 0, 1, 1], [], []>} : vector<8x8xf32>, vector<8x8xf32>, vector<8x8xf32> -> vector<8x8xf32>
    %c24_78 = arith.constant 24 : index
    %c0_79 = arith.constant 0 : index
    %181 = vector.load %arg7[%c24_78, %c0_79] : memref<32x32xf32, #tpu.memory_space<vmem>>, vector<8x32xf32>
    %cst_80 = arith.constant dense<0.000000e+00> : vector<8x32xf32>
    %182 = tpu.matmul %180, %181, %cst_80 {dimension_numbers = #tpu.dot_dimension_numbers<[1], [0], [0], [1], [0, 0, 1, 1], [], []>} : vector<8x8xf32>, vector<8x32xf32>, vector<8x32xf32> -> vector<8x32xf32>
    %183 = arith.addf %166, %182 : vector<8x32xf32>
    %184 = vector.extract_strided_slice %0 {offsets = [8, 0], sizes = [8, 32], strides = [1, 1]} : vector<16x32xf32> to vector<8x32xf32>
    %185 = arith.addf %184, %183 : vector<8x32xf32>
    %186 = vector.broadcast %18 : vector<1x32xf32> to vector<8x32xf32>
    %187 = arith.addf %185, %186 : vector<8x32xf32>
    %cst_81 = arith.constant dense<0.000000e+00> : vector<8xf32>
    %188 = vector.multi_reduction <add>, %187, %cst_81 [1] : vector<8x32xf32> to vector<8xf32>
    %189 = vector.shape_cast %188 : vector<8xf32> to vector<8x1xf32>
    %cst_82 = arith.constant 3.200000e+01 : f32
    %190 = vector.broadcast %cst_82 : f32 to vector<8x1xf32>
    %191 = arith.divf %189, %190 : vector<8x1xf32>
    %192 = vector.broadcast %191 : vector<8x1xf32> to vector<8x32xf32>
    %193 = arith.subf %187, %192 : vector<8x32xf32>
    %194 = arith.mulf %193, %193 : vector<8x32xf32>
    %cst_83 = arith.constant dense<0.000000e+00> : vector<8xf32>
    %195 = vector.multi_reduction <add>, %194, %cst_83 [1] : vector<8x32xf32> to vector<8xf32>
    %196 = vector.shape_cast %195 : vector<8xf32> to vector<8x1xf32>
    %cst_84 = arith.constant 3.200000e+01 : f32
    %197 = vector.broadcast %cst_84 : f32 to vector<8x1xf32>
    %198 = arith.divf %196, %197 : vector<8x1xf32>
    %199 = vector.broadcast %191 : vector<8x1xf32> to vector<8x32xf32>
    %200 = arith.subf %187, %199 : vector<8x32xf32>
    %cst_85 = arith.constant 9.99999974E-6 : f32
    %201 = vector.broadcast %cst_85 : f32 to vector<8x1xf32>
    %202 = arith.addf %198, %201 : vector<8x1xf32>
    %203 = math.rsqrt %202 : vector<8x1xf32>
    %204 = vector.broadcast %203 : vector<8x1xf32> to vector<8x32xf32>
    %205 = arith.mulf %200, %204 : vector<8x32xf32>
    %206 = vector.broadcast %16 : vector<1x32xf32> to vector<8x32xf32>
    %207 = arith.mulf %205, %206 : vector<8x32xf32>
    %208 = vector.broadcast %17 : vector<1x32xf32> to vector<8x32xf32>
    %209 = arith.addf %207, %208 : vector<8x32xf32>
    %c8_86 = arith.constant 8 : index
    %c0_87 = arith.constant 0 : index
    %210 = vector.load %arg11[%c8_86, %c0_87] : memref<16x32xf32, #tpu.memory_space<vmem>>, vector<8x32xf32>
    tpu.vector_store %arg11[%c8_86, %c0_87], %209 {strides = array<i32>} : memref<16x32xf32, #tpu.memory_space<vmem>>, vector<8x32xf32>,
    return
  }
  func.func @transform_0(%arg0: i32) -> (i32, i32) {
    %c0_i32 = arith.constant 0 : i32
    %c0_i32_0 = arith.constant 0 : i32
    %c0_i32_1 = arith.constant 0 : i32
    return %c0_i32, %c0_i32_0 : i32, i32
  }
  func.func @transform_1(%arg0: i32) -> (i32, i32) {
    %c0_i32 = arith.constant 0 : i32
    %c0_i32_0 = arith.constant 0 : i32
    %c0_i32_1 = arith.constant 0 : i32
    return %c0_i32, %c0_i32_0 : i32, i32
  }
  func.func @transform_2(%arg0: i32) -> (i32, i32) {
    %c0_i32 = arith.constant 0 : i32
    %c0_i32_0 = arith.constant 0 : i32
    %c0_i32_1 = arith.constant 0 : i32
    return %c0_i32, %c0_i32_0 : i32, i32
  }
  func.func @transform_3(%arg0: i32) -> (i32, i32) {
    %c0_i32 = arith.constant 0 : i32
    %c0_i32_0 = arith.constant 0 : i32
    %c0_i32_1 = arith.constant 0 : i32
    return %c0_i32, %c0_i32_0 : i32, i32
  }
  func.func @transform_4(%arg0: i32) -> (i32, i32) {
    %c0_i32 = arith.constant 0 : i32
    %c0_i32_0 = arith.constant 0 : i32
    %c0_i32_1 = arith.constant 0 : i32
    return %c0_i32, %c0_i32_0 : i32, i32
  }
  func.func @transform_5(%arg0: i32) -> (i32, i32) {
    %c0_i32 = arith.constant 0 : i32
    %c0_i32_0 = arith.constant 0 : i32
    %c0_i32_1 = arith.constant 0 : i32
    return %c0_i32, %c0_i32_0 : i32, i32
  }
  func.func @transform_6(%arg0: i32) -> (i32, i32) {
    %c0_i32 = arith.constant 0 : i32
    %c0_i32_0 = arith.constant 0 : i32
    %c0_i32_1 = arith.constant 0 : i32
    return %c0_i32, %c0_i32_0 : i32, i32
  }
  func.func @transform_7(%arg0: i32) -> (i32, i32) {
    %c0_i32 = arith.constant 0 : i32
    %c0_i32_0 = arith.constant 0 : i32
    %c0_i32_1 = arith.constant 0 : i32
    return %c0_i32, %c0_i32_0 : i32, i32
  }
  func.func @transform_8(%arg0: i32) -> (i32, i32) {
    %c0_i32 = arith.constant 0 : i32
    %c0_i32_0 = arith.constant 0 : i32
    %c0_i32_1 = arith.constant 0 : i32
    return %c0_i32, %c0_i32_0 : i32, i32
  }
  func.func @transform_9(%arg0: i32) -> (i32, i32) {
    %c0_i32 = arith.constant 0 : i32
    %c0_i32_0 = arith.constant 0 : i32
    %c0_i32_1 = arith.constant 0 : i32
    return %c0_i32, %c0_i32_0 : i32, i32
  }
  func.func @transform_10(%arg0: i32) -> (i32, i32) {
    %c0_i32 = arith.constant 0 : i32
    %c0_i32_0 = arith.constant 0 : i32
    %c0_i32_1 = arith.constant 0 : i32
    return %c0_i32, %c0_i32_0 : i32, i32
  }
}

module attributes {stable_mosaic.version = 11 : i64} {
  func.func @_attn_sublayer_kernel(%arg0: i32, %arg1: memref<16x32xf32, #tpu.memory_space<vmem>>, %arg2: memref<16x32xf32, #tpu.memory_space<vmem>>, %arg3: memref<32x32xf32, #tpu.memory_space<vmem>>, %arg4: memref<1x32xf32, #tpu.memory_space<vmem>>, %arg5: memref<32x64xf32, #tpu.memory_space<vmem>>, %arg6: memref<1x64xf32, #tpu.memory_space<vmem>>, %arg7: memref<32x32xf32, #tpu.memory_space<vmem>>, %arg8: memref<1x32xf32, #tpu.memory_space<vmem>>, %arg9: memref<1x32xf32, #tpu.memory_space<vmem>>, %arg10: memref<1x32xf32, #tpu.memory_space<vmem>>, %arg11: memref<16x32xf32, #tpu.memory_space<vmem>>) attributes {dimension_semantics = [#tpu.dimension_semantics<arbitrary>], iteration_bounds = array<i64: 1>, scalar_prefetch = 0 : i64, scratch_operands = 0 : i64, tpu.core_type = #tpu.core_type<tc>, window_params = [{pipeline_mode = #tpu.pipeline_mode<synchronous>, transform_indices = @transform_0, window_bounds = array<i64: 16, 32>}, {pipeline_mode = #tpu.pipeline_mode<synchronous>, transform_indices = @transform_1, window_bounds = array<i64: 16, 32>}, {pipeline_mode = #tpu.pipeline_mode<synchronous>, transform_indices = @transform_2, window_bounds = array<i64: 32, 32>}, {pipeline_mode = #tpu.pipeline_mode<synchronous>, transform_indices = @transform_3, window_bounds = array<i64: 1, 32>}, {pipeline_mode = #tpu.pipeline_mode<synchronous>, transform_indices = @transform_4, window_bounds = array<i64: 32, 64>}, {pipeline_mode = #tpu.pipeline_mode<synchronous>, transform_indices = @transform_5, window_bounds = array<i64: 1, 64>}, {pipeline_mode = #tpu.pipeline_mode<synchronous>, transform_indices = @transform_6, window_bounds = array<i64: 32, 32>}, {pipeline_mode = #tpu.pipeline_mode<synchronous>, transform_indices = @transform_7, window_bounds = array<i64: 1, 32>}, {pipeline_mode = #tpu.pipeline_mode<synchronous>, transform_indices = @transform_8, window_bounds = array<i64: 1, 32>}, {pipeline_mode = #tpu.pipeline_mode<synchronous>, transform_indices = @transform_9, window_bounds = array<i64: 1, 32>}, {pipeline_mode = #tpu.pipeline_mode<synchronous>, transform_indices = @transform_10, window_bounds = array<i64: 16, 32>}]} {
    %c0 = arith.constant 0 : index
    %c0_0 = arith.constant 0 : index
    %0 = vector.load %arg1[%c0, %c0_0] : memref<16x32xf32, #tpu.memory_space<vmem>>, vector<16x32xf32>
    %c0_1 = arith.constant 0 : index
    %c0_2 = arith.constant 0 : index
    %1 = vector.load %arg3[%c0_1, %c0_2] : memref<32x32xf32, #tpu.memory_space<vmem>>, vector<32x32xf32>
    %cst = arith.constant dense<0.000000e+00> : vector<16x32xf32>
    %2 = tpu.matmul %0, %1, %cst {dimension_numbers = #tpu.dot_dimension_numbers<[1], [0], [0], [1], [0, 0, 1, 1], [], []>} : vector<16x32xf32>, vector<32x32xf32>, vector<16x32xf32> -> vector<16x32xf32>
    %c0_3 = arith.constant 0 : index
    %c0_4 = arith.constant 0 : index
    %3 = vector.load %arg4[%c0_3, %c0_4] : memref<1x32xf32, #tpu.memory_space<vmem>>, vector<1x32xf32>
    %4 = vector.broadcast %3 : vector<1x32xf32> to vector<16x32xf32>
    %5 = arith.addf %2, %4 : vector<16x32xf32>
    %cst_5 = arith.constant 0.353553385 : f32
    %6 = vector.broadcast %cst_5 : f32 to vector<16x32xf32>
    %7 = arith.mulf %5, %6 : vector<16x32xf32>
    %c0_6 = arith.constant 0 : index
    %c0_7 = arith.constant 0 : index
    %8 = vector.load %arg2[%c0_6, %c0_7] : memref<16x32xf32, #tpu.memory_space<vmem>>, vector<16x32xf32>
    %c0_8 = arith.constant 0 : index
    %c0_9 = arith.constant 0 : index
    %9 = vector.load %arg5[%c0_8, %c0_9] : memref<32x64xf32, #tpu.memory_space<vmem>>, vector<32x64xf32>
    %cst_10 = arith.constant dense<0.000000e+00> : vector<16x64xf32>
    %10 = tpu.matmul %8, %9, %cst_10 {dimension_numbers = #tpu.dot_dimension_numbers<[1], [0], [0], [1], [0, 0, 1, 1], [], []>} : vector<16x32xf32>, vector<32x64xf32>, vector<16x64xf32> -> vector<16x64xf32>
    %c0_11 = arith.constant 0 : index
    %c0_12 = arith.constant 0 : index
    %11 = vector.load %arg6[%c0_11, %c0_12] : memref<1x64xf32, #tpu.memory_space<vmem>>, vector<1x64xf32>
    %12 = vector.broadcast %11 : vector<1x64xf32> to vector<16x64xf32>
    %13 = arith.addf %10, %12 : vector<16x64xf32>
    %14 = vector.extract_strided_slice %13 {offsets = [0, 0], sizes = [16, 32], strides = [1, 1]} : vector<16x64xf32> to vector<16x32xf32>
    %15 = vector.extract_strided_slice %13 {offsets = [0, 32], sizes = [16, 32], strides = [1, 1]} : vector<16x64xf32> to vector<16x32xf32>
    %16 = tpu.iota {dimensions = array<i32: 0>} : vector<8x8xi32>
    %17 = tpu.iota {dimensions = array<i32: 1>} : vector<8x8xi32>
    %18 = arith.cmpi sgt, %17, %16 : vector<8x8xi32>
    %cst_13 = arith.constant -1.000000e+09 : f32
    %cst_14 = arith.constant 0.000000e+00 : f32
    %19 = vector.broadcast %cst_13 : f32 to vector<8x8xf32>
    %20 = vector.broadcast %cst_14 : f32 to vector<8x8xf32>
    %21 = arith.select %18, %19, %20 : vector<8x8xi1>, vector<8x8xf32>
    %c0_15 = arith.constant 0 : index
    %c0_16 = arith.constant 0 : index
    %22 = vector.load %arg9[%c0_15, %c0_16] : memref<1x32xf32, #tpu.memory_space<vmem>>, vector<1x32xf32>
    %c0_17 = arith.constant 0 : index
    %c0_18 = arith.constant 0 : index
    %23 = vector.load %arg10[%c0_17, %c0_18] : memref<1x32xf32, #tpu.memory_space<vmem>>, vector<1x32xf32>
    %c0_19 = arith.constant 0 : index
    %c0_20 = arith.constant 0 : index
    %24 = vector.load %arg8[%c0_19, %c0_20] : memref<1x32xf32, #tpu.memory_space<vmem>>, vector<1x32xf32>
    %cst_21 = arith.constant 0.000000e+00 : f32
    %25 = vector.broadcast %cst_21 : f32 to vector<8x32xf32>
    %26 = vector.extract_strided_slice %7 {offsets = [0, 0], sizes = [8, 8], strides = [1, 1]} : vector<16x32xf32> to vector<8x8xf32>
    %27 = vector.extract_strided_slice %14 {offsets = [0, 0], sizes = [8, 8], strides = [1, 1]} : vector<16x32xf32> to vector<8x8xf32>
    %cst_22 = arith.constant dense<0.000000e+00> : vector<8x8xf32>
    %28 = tpu.matmul %26, %27, %cst_22 {dimension_numbers = #tpu.dot_dimension_numbers<[1], [1], [0], [0], [0, 0, 1, 0], [], []>} : vector<8x8xf32>, vector<8x8xf32>, vector<8x8xf32> -> vector<8x8xf32>
    %29 = arith.addf %28, %21 : vector<8x8xf32>
    %cst_23 = arith.constant dense<0xFF800000> : vector<8xf32>
    %30 = vector.multi_reduction <maximumf>, %29, %cst_23 [1] : vector<8x8xf32> to vector<8xf32>
    %31 = vector.shape_cast %30 : vector<8xf32> to vector<8x1xf32>
    %32 = vector.broadcast %31 : vector<8x1xf32> to vector<8x8xf32>
    %33 = arith.subf %29, %32 : vector<8x8xf32>
    %34 = math.exp %33 : vector<8x8xf32>
    %cst_24 = arith.constant dense<0.000000e+00> : vector<8xf32>
    %35 = vector.multi_reduction <add>, %34, %cst_24 [1] : vector<8x8xf32> to vector<8xf32>
    %36 = vector.shape_cast %35 : vector<8xf32> to vector<8x1xf32>
    %37 = vector.broadcast %36 : vector<8x1xf32> to vector<8x8xf32>
    %38 = arith.divf %34, %37 : vector<8x8xf32>
    %39 = vector.extract_strided_slice %15 {offsets = [0, 0], sizes = [8, 8], strides = [1, 1]} : vector<16x32xf32> to vector<8x8xf32>
    %cst_25 = arith.constant dense<0.000000e+00> : vector<8x8xf32>
    %40 = tpu.matmul %38, %39, %cst_25 {dimension_numbers = #tpu.dot_dimension_numbers<[1], [0], [0], [1], [0, 0, 1, 1], [], []>} : vector<8x8xf32>, vector<8x8xf32>, vector<8x8xf32> -> vector<8x8xf32>
    %c0_26 = arith.constant 0 : index
    %c0_27 = arith.constant 0 : index
    %41 = vector.load %arg7[%c0_26, %c0_27] : memref<32x32xf32, #tpu.memory_space<vmem>>, vector<8x32xf32>
    %cst_28 = arith.constant dense<0.000000e+00> : vector<8x32xf32>
    %42 = tpu.matmul %40, %41, %cst_28 {dimension_numbers = #tpu.dot_dimension_numbers<[1], [0], [0], [1], [0, 0, 1, 1], [], []>} : vector<8x8xf32>, vector<8x32xf32>, vector<8x32xf32> -> vector<8x32xf32>
    %43 = arith.addf %25, %42 : vector<8x32xf32>
    %44 = vector.extract_strided_slice %7 {offsets = [0, 8], sizes = [8, 8], strides = [1, 1]} : vector<16x32xf32> to vector<8x8xf32>
    %45 = vector.extract_strided_slice %14 {offsets = [0, 8], sizes = [8, 8], strides = [1, 1]} : vector<16x32xf32> to vector<8x8xf32>
    %cst_29 = arith.constant dense<0.000000e+00> : vector<8x8xf32>
    %46 = tpu.matmul %44, %45, %cst_29 {dimension_numbers = #tpu.dot_dimension_numbers<[1], [1], [0], [0], [0, 0, 1, 0], [], []>} : vector<8x8xf32>, vector<8x8xf32>, vector<8x8xf32> -> vector<8x8xf32>
    %47 = arith.addf %46, %21 : vector<8x8xf32>
    %cst_30 = arith.constant dense<0xFF800000> : vector<8xf32>
    %48 = vector.multi_reduction <maximumf>, %47, %cst_30 [1] : vector<8x8xf32> to vector<8xf32>
    %49 = vector.shape_cast %48 : vector<8xf32> to vector<8x1xf32>
    %50 = vector.broadcast %49 : vector<8x1xf32> to vector<8x8xf32>
    %51 = arith.subf %47, %50 : vector<8x8xf32>
    %52 = math.exp %51 : vector<8x8xf32>
    %cst_31 = arith.constant dense<0.000000e+00> : vector<8xf32>
    %53 = vector.multi_reduction <add>, %52, %cst_31 [1] : vector<8x8xf32> to vector<8xf32>
    %54 = vector.shape_cast %53 : vector<8xf32> to vector<8x1xf32>
    %55 = vector.broadcast %54 : vector<8x1xf32> to vector<8x8xf32>
    %56 = arith.divf %52, %55 : vector<8x8xf32>
    %57 = vector.extract_strided_slice %15 {offsets = [0, 8], sizes = [8, 8], strides = [1, 1]} : vector<16x32xf32> to vector<8x8xf32>
    %cst_32 = arith.constant dense<0.000000e+00> : vector<8x8xf32>
    %58 = tpu.matmul %56, %57, %cst_32 {dimension_numbers = #tpu.dot_dimension_numbers<[1], [0], [0], [1], [0, 0, 1, 1], [], []>} : vector<8x8xf32>, vector<8x8xf32>, vector<8x8xf32> -> vector<8x8xf32>
    %c8 = arith.constant 8 : index
    %c0_33 = arith.constant 0 : index
    %59 = vector.load %arg7[%c8, %c0_33] : memref<32x32xf32, #tpu.memory_space<vmem>>, vector<8x32xf32>
    %cst_34 = arith.constant dense<0.000000e+00> : vector<8x32xf32>
    %60 = tpu.matmul %58, %59, %cst_34 {dimension_numbers = #tpu.dot_dimension_numbers<[1], [0], [0], [1], [0, 0, 1, 1], [], []>} : vector<8x8xf32>, vector<8x32xf32>, vector<8x32xf32> -> vector<8x32xf32>
    %61 = arith.addf %43, %60 : vector<8x32xf32>
    %62 = vector.extract_strided_slice %7 {offsets = [0, 16], sizes = [8, 8], strides = [1, 1]} : vector<16x32xf32> to vector<8x8xf32>
    %63 = vector.extract_strided_slice %14 {offsets = [0, 16], sizes = [8, 8], strides = [1, 1]} : vector<16x32xf32> to vector<8x8xf32>
    %cst_35 = arith.constant dense<0.000000e+00> : vector<8x8xf32>
    %64 = tpu.matmul %62, %63, %cst_35 {dimension_numbers = #tpu.dot_dimension_numbers<[1], [1], [0], [0], [0, 0, 1, 0], [], []>} : vector<8x8xf32>, vector<8x8xf32>, vector<8x8xf32> -> vector<8x8xf32>
    %65 = arith.addf %64, %21 : vector<8x8xf32>
    %cst_36 = arith.constant dense<0xFF800000> : vector<8xf32>
    %66 = vector.multi_reduction <maximumf>, %65, %cst_36 [1] : vector<8x8xf32> to vector<8xf32>
    %67 = vector.shape_cast %66 : vector<8xf32> to vector<8x1xf32>
    %68 = vector.broadcast %67 : vector<8x1xf32> to vector<8x8xf32>
    %69 = arith.subf %65, %68 : vector<8x8xf32>
    %70 = math.exp %69 : vector<8x8xf32>
    %cst_37 = arith.constant dense<0.000000e+00> : vector<8xf32>
    %71 = vector.multi_reduction <add>, %70, %cst_37 [1] : vector<8x8xf32> to vector<8xf32>
    %72 = vector.shape_cast %71 : vector<8xf32> to vector<8x1xf32>
    %73 = vector.broadcast %72 : vector<8x1xf32> to vector<8x8xf32>
    %74 = arith.divf %70, %73 : vector<8x8xf32>
    %75 = vector.extract_strided_slice %15 {offsets = [0, 16], sizes = [8, 8], strides = [1, 1]} : vector<16x32xf32> to vector<8x8xf32>
    %cst_38 = arith.constant dense<0.000000e+00> : vector<8x8xf32>
    %76 = tpu.matmul %74, %75, %cst_38 {dimension_numbers = #tpu.dot_dimension_numbers<[1], [0], [0], [1], [0, 0, 1, 1], [], []>} : vector<8x8xf32>, vector<8x8xf32>, vector<8x8xf32> -> vector<8x8xf32>
    %c16 = arith.constant 16 : index
    %c0_39 = arith.constant 0 : index
    %77 = vector.load %arg7[%c16, %c0_39] : memref<32x32xf32, #tpu.memory_space<vmem>>, vector<8x32xf32>
    %cst_40 = arith.constant dense<0.000000e+00> : vector<8x32xf32>
    %78 = tpu.matmul %76, %77, %cst_40 {dimension_numbers = #tpu.dot_dimension_numbers<[1], [0], [0], [1], [0, 0, 1, 1], [], []>} : vector<8x8xf32>, vector<8x32xf32>, vector<8x32xf32> -> vector<8x32xf32>
    %79 = arith.addf %61, %78 : vector<8x32xf32>
    %80 = vector.extract_strided_slice %7 {offsets = [0, 24], sizes = [8, 8], strides = [1, 1]} : vector<16x32xf32> to vector<8x8xf32>
    %81 = vector.extract_strided_slice %14 {offsets = [0, 24], sizes = [8, 8], strides = [1, 1]} : vector<16x32xf32> to vector<8x8xf32>
    %cst_41 = arith.constant dense<0.000000e+00> : vector<8x8xf32>
    %82 = tpu.matmul %80, %81, %cst_41 {dimension_numbers = #tpu.dot_dimension_numbers<[1], [1], [0], [0], [0, 0, 1, 0], [], []>} : vector<8x8xf32>, vector<8x8xf32>, vector<8x8xf32> -> vector<8x8xf32>
    %83 = arith.addf %82, %21 : vector<8x8xf32>
    %cst_42 = arith.constant dense<0xFF800000> : vector<8xf32>
    %84 = vector.multi_reduction <maximumf>, %83, %cst_42 [1] : vector<8x8xf32> to vector<8xf32>
    %85 = vector.shape_cast %84 : vector<8xf32> to vector<8x1xf32>
    %86 = vector.broadcast %85 : vector<8x1xf32> to vector<8x8xf32>
    %87 = arith.subf %83, %86 : vector<8x8xf32>
    %88 = math.exp %87 : vector<8x8xf32>
    %cst_43 = arith.constant dense<0.000000e+00> : vector<8xf32>
    %89 = vector.multi_reduction <add>, %88, %cst_43 [1] : vector<8x8xf32> to vector<8xf32>
    %90 = vector.shape_cast %89 : vector<8xf32> to vector<8x1xf32>
    %91 = vector.broadcast %90 : vector<8x1xf32> to vector<8x8xf32>
    %92 = arith.divf %88, %91 : vector<8x8xf32>
    %93 = vector.extract_strided_slice %15 {offsets = [0, 24], sizes = [8, 8], strides = [1, 1]} : vector<16x32xf32> to vector<8x8xf32>
    %cst_44 = arith.constant dense<0.000000e+00> : vector<8x8xf32>
    %94 = tpu.matmul %92, %93, %cst_44 {dimension_numbers = #tpu.dot_dimension_numbers<[1], [0], [0], [1], [0, 0, 1, 1], [], []>} : vector<8x8xf32>, vector<8x8xf32>, vector<8x8xf32> -> vector<8x8xf32>
    %c24 = arith.constant 24 : index
    %c0_45 = arith.constant 0 : index
    %95 = vector.load %arg7[%c24, %c0_45] : memref<32x32xf32, #tpu.memory_space<vmem>>, vector<8x32xf32>
    %cst_46 = arith.constant dense<0.000000e+00> : vector<8x32xf32>
    %96 = tpu.matmul %94, %95, %cst_46 {dimension_numbers = #tpu.dot_dimension_numbers<[1], [0], [0], [1], [0, 0, 1, 1], [], []>} : vector<8x8xf32>, vector<8x32xf32>, vector<8x32xf32> -> vector<8x32xf32>
    %97 = arith.addf %79, %96 : vector<8x32xf32>
    %98 = vector.extract_strided_slice %0 {offsets = [0, 0], sizes = [8, 32], strides = [1, 1]} : vector<16x32xf32> to vector<8x32xf32>
    %99 = arith.addf %98, %97 : vector<8x32xf32>
    %100 = vector.broadcast %24 : vector<1x32xf32> to vector<8x32xf32>
    %101 = arith.addf %99, %100 : vector<8x32xf32>
    %cst_47 = arith.constant dense<0.000000e+00> : vector<8xf32>
    %102 = vector.multi_reduction <add>, %101, %cst_47 [1] : vector<8x32xf32> to vector<8xf32>
    %103 = vector.shape_cast %102 : vector<8xf32> to vector<8x1xf32>
    %cst_48 = arith.constant 3.200000e+01 : f32
    %104 = vector.broadcast %cst_48 : f32 to vector<8x1xf32>
    %105 = arith.divf %103, %104 : vector<8x1xf32>
    %106 = vector.broadcast %105 : vector<8x1xf32> to vector<8x32xf32>
    %107 = arith.subf %101, %106 : vector<8x32xf32>
    %108 = arith.mulf %107, %107 : vector<8x32xf32>
    %cst_49 = arith.constant dense<0.000000e+00> : vector<8xf32>
    %109 = vector.multi_reduction <add>, %108, %cst_49 [1] : vector<8x32xf32> to vector<8xf32>
    %110 = vector.shape_cast %109 : vector<8xf32> to vector<8x1xf32>
    %cst_50 = arith.constant 3.200000e+01 : f32
    %111 = vector.broadcast %cst_50 : f32 to vector<8x1xf32>
    %112 = arith.divf %110, %111 : vector<8x1xf32>
    %113 = vector.broadcast %105 : vector<8x1xf32> to vector<8x32xf32>
    %114 = arith.subf %101, %113 : vector<8x32xf32>
    %cst_51 = arith.constant 9.99999974E-6 : f32
    %115 = vector.broadcast %cst_51 : f32 to vector<8x1xf32>
    %116 = arith.addf %112, %115 : vector<8x1xf32>
    %117 = math.rsqrt %116 : vector<8x1xf32>
    %118 = vector.broadcast %117 : vector<8x1xf32> to vector<8x32xf32>
    %119 = arith.mulf %114, %118 : vector<8x32xf32>
    %120 = vector.broadcast %22 : vector<1x32xf32> to vector<8x32xf32>
    %121 = arith.mulf %119, %120 : vector<8x32xf32>
    %122 = vector.broadcast %23 : vector<1x32xf32> to vector<8x32xf32>
    %123 = arith.addf %121, %122 : vector<8x32xf32>
    %c0_52 = arith.constant 0 : index
    %c0_53 = arith.constant 0 : index
    %124 = vector.load %arg11[%c0_52, %c0_53] : memref<16x32xf32, #tpu.memory_space<vmem>>, vector<8x32xf32>
    tpu.vector_store %arg11[%c0_52, %c0_53], %123 {strides = array<i32>} : memref<16x32xf32, #tpu.memory_space<vmem>>, vector<8x32xf32>,
    %cst_54 = arith.constant 0.000000e+00 : f32
    %125 = vector.broadcast %cst_54 : f32 to vector<8x32xf32>
    %126 = vector.extract_strided_slice %7 {offsets = [8, 0], sizes = [8, 8], strides = [1, 1]} : vector<16x32xf32> to vector<8x8xf32>
    %127 = vector.extract_strided_slice %14 {offsets = [8, 0], sizes = [8, 8], strides = [1, 1]} : vector<16x32xf32> to vector<8x8xf32>
    %cst_55 = arith.constant dense<0.000000e+00> : vector<8x8xf32>
    %128 = tpu.matmul %126, %127, %cst_55 {dimension_numbers = #tpu.dot_dimension_numbers<[1], [1], [0], [0], [0, 0, 1, 0], [], []>} : vector<8x8xf32>, vector<8x8xf32>, vector<8x8xf32> -> vector<8x8xf32>
    %129 = arith.addf %128, %21 : vector<8x8xf32>
    %cst_56 = arith.constant dense<0xFF800000> : vector<8xf32>
    %130 = vector.multi_reduction <maximumf>, %129, %cst_56 [1] : vector<8x8xf32> to vector<8xf32>
    %131 = vector.shape_cast %130 : vector<8xf32> to vector<8x1xf32>
    %132 = vector.broadcast %131 : vector<8x1xf32> to vector<8x8xf32>
    %133 = arith.subf %129, %132 : vector<8x8xf32>
    %134 = math.exp %133 : vector<8x8xf32>
    %cst_57 = arith.constant dense<0.000000e+00> : vector<8xf32>
    %135 = vector.multi_reduction <add>, %134, %cst_57 [1] : vector<8x8xf32> to vector<8xf32>
    %136 = vector.shape_cast %135 : vector<8xf32> to vector<8x1xf32>
    %137 = vector.broadcast %136 : vector<8x1xf32> to vector<8x8xf32>
    %138 = arith.divf %134, %137 : vector<8x8xf32>
    %139 = vector.extract_strided_slice %15 {offsets = [8, 0], sizes = [8, 8], strides = [1, 1]} : vector<16x32xf32> to vector<8x8xf32>
    %cst_58 = arith.constant dense<0.000000e+00> : vector<8x8xf32>
    %140 = tpu.matmul %138, %139, %cst_58 {dimension_numbers = #tpu.dot_dimension_numbers<[1], [0], [0], [1], [0, 0, 1, 1], [], []>} : vector<8x8xf32>, vector<8x8xf32>, vector<8x8xf32> -> vector<8x8xf32>
    %c0_59 = arith.constant 0 : index
    %c0_60 = arith.constant 0 : index
    %141 = vector.load %arg7[%c0_59, %c0_60] : memref<32x32xf32, #tpu.memory_space<vmem>>, vector<8x32xf32>
    %cst_61 = arith.constant dense<0.000000e+00> : vector<8x32xf32>
    %142 = tpu.matmul %140, %141, %cst_61 {dimension_numbers = #tpu.dot_dimension_numbers<[1], [0], [0], [1], [0, 0, 1, 1], [], []>} : vector<8x8xf32>, vector<8x32xf32>, vector<8x32xf32> -> vector<8x32xf32>
    %143 = arith.addf %125, %142 : vector<8x32xf32>
    %144 = vector.extract_strided_slice %7 {offsets = [8, 8], sizes = [8, 8], strides = [1, 1]} : vector<16x32xf32> to vector<8x8xf32>
    %145 = vector.extract_strided_slice %14 {offsets = [8, 8], sizes = [8, 8], strides = [1, 1]} : vector<16x32xf32> to vector<8x8xf32>
    %cst_62 = arith.constant dense<0.000000e+00> : vector<8x8xf32>
    %146 = tpu.matmul %144, %145, %cst_62 {dimension_numbers = #tpu.dot_dimension_numbers<[1], [1], [0], [0], [0, 0, 1, 0], [], []>} : vector<8x8xf32>, vector<8x8xf32>, vector<8x8xf32> -> vector<8x8xf32>
    %147 = arith.addf %146, %21 : vector<8x8xf32>
    %cst_63 = arith.constant dense<0xFF800000> : vector<8xf32>
    %148 = vector.multi_reduction <maximumf>, %147, %cst_63 [1] : vector<8x8xf32> to vector<8xf32>
    %149 = vector.shape_cast %148 : vector<8xf32> to vector<8x1xf32>
    %150 = vector.broadcast %149 : vector<8x1xf32> to vector<8x8xf32>
    %151 = arith.subf %147, %150 : vector<8x8xf32>
    %152 = math.exp %151 : vector<8x8xf32>
    %cst_64 = arith.constant dense<0.000000e+00> : vector<8xf32>
    %153 = vector.multi_reduction <add>, %152, %cst_64 [1] : vector<8x8xf32> to vector<8xf32>
    %154 = vector.shape_cast %153 : vector<8xf32> to vector<8x1xf32>
    %155 = vector.broadcast %154 : vector<8x1xf32> to vector<8x8xf32>
    %156 = arith.divf %152, %155 : vector<8x8xf32>
    %157 = vector.extract_strided_slice %15 {offsets = [8, 8], sizes = [8, 8], strides = [1, 1]} : vector<16x32xf32> to vector<8x8xf32>
    %cst_65 = arith.constant dense<0.000000e+00> : vector<8x8xf32>
    %158 = tpu.matmul %156, %157, %cst_65 {dimension_numbers = #tpu.dot_dimension_numbers<[1], [0], [0], [1], [0, 0, 1, 1], [], []>} : vector<8x8xf32>, vector<8x8xf32>, vector<8x8xf32> -> vector<8x8xf32>
    %c8_66 = arith.constant 8 : index
    %c0_67 = arith.constant 0 : index
    %159 = vector.load %arg7[%c8_66, %c0_67] : memref<32x32xf32, #tpu.memory_space<vmem>>, vector<8x32xf32>
    %cst_68 = arith.constant dense<0.000000e+00> : vector<8x32xf32>
    %160 = tpu.matmul %158, %159, %cst_68 {dimension_numbers = #tpu.dot_dimension_numbers<[1], [0], [0], [1], [0, 0, 1, 1], [], []>} : vector<8x8xf32>, vector<8x32xf32>, vector<8x32xf32> -> vector<8x32xf32>
    %161 = arith.addf %143, %160 : vector<8x32xf32>
    %162 = vector.extract_strided_slice %7 {offsets = [8, 16], sizes = [8, 8], strides = [1, 1]} : vector<16x32xf32> to vector<8x8xf32>
    %163 = vector.extract_strided_slice %14 {offsets = [8, 16], sizes = [8, 8], strides = [1, 1]} : vector<16x32xf32> to vector<8x8xf32>
    %cst_69 = arith.constant dense<0.000000e+00> : vector<8x8xf32>
    %164 = tpu.matmul %162, %163, %cst_69 {dimension_numbers = #tpu.dot_dimension_numbers<[1], [1], [0], [0], [0, 0, 1, 0], [], []>} : vector<8x8xf32>, vector<8x8xf32>, vector<8x8xf32> -> vector<8x8xf32>
    %165 = arith.addf %164, %21 : vector<8x8xf32>
    %cst_70 = arith.constant dense<0xFF800000> : vector<8xf32>
    %166 = vector.multi_reduction <maximumf>, %165, %cst_70 [1] : vector<8x8xf32> to vector<8xf32>
    %167 = vector.shape_cast %166 : vector<8xf32> to vector<8x1xf32>
    %168 = vector.broadcast %167 : vector<8x1xf32> to vector<8x8xf32>
    %169 = arith.subf %165, %168 : vector<8x8xf32>
    %170 = math.exp %169 : vector<8x8xf32>
    %cst_71 = arith.constant dense<0.000000e+00> : vector<8xf32>
    %171 = vector.multi_reduction <add>, %170, %cst_71 [1] : vector<8x8xf32> to vector<8xf32>
    %172 = vector.shape_cast %171 : vector<8xf32> to vector<8x1xf32>
    %173 = vector.broadcast %172 : vector<8x1xf32> to vector<8x8xf32>
    %174 = arith.divf %170, %173 : vector<8x8xf32>
    %175 = vector.extract_strided_slice %15 {offsets = [8, 16], sizes = [8, 8], strides = [1, 1]} : vector<16x32xf32> to vector<8x8xf32>
    %cst_72 = arith.constant dense<0.000000e+00> : vector<8x8xf32>
    %176 = tpu.matmul %174, %175, %cst_72 {dimension_numbers = #tpu.dot_dimension_numbers<[1], [0], [0], [1], [0, 0, 1, 1], [], []>} : vector<8x8xf32>, vector<8x8xf32>, vector<8x8xf32> -> vector<8x8xf32>
    %c16_73 = arith.constant 16 : index
    %c0_74 = arith.constant 0 : index
    %177 = vector.load %arg7[%c16_73, %c0_74] : memref<32x32xf32, #tpu.memory_space<vmem>>, vector<8x32xf32>
    %cst_75 = arith.constant dense<0.000000e+00> : vector<8x32xf32>
    %178 = tpu.matmul %176, %177, %cst_75 {dimension_numbers = #tpu.dot_dimension_numbers<[1], [0], [0], [1], [0, 0, 1, 1], [], []>} : vector<8x8xf32>, vector<8x32xf32>, vector<8x32xf32> -> vector<8x32xf32>
    %179 = arith.addf %161, %178 : vector<8x32xf32>
    %180 = vector.extract_strided_slice %7 {offsets = [8, 24], sizes = [8, 8], strides = [1, 1]} : vector<16x32xf32> to vector<8x8xf32>
    %181 = vector.extract_strided_slice %14 {offsets = [8, 24], sizes = [8, 8], strides = [1, 1]} : vector<16x32xf32> to vector<8x8xf32>
    %cst_76 = arith.constant dense<0.000000e+00> : vector<8x8xf32>
    %182 = tpu.matmul %180, %181, %cst_76 {dimension_numbers = #tpu.dot_dimension_numbers<[1], [1], [0], [0], [0, 0, 1, 0], [], []>} : vector<8x8xf32>, vector<8x8xf32>, vector<8x8xf32> -> vector<8x8xf32>
    %183 = arith.addf %182, %21 : vector<8x8xf32>
    %cst_77 = arith.constant dense<0xFF800000> : vector<8xf32>
    %184 = vector.multi_reduction <maximumf>, %183, %cst_77 [1] : vector<8x8xf32> to vector<8xf32>
    %185 = vector.shape_cast %184 : vector<8xf32> to vector<8x1xf32>
    %186 = vector.broadcast %185 : vector<8x1xf32> to vector<8x8xf32>
    %187 = arith.subf %183, %186 : vector<8x8xf32>
    %188 = math.exp %187 : vector<8x8xf32>
    %cst_78 = arith.constant dense<0.000000e+00> : vector<8xf32>
    %189 = vector.multi_reduction <add>, %188, %cst_78 [1] : vector<8x8xf32> to vector<8xf32>
    %190 = vector.shape_cast %189 : vector<8xf32> to vector<8x1xf32>
    %191 = vector.broadcast %190 : vector<8x1xf32> to vector<8x8xf32>
    %192 = arith.divf %188, %191 : vector<8x8xf32>
    %193 = vector.extract_strided_slice %15 {offsets = [8, 24], sizes = [8, 8], strides = [1, 1]} : vector<16x32xf32> to vector<8x8xf32>
    %cst_79 = arith.constant dense<0.000000e+00> : vector<8x8xf32>
    %194 = tpu.matmul %192, %193, %cst_79 {dimension_numbers = #tpu.dot_dimension_numbers<[1], [0], [0], [1], [0, 0, 1, 1], [], []>} : vector<8x8xf32>, vector<8x8xf32>, vector<8x8xf32> -> vector<8x8xf32>
    %c24_80 = arith.constant 24 : index
    %c0_81 = arith.constant 0 : index
    %195 = vector.load %arg7[%c24_80, %c0_81] : memref<32x32xf32, #tpu.memory_space<vmem>>, vector<8x32xf32>
    %cst_82 = arith.constant dense<0.000000e+00> : vector<8x32xf32>
    %196 = tpu.matmul %194, %195, %cst_82 {dimension_numbers = #tpu.dot_dimension_numbers<[1], [0], [0], [1], [0, 0, 1, 1], [], []>} : vector<8x8xf32>, vector<8x32xf32>, vector<8x32xf32> -> vector<8x32xf32>
    %197 = arith.addf %179, %196 : vector<8x32xf32>
    %198 = vector.extract_strided_slice %0 {offsets = [8, 0], sizes = [8, 32], strides = [1, 1]} : vector<16x32xf32> to vector<8x32xf32>
    %199 = arith.addf %198, %197 : vector<8x32xf32>
    %200 = vector.broadcast %24 : vector<1x32xf32> to vector<8x32xf32>
    %201 = arith.addf %199, %200 : vector<8x32xf32>
    %cst_83 = arith.constant dense<0.000000e+00> : vector<8xf32>
    %202 = vector.multi_reduction <add>, %201, %cst_83 [1] : vector<8x32xf32> to vector<8xf32>
    %203 = vector.shape_cast %202 : vector<8xf32> to vector<8x1xf32>
    %cst_84 = arith.constant 3.200000e+01 : f32
    %204 = vector.broadcast %cst_84 : f32 to vector<8x1xf32>
    %205 = arith.divf %203, %204 : vector<8x1xf32>
    %206 = vector.broadcast %205 : vector<8x1xf32> to vector<8x32xf32>
    %207 = arith.subf %201, %206 : vector<8x32xf32>
    %208 = arith.mulf %207, %207 : vector<8x32xf32>
    %cst_85 = arith.constant dense<0.000000e+00> : vector<8xf32>
    %209 = vector.multi_reduction <add>, %208, %cst_85 [1] : vector<8x32xf32> to vector<8xf32>
    %210 = vector.shape_cast %209 : vector<8xf32> to vector<8x1xf32>
    %cst_86 = arith.constant 3.200000e+01 : f32
    %211 = vector.broadcast %cst_86 : f32 to vector<8x1xf32>
    %212 = arith.divf %210, %211 : vector<8x1xf32>
    %213 = vector.broadcast %205 : vector<8x1xf32> to vector<8x32xf32>
    %214 = arith.subf %201, %213 : vector<8x32xf32>
    %cst_87 = arith.constant 9.99999974E-6 : f32
    %215 = vector.broadcast %cst_87 : f32 to vector<8x1xf32>
    %216 = arith.addf %212, %215 : vector<8x1xf32>
    %217 = math.rsqrt %216 : vector<8x1xf32>
    %218 = vector.broadcast %217 : vector<8x1xf32> to vector<8x32xf32>
    %219 = arith.mulf %214, %218 : vector<8x32xf32>
    %220 = vector.broadcast %22 : vector<1x32xf32> to vector<8x32xf32>
    %221 = arith.mulf %219, %220 : vector<8x32xf32>
    %222 = vector.broadcast %23 : vector<1x32xf32> to vector<8x32xf32>
    %223 = arith.addf %221, %222 : vector<8x32xf32>
    %c8_88 = arith.constant 8 : index
    %c0_89 = arith.constant 0 : index
    %224 = vector.load %arg11[%c8_88, %c0_89] : memref<16x32xf32, #tpu.memory_space<vmem>>, vector<8x32xf32>
    tpu.vector_store %arg11[%c8_88, %c0_89], %223 {strides = array<i32>} : memref<16x32xf32, #tpu.memory_space<vmem>>, vector<8x32xf32>,
    return
  }
  func.func @transform_0(%arg0: i32) -> (i32, i32) {
    %c0_i32 = arith.constant 0 : i32
    %c0_i32_0 = arith.constant 0 : i32
    %c0_i32_1 = arith.constant 0 : i32
    return %c0_i32, %c0_i32_0 : i32, i32
  }
  func.func @transform_1(%arg0: i32) -> (i32, i32) {
    %c0_i32 = arith.constant 0 : i32
    %c0_i32_0 = arith.constant 0 : i32
    %c0_i32_1 = arith.constant 0 : i32
    return %c0_i32, %c0_i32_0 : i32, i32
  }
  func.func @transform_2(%arg0: i32) -> (i32, i32) {
    %c0_i32 = arith.constant 0 : i32
    %c0_i32_0 = arith.constant 0 : i32
    %c0_i32_1 = arith.constant 0 : i32
    return %c0_i32, %c0_i32_0 : i32, i32
  }
  func.func @transform_3(%arg0: i32) -> (i32, i32) {
    %c0_i32 = arith.constant 0 : i32
    %c0_i32_0 = arith.constant 0 : i32
    %c0_i32_1 = arith.constant 0 : i32
    return %c0_i32, %c0_i32_0 : i32, i32
  }
  func.func @transform_4(%arg0: i32) -> (i32, i32) {
    %c0_i32 = arith.constant 0 : i32
    %c0_i32_0 = arith.constant 0 : i32
    %c0_i32_1 = arith.constant 0 : i32
    return %c0_i32, %c0_i32_0 : i32, i32
  }
  func.func @transform_5(%arg0: i32) -> (i32, i32) {
    %c0_i32 = arith.constant 0 : i32
    %c0_i32_0 = arith.constant 0 : i32
    %c0_i32_1 = arith.constant 0 : i32
    return %c0_i32, %c0_i32_0 : i32, i32
  }
  func.func @transform_6(%arg0: i32) -> (i32, i32) {
    %c0_i32 = arith.constant 0 : i32
    %c0_i32_0 = arith.constant 0 : i32
    %c0_i32_1 = arith.constant 0 : i32
    return %c0_i32, %c0_i32_0 : i32, i32
  }
  func.func @transform_7(%arg0: i32) -> (i32, i32) {
    %c0_i32 = arith.constant 0 : i32
    %c0_i32_0 = arith.constant 0 : i32
    %c0_i32_1 = arith.constant 0 : i32
    return %c0_i32, %c0_i32_0 : i32, i32
  }
  func.func @transform_8(%arg0: i32) -> (i32, i32) {
    %c0_i32 = arith.constant 0 : i32
    %c0_i32_0 = arith.constant 0 : i32
    %c0_i32_1 = arith.constant 0 : i32
    return %c0_i32, %c0_i32_0 : i32, i32
  }
  func.func @transform_9(%arg0: i32) -> (i32, i32) {
    %c0_i32 = arith.constant 0 : i32
    %c0_i32_0 = arith.constant 0 : i32
    %c0_i32_1 = arith.constant 0 : i32
    return %c0_i32, %c0_i32_0 : i32, i32
  }
  func.func @transform_10(%arg0: i32) -> (i32, i32) {
    %c0_i32 = arith.constant 0 : i32
    %c0_i32_0 = arith.constant 0 : i32
    %c0_i32_1 = arith.constant 0 : i32
    return %c0_i32, %c0_i32_0 : i32, i32
  }
}

module attributes {stable_mosaic.version = 11 : i64} {
  func.func @_ffn_sublayer_kernel(%arg0: i32, %arg1: memref<16x32xf32, #tpu.memory_space<vmem>>, %arg2: memref<32x64xf32, #tpu.memory_space<vmem>>, %arg3: memref<1x64xf32, #tpu.memory_space<vmem>>, %arg4: memref<64x32xf32, #tpu.memory_space<vmem>>, %arg5: memref<1x32xf32, #tpu.memory_space<vmem>>, %arg6: memref<1x32xf32, #tpu.memory_space<vmem>>, %arg7: memref<1x32xf32, #tpu.memory_space<vmem>>, %arg8: memref<16x32xf32, #tpu.memory_space<vmem>>) attributes {dimension_semantics = [#tpu.dimension_semantics<arbitrary>], iteration_bounds = array<i64: 1>, scalar_prefetch = 0 : i64, scratch_operands = 0 : i64, tpu.core_type = #tpu.core_type<tc>, window_params = [{pipeline_mode = #tpu.pipeline_mode<synchronous>, transform_indices = @transform_0, window_bounds = array<i64: 16, 32>}, {pipeline_mode = #tpu.pipeline_mode<synchronous>, transform_indices = @transform_1, window_bounds = array<i64: 32, 64>}, {pipeline_mode = #tpu.pipeline_mode<synchronous>, transform_indices = @transform_2, window_bounds = array<i64: 1, 64>}, {pipeline_mode = #tpu.pipeline_mode<synchronous>, transform_indices = @transform_3, window_bounds = array<i64: 64, 32>}, {pipeline_mode = #tpu.pipeline_mode<synchronous>, transform_indices = @transform_4, window_bounds = array<i64: 1, 32>}, {pipeline_mode = #tpu.pipeline_mode<synchronous>, transform_indices = @transform_5, window_bounds = array<i64: 1, 32>}, {pipeline_mode = #tpu.pipeline_mode<synchronous>, transform_indices = @transform_6, window_bounds = array<i64: 1, 32>}, {pipeline_mode = #tpu.pipeline_mode<synchronous>, transform_indices = @transform_7, window_bounds = array<i64: 16, 32>}]} {
    %c0 = arith.constant 0 : index
    %c0_0 = arith.constant 0 : index
    %0 = vector.load %arg1[%c0, %c0_0] : memref<16x32xf32, #tpu.memory_space<vmem>>, vector<16x32xf32>
    %c0_1 = arith.constant 0 : index
    %c0_2 = arith.constant 0 : index
    %1 = vector.load %arg2[%c0_1, %c0_2] : memref<32x64xf32, #tpu.memory_space<vmem>>, vector<32x64xf32>
    %cst = arith.constant dense<0.000000e+00> : vector<16x64xf32>
    %2 = tpu.matmul %0, %1, %cst {dimension_numbers = #tpu.dot_dimension_numbers<[1], [0], [0], [1], [0, 0, 1, 1], [], []>} : vector<16x32xf32>, vector<32x64xf32>, vector<16x64xf32> -> vector<16x64xf32>
    %c0_3 = arith.constant 0 : index
    %c0_4 = arith.constant 0 : index
    %3 = vector.load %arg3[%c0_3, %c0_4] : memref<1x64xf32, #tpu.memory_space<vmem>>, vector<1x64xf32>
    %4 = vector.broadcast %3 : vector<1x64xf32> to vector<16x64xf32>
    %5 = arith.addf %2, %4 : vector<16x64xf32>
    %cst_5 = arith.constant 0.000000e+00 : f32
    %6 = vector.broadcast %cst_5 : f32 to vector<16x64xf32>
    %7 = arith.maximumf %5, %6 : vector<16x64xf32>
    %c0_6 = arith.constant 0 : index
    %c0_7 = arith.constant 0 : index
    %8 = vector.load %arg4[%c0_6, %c0_7] : memref<64x32xf32, #tpu.memory_space<vmem>>, vector<64x32xf32>
    %cst_8 = arith.constant dense<0.000000e+00> : vector<16x32xf32>
    %9 = tpu.matmul %7, %8, %cst_8 {dimension_numbers = #tpu.dot_dimension_numbers<[1], [0], [0], [1], [0, 0, 1, 1], [], []>} : vector<16x64xf32>, vector<64x32xf32>, vector<16x32xf32> -> vector<16x32xf32>
    %10 = arith.addf %0, %9 : vector<16x32xf32>
    %c0_9 = arith.constant 0 : index
    %c0_10 = arith.constant 0 : index
    %11 = vector.load %arg5[%c0_9, %c0_10] : memref<1x32xf32, #tpu.memory_space<vmem>>, vector<1x32xf32>
    %12 = vector.broadcast %11 : vector<1x32xf32> to vector<16x32xf32>
    %13 = arith.addf %10, %12 : vector<16x32xf32>
    %cst_11 = arith.constant dense<0.000000e+00> : vector<16xf32>
    %14 = vector.multi_reduction <add>, %13, %cst_11 [1] : vector<16x32xf32> to vector<16xf32>
    %15 = vector.shape_cast %14 : vector<16xf32> to vector<16x1xf32>
    %cst_12 = arith.constant 3.200000e+01 : f32
    %16 = vector.broadcast %cst_12 : f32 to vector<16x1xf32>
    %17 = arith.divf %15, %16 : vector<16x1xf32>
    %18 = vector.broadcast %17 : vector<16x1xf32> to vector<16x32xf32>
    %19 = arith.subf %13, %18 : vector<16x32xf32>
    %20 = arith.mulf %19, %19 : vector<16x32xf32>
    %cst_13 = arith.constant dense<0.000000e+00> : vector<16xf32>
    %21 = vector.multi_reduction <add>, %20, %cst_13 [1] : vector<16x32xf32> to vector<16xf32>
    %22 = vector.shape_cast %21 : vector<16xf32> to vector<16x1xf32>
    %cst_14 = arith.constant 3.200000e+01 : f32
    %23 = vector.broadcast %cst_14 : f32 to vector<16x1xf32>
    %24 = arith.divf %22, %23 : vector<16x1xf32>
    %25 = vector.broadcast %17 : vector<16x1xf32> to vector<16x32xf32>
    %26 = arith.subf %13, %25 : vector<16x32xf32>
    %cst_15 = arith.constant 9.99999974E-6 : f32
    %27 = vector.broadcast %cst_15 : f32 to vector<16x1xf32>
    %28 = arith.addf %24, %27 : vector<16x1xf32>
    %29 = math.rsqrt %28 : vector<16x1xf32>
    %30 = vector.broadcast %29 : vector<16x1xf32> to vector<16x32xf32>
    %31 = arith.mulf %26, %30 : vector<16x32xf32>
    %c0_16 = arith.constant 0 : index
    %c0_17 = arith.constant 0 : index
    %32 = vector.load %arg6[%c0_16, %c0_17] : memref<1x32xf32, #tpu.memory_space<vmem>>, vector<1x32xf32>
    %33 = vector.broadcast %32 : vector<1x32xf32> to vector<16x32xf32>
    %34 = arith.mulf %31, %33 : vector<16x32xf32>
    %c0_18 = arith.constant 0 : index
    %c0_19 = arith.constant 0 : index
    %35 = vector.load %arg7[%c0_18, %c0_19] : memref<1x32xf32, #tpu.memory_space<vmem>>, vector<1x32xf32>
    %36 = vector.broadcast %35 : vector<1x32xf32> to vector<16x32xf32>
    %37 = arith.addf %34, %36 : vector<16x32xf32>
    %c0_20 = arith.constant 0 : index
    %c0_21 = arith.constant 0 : index
    %38 = vector.load %arg8[%c0_20, %c0_21] : memref<16x32xf32, #tpu.memory_space<vmem>>, vector<16x32xf32>
    tpu.vector_store %arg8[%c0_20, %c0_21], %37 {strides = array<i32>} : memref<16x32xf32, #tpu.memory_space<vmem>>, vector<16x32xf32>,
    return
  }
  func.func @transform_0(%arg0: i32) -> (i32, i32) {
    %c0_i32 = arith.constant 0 : i32
    %c0_i32_0 = arith.constant 0 : i32
    %c0_i32_1 = arith.constant 0 : i32
    return %c0_i32, %c0_i32_0 : i32, i32
  }
  func.func @transform_1(%arg0: i32) -> (i32, i32) {
    %c0_i32 = arith.constant 0 : i32
    %c0_i32_0 = arith.constant 0 : i32
    %c0_i32_1 = arith.constant 0 : i32
    return %c0_i32, %c0_i32_0 : i32, i32
  }
  func.func @transform_2(%arg0: i32) -> (i32, i32) {
    %c0_i32 = arith.constant 0 : i32
    %c0_i32_0 = arith.constant 0 : i32
    %c0_i32_1 = arith.constant 0 : i32
    return %c0_i32, %c0_i32_0 : i32, i32
  }
  func.func @transform_3(%arg0: i32) -> (i32, i32) {
    %c0_i32 = arith.constant 0 : i32
    %c0_i32_0 = arith.constant 0 : i32
    %c0_i32_1 = arith.constant 0 : i32
    return %c0_i32, %c0_i32_0 : i32, i32
  }
  func.func @transform_4(%arg0: i32) -> (i32, i32) {
    %c0_i32 = arith.constant 0 : i32
    %c0_i32_0 = arith.constant 0 : i32
    %c0_i32_1 = arith.constant 0 : i32
    return %c0_i32, %c0_i32_0 : i32, i32
  }
  func.func @transform_5(%arg0: i32) -> (i32, i32) {
    %c0_i32 = arith.constant 0 : i32
    %c0_i32_0 = arith.constant 0 : i32
    %c0_i32_1 = arith.constant 0 : i32
    return %c0_i32, %c0_i32_0 : i32, i32
  }
  func.func @transform_6(%arg0: i32) -> (i32, i32) {
    %c0_i32 = arith.constant 0 : i32
    %c0_i32_0 = arith.constant 0 : i32
    %c0_i32_1 = arith.constant 0 : i32
    return %c0_i32, %c0_i32_0 : i32, i32
  }
  func.func @transform_7(%arg0: i32) -> (i32, i32) {
    %c0_i32 = arith.constant 0 : i32
    %c0_i32_0 = arith.constant 0 : i32
    %c0_i32_1 = arith.constant 0 : i32
    return %c0_i32, %c0_i32_0 : i32, i32
  }
}

module attributes {stable_mosaic.version = 11 : i64} {
  func.func @_attn_sublayer_kernel(%arg0: i32, %arg1: memref<16x32xf32, #tpu.memory_space<vmem>>, %arg2: memref<16x32xf32, #tpu.memory_space<vmem>>, %arg3: memref<32x32xf32, #tpu.memory_space<vmem>>, %arg4: memref<1x32xf32, #tpu.memory_space<vmem>>, %arg5: memref<32x64xf32, #tpu.memory_space<vmem>>, %arg6: memref<1x64xf32, #tpu.memory_space<vmem>>, %arg7: memref<32x32xf32, #tpu.memory_space<vmem>>, %arg8: memref<1x32xf32, #tpu.memory_space<vmem>>, %arg9: memref<1x32xf32, #tpu.memory_space<vmem>>, %arg10: memref<1x32xf32, #tpu.memory_space<vmem>>, %arg11: memref<16x32xf32, #tpu.memory_space<vmem>>) attributes {dimension_semantics = [#tpu.dimension_semantics<arbitrary>], iteration_bounds = array<i64: 1>, scalar_prefetch = 0 : i64, scratch_operands = 0 : i64, tpu.core_type = #tpu.core_type<tc>, window_params = [{pipeline_mode = #tpu.pipeline_mode<synchronous>, transform_indices = @transform_0, window_bounds = array<i64: 16, 32>}, {pipeline_mode = #tpu.pipeline_mode<synchronous>, transform_indices = @transform_1, window_bounds = array<i64: 16, 32>}, {pipeline_mode = #tpu.pipeline_mode<synchronous>, transform_indices = @transform_2, window_bounds = array<i64: 32, 32>}, {pipeline_mode = #tpu.pipeline_mode<synchronous>, transform_indices = @transform_3, window_bounds = array<i64: 1, 32>}, {pipeline_mode = #tpu.pipeline_mode<synchronous>, transform_indices = @transform_4, window_bounds = array<i64: 32, 64>}, {pipeline_mode = #tpu.pipeline_mode<synchronous>, transform_indices = @transform_5, window_bounds = array<i64: 1, 64>}, {pipeline_mode = #tpu.pipeline_mode<synchronous>, transform_indices = @transform_6, window_bounds = array<i64: 32, 32>}, {pipeline_mode = #tpu.pipeline_mode<synchronous>, transform_indices = @transform_7, window_bounds = array<i64: 1, 32>}, {pipeline_mode = #tpu.pipeline_mode<synchronous>, transform_indices = @transform_8, window_bounds = array<i64: 1, 32>}, {pipeline_mode = #tpu.pipeline_mode<synchronous>, transform_indices = @transform_9, window_bounds = array<i64: 1, 32>}, {pipeline_mode = #tpu.pipeline_mode<synchronous>, transform_indices = @transform_10, window_bounds = array<i64: 16, 32>}]} {
    %c0 = arith.constant 0 : index
    %c0_0 = arith.constant 0 : index
    %0 = vector.load %arg1[%c0, %c0_0] : memref<16x32xf32, #tpu.memory_space<vmem>>, vector<16x32xf32>
    %c0_1 = arith.constant 0 : index
    %c0_2 = arith.constant 0 : index
    %1 = vector.load %arg3[%c0_1, %c0_2] : memref<32x32xf32, #tpu.memory_space<vmem>>, vector<32x32xf32>
    %cst = arith.constant dense<0.000000e+00> : vector<16x32xf32>
    %2 = tpu.matmul %0, %1, %cst {dimension_numbers = #tpu.dot_dimension_numbers<[1], [0], [0], [1], [0, 0, 1, 1], [], []>} : vector<16x32xf32>, vector<32x32xf32>, vector<16x32xf32> -> vector<16x32xf32>
    %c0_3 = arith.constant 0 : index
    %c0_4 = arith.constant 0 : index
    %3 = vector.load %arg4[%c0_3, %c0_4] : memref<1x32xf32, #tpu.memory_space<vmem>>, vector<1x32xf32>
    %4 = vector.broadcast %3 : vector<1x32xf32> to vector<16x32xf32>
    %5 = arith.addf %2, %4 : vector<16x32xf32>
    %cst_5 = arith.constant 0.353553385 : f32
    %6 = vector.broadcast %cst_5 : f32 to vector<16x32xf32>
    %7 = arith.mulf %5, %6 : vector<16x32xf32>
    %c0_6 = arith.constant 0 : index
    %c0_7 = arith.constant 0 : index
    %8 = vector.load %arg2[%c0_6, %c0_7] : memref<16x32xf32, #tpu.memory_space<vmem>>, vector<16x32xf32>
    %c0_8 = arith.constant 0 : index
    %c0_9 = arith.constant 0 : index
    %9 = vector.load %arg5[%c0_8, %c0_9] : memref<32x64xf32, #tpu.memory_space<vmem>>, vector<32x64xf32>
    %cst_10 = arith.constant dense<0.000000e+00> : vector<16x64xf32>
    %10 = tpu.matmul %8, %9, %cst_10 {dimension_numbers = #tpu.dot_dimension_numbers<[1], [0], [0], [1], [0, 0, 1, 1], [], []>} : vector<16x32xf32>, vector<32x64xf32>, vector<16x64xf32> -> vector<16x64xf32>
    %c0_11 = arith.constant 0 : index
    %c0_12 = arith.constant 0 : index
    %11 = vector.load %arg6[%c0_11, %c0_12] : memref<1x64xf32, #tpu.memory_space<vmem>>, vector<1x64xf32>
    %12 = vector.broadcast %11 : vector<1x64xf32> to vector<16x64xf32>
    %13 = arith.addf %10, %12 : vector<16x64xf32>
    %14 = vector.extract_strided_slice %13 {offsets = [0, 0], sizes = [16, 32], strides = [1, 1]} : vector<16x64xf32> to vector<16x32xf32>
    %15 = vector.extract_strided_slice %13 {offsets = [0, 32], sizes = [16, 32], strides = [1, 1]} : vector<16x64xf32> to vector<16x32xf32>
    %c0_13 = arith.constant 0 : index
    %c0_14 = arith.constant 0 : index
    %16 = vector.load %arg9[%c0_13, %c0_14] : memref<1x32xf32, #tpu.memory_space<vmem>>, vector<1x32xf32>
    %c0_15 = arith.constant 0 : index
    %c0_16 = arith.constant 0 : index
    %17 = vector.load %arg10[%c0_15, %c0_16] : memref<1x32xf32, #tpu.memory_space<vmem>>, vector<1x32xf32>
    %c0_17 = arith.constant 0 : index
    %c0_18 = arith.constant 0 : index
    %18 = vector.load %arg8[%c0_17, %c0_18] : memref<1x32xf32, #tpu.memory_space<vmem>>, vector<1x32xf32>
    %cst_19 = arith.constant 0.000000e+00 : f32
    %19 = vector.broadcast %cst_19 : f32 to vector<8x32xf32>
    %20 = vector.extract_strided_slice %7 {offsets = [0, 0], sizes = [8, 8], strides = [1, 1]} : vector<16x32xf32> to vector<8x8xf32>
    %21 = vector.extract_strided_slice %14 {offsets = [0, 0], sizes = [8, 8], strides = [1, 1]} : vector<16x32xf32> to vector<8x8xf32>
    %cst_20 = arith.constant dense<0.000000e+00> : vector<8x8xf32>
    %22 = tpu.matmul %20, %21, %cst_20 {dimension_numbers = #tpu.dot_dimension_numbers<[1], [1], [0], [0], [0, 0, 1, 0], [], []>} : vector<8x8xf32>, vector<8x8xf32>, vector<8x8xf32> -> vector<8x8xf32>
    %cst_21 = arith.constant dense<0xFF800000> : vector<8xf32>
    %23 = vector.multi_reduction <maximumf>, %22, %cst_21 [1] : vector<8x8xf32> to vector<8xf32>
    %24 = vector.shape_cast %23 : vector<8xf32> to vector<8x1xf32>
    %25 = vector.broadcast %24 : vector<8x1xf32> to vector<8x8xf32>
    %26 = arith.subf %22, %25 : vector<8x8xf32>
    %27 = math.exp %26 : vector<8x8xf32>
    %cst_22 = arith.constant dense<0.000000e+00> : vector<8xf32>
    %28 = vector.multi_reduction <add>, %27, %cst_22 [1] : vector<8x8xf32> to vector<8xf32>
    %29 = vector.shape_cast %28 : vector<8xf32> to vector<8x1xf32>
    %30 = vector.broadcast %29 : vector<8x1xf32> to vector<8x8xf32>
    %31 = arith.divf %27, %30 : vector<8x8xf32>
    %32 = vector.extract_strided_slice %15 {offsets = [0, 0], sizes = [8, 8], strides = [1, 1]} : vector<16x32xf32> to vector<8x8xf32>
    %cst_23 = arith.constant dense<0.000000e+00> : vector<8x8xf32>
    %33 = tpu.matmul %31, %32, %cst_23 {dimension_numbers = #tpu.dot_dimension_numbers<[1], [0], [0], [1], [0, 0, 1, 1], [], []>} : vector<8x8xf32>, vector<8x8xf32>, vector<8x8xf32> -> vector<8x8xf32>
    %c0_24 = arith.constant 0 : index
    %c0_25 = arith.constant 0 : index
    %34 = vector.load %arg7[%c0_24, %c0_25] : memref<32x32xf32, #tpu.memory_space<vmem>>, vector<8x32xf32>
    %cst_26 = arith.constant dense<0.000000e+00> : vector<8x32xf32>
    %35 = tpu.matmul %33, %34, %cst_26 {dimension_numbers = #tpu.dot_dimension_numbers<[1], [0], [0], [1], [0, 0, 1, 1], [], []>} : vector<8x8xf32>, vector<8x32xf32>, vector<8x32xf32> -> vector<8x32xf32>
    %36 = arith.addf %19, %35 : vector<8x32xf32>
    %37 = vector.extract_strided_slice %7 {offsets = [0, 8], sizes = [8, 8], strides = [1, 1]} : vector<16x32xf32> to vector<8x8xf32>
    %38 = vector.extract_strided_slice %14 {offsets = [0, 8], sizes = [8, 8], strides = [1, 1]} : vector<16x32xf32> to vector<8x8xf32>
    %cst_27 = arith.constant dense<0.000000e+00> : vector<8x8xf32>
    %39 = tpu.matmul %37, %38, %cst_27 {dimension_numbers = #tpu.dot_dimension_numbers<[1], [1], [0], [0], [0, 0, 1, 0], [], []>} : vector<8x8xf32>, vector<8x8xf32>, vector<8x8xf32> -> vector<8x8xf32>
    %cst_28 = arith.constant dense<0xFF800000> : vector<8xf32>
    %40 = vector.multi_reduction <maximumf>, %39, %cst_28 [1] : vector<8x8xf32> to vector<8xf32>
    %41 = vector.shape_cast %40 : vector<8xf32> to vector<8x1xf32>
    %42 = vector.broadcast %41 : vector<8x1xf32> to vector<8x8xf32>
    %43 = arith.subf %39, %42 : vector<8x8xf32>
    %44 = math.exp %43 : vector<8x8xf32>
    %cst_29 = arith.constant dense<0.000000e+00> : vector<8xf32>
    %45 = vector.multi_reduction <add>, %44, %cst_29 [1] : vector<8x8xf32> to vector<8xf32>
    %46 = vector.shape_cast %45 : vector<8xf32> to vector<8x1xf32>
    %47 = vector.broadcast %46 : vector<8x1xf32> to vector<8x8xf32>
    %48 = arith.divf %44, %47 : vector<8x8xf32>
    %49 = vector.extract_strided_slice %15 {offsets = [0, 8], sizes = [8, 8], strides = [1, 1]} : vector<16x32xf32> to vector<8x8xf32>
    %cst_30 = arith.constant dense<0.000000e+00> : vector<8x8xf32>
    %50 = tpu.matmul %48, %49, %cst_30 {dimension_numbers = #tpu.dot_dimension_numbers<[1], [0], [0], [1], [0, 0, 1, 1], [], []>} : vector<8x8xf32>, vector<8x8xf32>, vector<8x8xf32> -> vector<8x8xf32>
    %c8 = arith.constant 8 : index
    %c0_31 = arith.constant 0 : index
    %51 = vector.load %arg7[%c8, %c0_31] : memref<32x32xf32, #tpu.memory_space<vmem>>, vector<8x32xf32>
    %cst_32 = arith.constant dense<0.000000e+00> : vector<8x32xf32>
    %52 = tpu.matmul %50, %51, %cst_32 {dimension_numbers = #tpu.dot_dimension_numbers<[1], [0], [0], [1], [0, 0, 1, 1], [], []>} : vector<8x8xf32>, vector<8x32xf32>, vector<8x32xf32> -> vector<8x32xf32>
    %53 = arith.addf %36, %52 : vector<8x32xf32>
    %54 = vector.extract_strided_slice %7 {offsets = [0, 16], sizes = [8, 8], strides = [1, 1]} : vector<16x32xf32> to vector<8x8xf32>
    %55 = vector.extract_strided_slice %14 {offsets = [0, 16], sizes = [8, 8], strides = [1, 1]} : vector<16x32xf32> to vector<8x8xf32>
    %cst_33 = arith.constant dense<0.000000e+00> : vector<8x8xf32>
    %56 = tpu.matmul %54, %55, %cst_33 {dimension_numbers = #tpu.dot_dimension_numbers<[1], [1], [0], [0], [0, 0, 1, 0], [], []>} : vector<8x8xf32>, vector<8x8xf32>, vector<8x8xf32> -> vector<8x8xf32>
    %cst_34 = arith.constant dense<0xFF800000> : vector<8xf32>
    %57 = vector.multi_reduction <maximumf>, %56, %cst_34 [1] : vector<8x8xf32> to vector<8xf32>
    %58 = vector.shape_cast %57 : vector<8xf32> to vector<8x1xf32>
    %59 = vector.broadcast %58 : vector<8x1xf32> to vector<8x8xf32>
    %60 = arith.subf %56, %59 : vector<8x8xf32>
    %61 = math.exp %60 : vector<8x8xf32>
    %cst_35 = arith.constant dense<0.000000e+00> : vector<8xf32>
    %62 = vector.multi_reduction <add>, %61, %cst_35 [1] : vector<8x8xf32> to vector<8xf32>
    %63 = vector.shape_cast %62 : vector<8xf32> to vector<8x1xf32>
    %64 = vector.broadcast %63 : vector<8x1xf32> to vector<8x8xf32>
    %65 = arith.divf %61, %64 : vector<8x8xf32>
    %66 = vector.extract_strided_slice %15 {offsets = [0, 16], sizes = [8, 8], strides = [1, 1]} : vector<16x32xf32> to vector<8x8xf32>
    %cst_36 = arith.constant dense<0.000000e+00> : vector<8x8xf32>
    %67 = tpu.matmul %65, %66, %cst_36 {dimension_numbers = #tpu.dot_dimension_numbers<[1], [0], [0], [1], [0, 0, 1, 1], [], []>} : vector<8x8xf32>, vector<8x8xf32>, vector<8x8xf32> -> vector<8x8xf32>
    %c16 = arith.constant 16 : index
    %c0_37 = arith.constant 0 : index
    %68 = vector.load %arg7[%c16, %c0_37] : memref<32x32xf32, #tpu.memory_space<vmem>>, vector<8x32xf32>
    %cst_38 = arith.constant dense<0.000000e+00> : vector<8x32xf32>
    %69 = tpu.matmul %67, %68, %cst_38 {dimension_numbers = #tpu.dot_dimension_numbers<[1], [0], [0], [1], [0, 0, 1, 1], [], []>} : vector<8x8xf32>, vector<8x32xf32>, vector<8x32xf32> -> vector<8x32xf32>
    %70 = arith.addf %53, %69 : vector<8x32xf32>
    %71 = vector.extract_strided_slice %7 {offsets = [0, 24], sizes = [8, 8], strides = [1, 1]} : vector<16x32xf32> to vector<8x8xf32>
    %72 = vector.extract_strided_slice %14 {offsets = [0, 24], sizes = [8, 8], strides = [1, 1]} : vector<16x32xf32> to vector<8x8xf32>
    %cst_39 = arith.constant dense<0.000000e+00> : vector<8x8xf32>
    %73 = tpu.matmul %71, %72, %cst_39 {dimension_numbers = #tpu.dot_dimension_numbers<[1], [1], [0], [0], [0, 0, 1, 0], [], []>} : vector<8x8xf32>, vector<8x8xf32>, vector<8x8xf32> -> vector<8x8xf32>
    %cst_40 = arith.constant dense<0xFF800000> : vector<8xf32>
    %74 = vector.multi_reduction <maximumf>, %73, %cst_40 [1] : vector<8x8xf32> to vector<8xf32>
    %75 = vector.shape_cast %74 : vector<8xf32> to vector<8x1xf32>
    %76 = vector.broadcast %75 : vector<8x1xf32> to vector<8x8xf32>
    %77 = arith.subf %73, %76 : vector<8x8xf32>
    %78 = math.exp %77 : vector<8x8xf32>
    %cst_41 = arith.constant dense<0.000000e+00> : vector<8xf32>
    %79 = vector.multi_reduction <add>, %78, %cst_41 [1] : vector<8x8xf32> to vector<8xf32>
    %80 = vector.shape_cast %79 : vector<8xf32> to vector<8x1xf32>
    %81 = vector.broadcast %80 : vector<8x1xf32> to vector<8x8xf32>
    %82 = arith.divf %78, %81 : vector<8x8xf32>
    %83 = vector.extract_strided_slice %15 {offsets = [0, 24], sizes = [8, 8], strides = [1, 1]} : vector<16x32xf32> to vector<8x8xf32>
    %cst_42 = arith.constant dense<0.000000e+00> : vector<8x8xf32>
    %84 = tpu.matmul %82, %83, %cst_42 {dimension_numbers = #tpu.dot_dimension_numbers<[1], [0], [0], [1], [0, 0, 1, 1], [], []>} : vector<8x8xf32>, vector<8x8xf32>, vector<8x8xf32> -> vector<8x8xf32>
    %c24 = arith.constant 24 : index
    %c0_43 = arith.constant 0 : index
    %85 = vector.load %arg7[%c24, %c0_43] : memref<32x32xf32, #tpu.memory_space<vmem>>, vector<8x32xf32>
    %cst_44 = arith.constant dense<0.000000e+00> : vector<8x32xf32>
    %86 = tpu.matmul %84, %85, %cst_44 {dimension_numbers = #tpu.dot_dimension_numbers<[1], [0], [0], [1], [0, 0, 1, 1], [], []>} : vector<8x8xf32>, vector<8x32xf32>, vector<8x32xf32> -> vector<8x32xf32>
    %87 = arith.addf %70, %86 : vector<8x32xf32>
    %88 = vector.extract_strided_slice %0 {offsets = [0, 0], sizes = [8, 32], strides = [1, 1]} : vector<16x32xf32> to vector<8x32xf32>
    %89 = arith.addf %88, %87 : vector<8x32xf32>
    %90 = vector.broadcast %18 : vector<1x32xf32> to vector<8x32xf32>
    %91 = arith.addf %89, %90 : vector<8x32xf32>
    %cst_45 = arith.constant dense<0.000000e+00> : vector<8xf32>
    %92 = vector.multi_reduction <add>, %91, %cst_45 [1] : vector<8x32xf32> to vector<8xf32>
    %93 = vector.shape_cast %92 : vector<8xf32> to vector<8x1xf32>
    %cst_46 = arith.constant 3.200000e+01 : f32
    %94 = vector.broadcast %cst_46 : f32 to vector<8x1xf32>
    %95 = arith.divf %93, %94 : vector<8x1xf32>
    %96 = vector.broadcast %95 : vector<8x1xf32> to vector<8x32xf32>
    %97 = arith.subf %91, %96 : vector<8x32xf32>
    %98 = arith.mulf %97, %97 : vector<8x32xf32>
    %cst_47 = arith.constant dense<0.000000e+00> : vector<8xf32>
    %99 = vector.multi_reduction <add>, %98, %cst_47 [1] : vector<8x32xf32> to vector<8xf32>
    %100 = vector.shape_cast %99 : vector<8xf32> to vector<8x1xf32>
    %cst_48 = arith.constant 3.200000e+01 : f32
    %101 = vector.broadcast %cst_48 : f32 to vector<8x1xf32>
    %102 = arith.divf %100, %101 : vector<8x1xf32>
    %103 = vector.broadcast %95 : vector<8x1xf32> to vector<8x32xf32>
    %104 = arith.subf %91, %103 : vector<8x32xf32>
    %cst_49 = arith.constant 9.99999974E-6 : f32
    %105 = vector.broadcast %cst_49 : f32 to vector<8x1xf32>
    %106 = arith.addf %102, %105 : vector<8x1xf32>
    %107 = math.rsqrt %106 : vector<8x1xf32>
    %108 = vector.broadcast %107 : vector<8x1xf32> to vector<8x32xf32>
    %109 = arith.mulf %104, %108 : vector<8x32xf32>
    %110 = vector.broadcast %16 : vector<1x32xf32> to vector<8x32xf32>
    %111 = arith.mulf %109, %110 : vector<8x32xf32>
    %112 = vector.broadcast %17 : vector<1x32xf32> to vector<8x32xf32>
    %113 = arith.addf %111, %112 : vector<8x32xf32>
    %c0_50 = arith.constant 0 : index
    %c0_51 = arith.constant 0 : index
    %114 = vector.load %arg11[%c0_50, %c0_51] : memref<16x32xf32, #tpu.memory_space<vmem>>, vector<8x32xf32>
    tpu.vector_store %arg11[%c0_50, %c0_51], %113 {strides = array<i32>} : memref<16x32xf32, #tpu.memory_space<vmem>>, vector<8x32xf32>,
    %cst_52 = arith.constant 0.000000e+00 : f32
    %115 = vector.broadcast %cst_52 : f32 to vector<8x32xf32>
    %116 = vector.extract_strided_slice %7 {offsets = [8, 0], sizes = [8, 8], strides = [1, 1]} : vector<16x32xf32> to vector<8x8xf32>
    %117 = vector.extract_strided_slice %14 {offsets = [8, 0], sizes = [8, 8], strides = [1, 1]} : vector<16x32xf32> to vector<8x8xf32>
    %cst_53 = arith.constant dense<0.000000e+00> : vector<8x8xf32>
    %118 = tpu.matmul %116, %117, %cst_53 {dimension_numbers = #tpu.dot_dimension_numbers<[1], [1], [0], [0], [0, 0, 1, 0], [], []>} : vector<8x8xf32>, vector<8x8xf32>, vector<8x8xf32> -> vector<8x8xf32>
    %cst_54 = arith.constant dense<0xFF800000> : vector<8xf32>
    %119 = vector.multi_reduction <maximumf>, %118, %cst_54 [1] : vector<8x8xf32> to vector<8xf32>
    %120 = vector.shape_cast %119 : vector<8xf32> to vector<8x1xf32>
    %121 = vector.broadcast %120 : vector<8x1xf32> to vector<8x8xf32>
    %122 = arith.subf %118, %121 : vector<8x8xf32>
    %123 = math.exp %122 : vector<8x8xf32>
    %cst_55 = arith.constant dense<0.000000e+00> : vector<8xf32>
    %124 = vector.multi_reduction <add>, %123, %cst_55 [1] : vector<8x8xf32> to vector<8xf32>
    %125 = vector.shape_cast %124 : vector<8xf32> to vector<8x1xf32>
    %126 = vector.broadcast %125 : vector<8x1xf32> to vector<8x8xf32>
    %127 = arith.divf %123, %126 : vector<8x8xf32>
    %128 = vector.extract_strided_slice %15 {offsets = [8, 0], sizes = [8, 8], strides = [1, 1]} : vector<16x32xf32> to vector<8x8xf32>
    %cst_56 = arith.constant dense<0.000000e+00> : vector<8x8xf32>
    %129 = tpu.matmul %127, %128, %cst_56 {dimension_numbers = #tpu.dot_dimension_numbers<[1], [0], [0], [1], [0, 0, 1, 1], [], []>} : vector<8x8xf32>, vector<8x8xf32>, vector<8x8xf32> -> vector<8x8xf32>
    %c0_57 = arith.constant 0 : index
    %c0_58 = arith.constant 0 : index
    %130 = vector.load %arg7[%c0_57, %c0_58] : memref<32x32xf32, #tpu.memory_space<vmem>>, vector<8x32xf32>
    %cst_59 = arith.constant dense<0.000000e+00> : vector<8x32xf32>
    %131 = tpu.matmul %129, %130, %cst_59 {dimension_numbers = #tpu.dot_dimension_numbers<[1], [0], [0], [1], [0, 0, 1, 1], [], []>} : vector<8x8xf32>, vector<8x32xf32>, vector<8x32xf32> -> vector<8x32xf32>
    %132 = arith.addf %115, %131 : vector<8x32xf32>
    %133 = vector.extract_strided_slice %7 {offsets = [8, 8], sizes = [8, 8], strides = [1, 1]} : vector<16x32xf32> to vector<8x8xf32>
    %134 = vector.extract_strided_slice %14 {offsets = [8, 8], sizes = [8, 8], strides = [1, 1]} : vector<16x32xf32> to vector<8x8xf32>
    %cst_60 = arith.constant dense<0.000000e+00> : vector<8x8xf32>
    %135 = tpu.matmul %133, %134, %cst_60 {dimension_numbers = #tpu.dot_dimension_numbers<[1], [1], [0], [0], [0, 0, 1, 0], [], []>} : vector<8x8xf32>, vector<8x8xf32>, vector<8x8xf32> -> vector<8x8xf32>
    %cst_61 = arith.constant dense<0xFF800000> : vector<8xf32>
    %136 = vector.multi_reduction <maximumf>, %135, %cst_61 [1] : vector<8x8xf32> to vector<8xf32>
    %137 = vector.shape_cast %136 : vector<8xf32> to vector<8x1xf32>
    %138 = vector.broadcast %137 : vector<8x1xf32> to vector<8x8xf32>
    %139 = arith.subf %135, %138 : vector<8x8xf32>
    %140 = math.exp %139 : vector<8x8xf32>
    %cst_62 = arith.constant dense<0.000000e+00> : vector<8xf32>
    %141 = vector.multi_reduction <add>, %140, %cst_62 [1] : vector<8x8xf32> to vector<8xf32>
    %142 = vector.shape_cast %141 : vector<8xf32> to vector<8x1xf32>
    %143 = vector.broadcast %142 : vector<8x1xf32> to vector<8x8xf32>
    %144 = arith.divf %140, %143 : vector<8x8xf32>
    %145 = vector.extract_strided_slice %15 {offsets = [8, 8], sizes = [8, 8], strides = [1, 1]} : vector<16x32xf32> to vector<8x8xf32>
    %cst_63 = arith.constant dense<0.000000e+00> : vector<8x8xf32>
    %146 = tpu.matmul %144, %145, %cst_63 {dimension_numbers = #tpu.dot_dimension_numbers<[1], [0], [0], [1], [0, 0, 1, 1], [], []>} : vector<8x8xf32>, vector<8x8xf32>, vector<8x8xf32> -> vector<8x8xf32>
    %c8_64 = arith.constant 8 : index
    %c0_65 = arith.constant 0 : index
    %147 = vector.load %arg7[%c8_64, %c0_65] : memref<32x32xf32, #tpu.memory_space<vmem>>, vector<8x32xf32>
    %cst_66 = arith.constant dense<0.000000e+00> : vector<8x32xf32>
    %148 = tpu.matmul %146, %147, %cst_66 {dimension_numbers = #tpu.dot_dimension_numbers<[1], [0], [0], [1], [0, 0, 1, 1], [], []>} : vector<8x8xf32>, vector<8x32xf32>, vector<8x32xf32> -> vector<8x32xf32>
    %149 = arith.addf %132, %148 : vector<8x32xf32>
    %150 = vector.extract_strided_slice %7 {offsets = [8, 16], sizes = [8, 8], strides = [1, 1]} : vector<16x32xf32> to vector<8x8xf32>
    %151 = vector.extract_strided_slice %14 {offsets = [8, 16], sizes = [8, 8], strides = [1, 1]} : vector<16x32xf32> to vector<8x8xf32>
    %cst_67 = arith.constant dense<0.000000e+00> : vector<8x8xf32>
    %152 = tpu.matmul %150, %151, %cst_67 {dimension_numbers = #tpu.dot_dimension_numbers<[1], [1], [0], [0], [0, 0, 1, 0], [], []>} : vector<8x8xf32>, vector<8x8xf32>, vector<8x8xf32> -> vector<8x8xf32>
    %cst_68 = arith.constant dense<0xFF800000> : vector<8xf32>
    %153 = vector.multi_reduction <maximumf>, %152, %cst_68 [1] : vector<8x8xf32> to vector<8xf32>
    %154 = vector.shape_cast %153 : vector<8xf32> to vector<8x1xf32>
    %155 = vector.broadcast %154 : vector<8x1xf32> to vector<8x8xf32>
    %156 = arith.subf %152, %155 : vector<8x8xf32>
    %157 = math.exp %156 : vector<8x8xf32>
    %cst_69 = arith.constant dense<0.000000e+00> : vector<8xf32>
    %158 = vector.multi_reduction <add>, %157, %cst_69 [1] : vector<8x8xf32> to vector<8xf32>
    %159 = vector.shape_cast %158 : vector<8xf32> to vector<8x1xf32>
    %160 = vector.broadcast %159 : vector<8x1xf32> to vector<8x8xf32>
    %161 = arith.divf %157, %160 : vector<8x8xf32>
    %162 = vector.extract_strided_slice %15 {offsets = [8, 16], sizes = [8, 8], strides = [1, 1]} : vector<16x32xf32> to vector<8x8xf32>
    %cst_70 = arith.constant dense<0.000000e+00> : vector<8x8xf32>
    %163 = tpu.matmul %161, %162, %cst_70 {dimension_numbers = #tpu.dot_dimension_numbers<[1], [0], [0], [1], [0, 0, 1, 1], [], []>} : vector<8x8xf32>, vector<8x8xf32>, vector<8x8xf32> -> vector<8x8xf32>
    %c16_71 = arith.constant 16 : index
    %c0_72 = arith.constant 0 : index
    %164 = vector.load %arg7[%c16_71, %c0_72] : memref<32x32xf32, #tpu.memory_space<vmem>>, vector<8x32xf32>
    %cst_73 = arith.constant dense<0.000000e+00> : vector<8x32xf32>
    %165 = tpu.matmul %163, %164, %cst_73 {dimension_numbers = #tpu.dot_dimension_numbers<[1], [0], [0], [1], [0, 0, 1, 1], [], []>} : vector<8x8xf32>, vector<8x32xf32>, vector<8x32xf32> -> vector<8x32xf32>
    %166 = arith.addf %149, %165 : vector<8x32xf32>
    %167 = vector.extract_strided_slice %7 {offsets = [8, 24], sizes = [8, 8], strides = [1, 1]} : vector<16x32xf32> to vector<8x8xf32>
    %168 = vector.extract_strided_slice %14 {offsets = [8, 24], sizes = [8, 8], strides = [1, 1]} : vector<16x32xf32> to vector<8x8xf32>
    %cst_74 = arith.constant dense<0.000000e+00> : vector<8x8xf32>
    %169 = tpu.matmul %167, %168, %cst_74 {dimension_numbers = #tpu.dot_dimension_numbers<[1], [1], [0], [0], [0, 0, 1, 0], [], []>} : vector<8x8xf32>, vector<8x8xf32>, vector<8x8xf32> -> vector<8x8xf32>
    %cst_75 = arith.constant dense<0xFF800000> : vector<8xf32>
    %170 = vector.multi_reduction <maximumf>, %169, %cst_75 [1] : vector<8x8xf32> to vector<8xf32>
    %171 = vector.shape_cast %170 : vector<8xf32> to vector<8x1xf32>
    %172 = vector.broadcast %171 : vector<8x1xf32> to vector<8x8xf32>
    %173 = arith.subf %169, %172 : vector<8x8xf32>
    %174 = math.exp %173 : vector<8x8xf32>
    %cst_76 = arith.constant dense<0.000000e+00> : vector<8xf32>
    %175 = vector.multi_reduction <add>, %174, %cst_76 [1] : vector<8x8xf32> to vector<8xf32>
    %176 = vector.shape_cast %175 : vector<8xf32> to vector<8x1xf32>
    %177 = vector.broadcast %176 : vector<8x1xf32> to vector<8x8xf32>
    %178 = arith.divf %174, %177 : vector<8x8xf32>
    %179 = vector.extract_strided_slice %15 {offsets = [8, 24], sizes = [8, 8], strides = [1, 1]} : vector<16x32xf32> to vector<8x8xf32>
    %cst_77 = arith.constant dense<0.000000e+00> : vector<8x8xf32>
    %180 = tpu.matmul %178, %179, %cst_77 {dimension_numbers = #tpu.dot_dimension_numbers<[1], [0], [0], [1], [0, 0, 1, 1], [], []>} : vector<8x8xf32>, vector<8x8xf32>, vector<8x8xf32> -> vector<8x8xf32>
    %c24_78 = arith.constant 24 : index
    %c0_79 = arith.constant 0 : index
    %181 = vector.load %arg7[%c24_78, %c0_79] : memref<32x32xf32, #tpu.memory_space<vmem>>, vector<8x32xf32>
    %cst_80 = arith.constant dense<0.000000e+00> : vector<8x32xf32>
    %182 = tpu.matmul %180, %181, %cst_80 {dimension_numbers = #tpu.dot_dimension_numbers<[1], [0], [0], [1], [0, 0, 1, 1], [], []>} : vector<8x8xf32>, vector<8x32xf32>, vector<8x32xf32> -> vector<8x32xf32>
    %183 = arith.addf %166, %182 : vector<8x32xf32>
    %184 = vector.extract_strided_slice %0 {offsets = [8, 0], sizes = [8, 32], strides = [1, 1]} : vector<16x32xf32> to vector<8x32xf32>
    %185 = arith.addf %184, %183 : vector<8x32xf32>
    %186 = vector.broadcast %18 : vector<1x32xf32> to vector<8x32xf32>
    %187 = arith.addf %185, %186 : vector<8x32xf32>
    %cst_81 = arith.constant dense<0.000000e+00> : vector<8xf32>
    %188 = vector.multi_reduction <add>, %187, %cst_81 [1] : vector<8x32xf32> to vector<8xf32>
    %189 = vector.shape_cast %188 : vector<8xf32> to vector<8x1xf32>
    %cst_82 = arith.constant 3.200000e+01 : f32
    %190 = vector.broadcast %cst_82 : f32 to vector<8x1xf32>
    %191 = arith.divf %189, %190 : vector<8x1xf32>
    %192 = vector.broadcast %191 : vector<8x1xf32> to vector<8x32xf32>
    %193 = arith.subf %187, %192 : vector<8x32xf32>
    %194 = arith.mulf %193, %193 : vector<8x32xf32>
    %cst_83 = arith.constant dense<0.000000e+00> : vector<8xf32>
    %195 = vector.multi_reduction <add>, %194, %cst_83 [1] : vector<8x32xf32> to vector<8xf32>
    %196 = vector.shape_cast %195 : vector<8xf32> to vector<8x1xf32>
    %cst_84 = arith.constant 3.200000e+01 : f32
    %197 = vector.broadcast %cst_84 : f32 to vector<8x1xf32>
    %198 = arith.divf %196, %197 : vector<8x1xf32>
    %199 = vector.broadcast %191 : vector<8x1xf32> to vector<8x32xf32>
    %200 = arith.subf %187, %199 : vector<8x32xf32>
    %cst_85 = arith.constant 9.99999974E-6 : f32
    %201 = vector.broadcast %cst_85 : f32 to vector<8x1xf32>
    %202 = arith.addf %198, %201 : vector<8x1xf32>
    %203 = math.rsqrt %202 : vector<8x1xf32>
    %204 = vector.broadcast %203 : vector<8x1xf32> to vector<8x32xf32>
    %205 = arith.mulf %200, %204 : vector<8x32xf32>
    %206 = vector.broadcast %16 : vector<1x32xf32> to vector<8x32xf32>
    %207 = arith.mulf %205, %206 : vector<8x32xf32>
    %208 = vector.broadcast %17 : vector<1x32xf32> to vector<8x32xf32>
    %209 = arith.addf %207, %208 : vector<8x32xf32>
    %c8_86 = arith.constant 8 : index
    %c0_87 = arith.constant 0 : index
    %210 = vector.load %arg11[%c8_86, %c0_87] : memref<16x32xf32, #tpu.memory_space<vmem>>, vector<8x32xf32>
    tpu.vector_store %arg11[%c8_86, %c0_87], %209 {strides = array<i32>} : memref<16x32xf32, #tpu.memory_space<vmem>>, vector<8x32xf32>,
    return
  }
  func.func @transform_0(%arg0: i32) -> (i32, i32) {
    %c0_i32 = arith.constant 0 : i32
    %c0_i32_0 = arith.constant 0 : i32
    %c0_i32_1 = arith.constant 0 : i32
    return %c0_i32, %c0_i32_0 : i32, i32
  }
  func.func @transform_1(%arg0: i32) -> (i32, i32) {
    %c0_i32 = arith.constant 0 : i32
    %c0_i32_0 = arith.constant 0 : i32
    %c0_i32_1 = arith.constant 0 : i32
    return %c0_i32, %c0_i32_0 : i32, i32
  }
  func.func @transform_2(%arg0: i32) -> (i32, i32) {
    %c0_i32 = arith.constant 0 : i32
    %c0_i32_0 = arith.constant 0 : i32
    %c0_i32_1 = arith.constant 0 : i32
    return %c0_i32, %c0_i32_0 : i32, i32
  }
  func.func @transform_3(%arg0: i32) -> (i32, i32) {
    %c0_i32 = arith.constant 0 : i32
    %c0_i32_0 = arith.constant 0 : i32
    %c0_i32_1 = arith.constant 0 : i32
    return %c0_i32, %c0_i32_0 : i32, i32
  }
  func.func @transform_4(%arg0: i32) -> (i32, i32) {
    %c0_i32 = arith.constant 0 : i32
    %c0_i32_0 = arith.constant 0 : i32
    %c0_i32_1 = arith.constant 0 : i32
    return %c0_i32, %c0_i32_0 : i32, i32
  }
  func.func @transform_5(%arg0: i32) -> (i32, i32) {
    %c0_i32 = arith.constant 0 : i32
    %c0_i32_0 = arith.constant 0 : i32
    %c0_i32_1 = arith.constant 0 : i32
    return %c0_i32, %c0_i32_0 : i32, i32
  }
  func.func @transform_6(%arg0: i32) -> (i32, i32) {
    %c0_i32 = arith.constant 0 : i32
    %c0_i32_0 = arith.constant 0 : i32
    %c0_i32_1 = arith.constant 0 : i32
    return %c0_i32, %c0_i32_0 : i32, i32
  }
  func.func @transform_7(%arg0: i32) -> (i32, i32) {
    %c0_i32 = arith.constant 0 : i32
    %c0_i32_0 = arith.constant 0 : i32
    %c0_i32_1 = arith.constant 0 : i32
    return %c0_i32, %c0_i32_0 : i32, i32
  }
  func.func @transform_8(%arg0: i32) -> (i32, i32) {
    %c0_i32 = arith.constant 0 : i32
    %c0_i32_0 = arith.constant 0 : i32
    %c0_i32_1 = arith.constant 0 : i32
    return %c0_i32, %c0_i32_0 : i32, i32
  }
  func.func @transform_9(%arg0: i32) -> (i32, i32) {
    %c0_i32 = arith.constant 0 : i32
    %c0_i32_0 = arith.constant 0 : i32
    %c0_i32_1 = arith.constant 0 : i32
    return %c0_i32, %c0_i32_0 : i32, i32
  }
  func.func @transform_10(%arg0: i32) -> (i32, i32) {
    %c0_i32 = arith.constant 0 : i32
    %c0_i32_0 = arith.constant 0 : i32
    %c0_i32_1 = arith.constant 0 : i32
    return %c0_i32, %c0_i32_0 : i32, i32
  }
}

module attributes {stable_mosaic.version = 11 : i64} {
  func.func @_linear_kernel(%arg0: i32, %arg1: memref<16x32xf32, #tpu.memory_space<vmem>>, %arg2: memref<32x60xf32, #tpu.memory_space<vmem>>, %arg3: memref<1x60xf32, #tpu.memory_space<vmem>>, %arg4: memref<16x60xf32, #tpu.memory_space<vmem>>) attributes {dimension_semantics = [#tpu.dimension_semantics<parallel>], iteration_bounds = array<i64: 1>, scalar_prefetch = 0 : i64, scratch_operands = 0 : i64, tpu.core_type = #tpu.core_type<tc>, window_params = [{transform_indices = @transform_0, window_bounds = array<i64: 16, 32>}, {pipeline_mode = #tpu.pipeline_mode<synchronous>, transform_indices = @transform_1, window_bounds = array<i64: 32, 60>}, {pipeline_mode = #tpu.pipeline_mode<synchronous>, transform_indices = @transform_2, window_bounds = array<i64: 1, 60>}, {transform_indices = @transform_3, window_bounds = array<i64: 16, 60>}]} {
    %c0 = arith.constant 0 : index
    %c0_0 = arith.constant 0 : index
    %0 = vector.load %arg1[%c0, %c0_0] : memref<16x32xf32, #tpu.memory_space<vmem>>, vector<16x32xf32>
    %c0_1 = arith.constant 0 : index
    %c0_2 = arith.constant 0 : index
    %1 = vector.load %arg2[%c0_1, %c0_2] : memref<32x60xf32, #tpu.memory_space<vmem>>, vector<32x60xf32>
    %cst = arith.constant dense<0.000000e+00> : vector<16x60xf32>
    %2 = tpu.matmul %0, %1, %cst {dimension_numbers = #tpu.dot_dimension_numbers<[1], [0], [0], [1], [0, 0, 1, 1], [], []>} : vector<16x32xf32>, vector<32x60xf32>, vector<16x60xf32> -> vector<16x60xf32>
    %c0_3 = arith.constant 0 : index
    %c0_4 = arith.constant 0 : index
    %3 = vector.load %arg3[%c0_3, %c0_4] : memref<1x60xf32, #tpu.memory_space<vmem>>, vector<1x60xf32>
    %4 = vector.broadcast %3 : vector<1x60xf32> to vector<16x60xf32>
    %5 = arith.addf %2, %4 : vector<16x60xf32>
    %c0_5 = arith.constant 0 : index
    %c0_6 = arith.constant 0 : index
    %6 = vector.load %arg4[%c0_5, %c0_6] : memref<16x60xf32, #tpu.memory_space<vmem>>, vector<16x60xf32>
    tpu.vector_store %arg4[%c0_5, %c0_6], %5 {strides = array<i32>} : memref<16x60xf32, #tpu.memory_space<vmem>>, vector<16x60xf32>,
    return
  }
  func.func @transform_0(%arg0: i32) -> (i32, i32) {
    %c0_i32 = arith.constant 0 : i32
    %c0_i32_0 = arith.constant 0 : i32
    return %arg0, %c0_i32 : i32, i32
  }
  func.func @transform_1(%arg0: i32) -> (i32, i32) {
    %c0_i32 = arith.constant 0 : i32
    %c0_i32_0 = arith.constant 0 : i32
    %c0_i32_1 = arith.constant 0 : i32
    return %c0_i32, %c0_i32_0 : i32, i32
  }
  func.func @transform_2(%arg0: i32) -> (i32, i32) {
    %c0_i32 = arith.constant 0 : i32
    %c0_i32_0 = arith.constant 0 : i32
    %c0_i32_1 = arith.constant 0 : i32
    return %c0_i32, %c0_i32_0 : i32, i32
  }
  func.func @transform_3(%arg0: i32) -> (i32, i32) {
    %c0_i32 = arith.constant 0 : i32
    %c0_i32_0 = arith.constant 0 : i32
    return %arg0, %c0_i32 : i32, i32
  }
}

</mosaic_0001>

<bundles_post_ra>
// kernel: _lambda_.12
= control target key start
LH: loop header
LB: loop body
LE: loop exit
PB: predicated region body
PF: predicated region fallthrough
CT: control target
= control target key end

     0   :  { %vm36_vm0 = vcmask 261120   ;;  %vm76_vm1 = vcmask 523264   ;;  %v210_v30 = vmov 32.0   ;;  %s319_s1 = inlined_call_operand.vmem [shape: f32[32,64], index: 1, kind: input, shape index: {}]   ;;  %s320_s3 = inlined_call_operand.vmem [shape: f32[64,32], index: 3, kind: input, shape index: {}]   ;;  %s321_s0 = inlined_call_operand.vmem [shape: f32[16,32], index: 0, kind: input, shape index: {}]   ;;  %s322_s2 = inlined_call_operand.vmem [shape: f32[1,64], index: 2, kind: input, shape index: {}]   ;;  %s323_s4 = inlined_call_operand.vmem [shape: f32[1,32], index: 4, kind: input, shape index: {}]   ;;  %s324_s5 = inlined_call_operand.vmem [shape: f32[1,32], index: 5, kind: input, shape index: {}]   ;;  %s325_s6 = inlined_call_operand.vmem [shape: f32[1,32], index: 6, kind: input, shape index: {}]   ;;  %s326_s7 = inlined_call_operand.vmem [shape: f32[16,32], index: 7, kind: output, shape index: {}]  }
   0x1   :  { %v31_v0 = vld [vmem:[%s319_s1 + $0x18] sm:$0xff]  ;;  %v30_v1 = vld [vmem:[%s319_s1 + $0x10] sm:$0xff]  ;;  %v29_v2 = vld [vmem:[%s319_s1 + $0x8] sm:$0xff]  ;;  %204 = vrcp.f32 %v210_v30 }
   0x2   :  { %55 = vmatpush.msra.mxu0 %v31_v0  ;;  %187 = vmatpush.msra.mxu3 %v31_v0  ;;  %v75_v3 = vld [vmem:[%s320_s3 + $0x38] sm:$0xff]  ;;  %v74_v4 = vld [vmem:[%s320_s3 + $0x30] sm:$0xff]  ;;  %v28_v5 = vld [vmem:[%s319_s1] sm:$0xff] }
   0x3   :  { %91 = vmatpush.msra.mxu1 %v75_v3  ;;  %191 = vmatpush.msra.mxu2 %v75_v3  ;;  %v26_v6 = vld [vmem:[%s321_s0] sm:$0xff]  ;;  %v27_v7 = vld [vmem:[%s321_s0 + $0x8] sm:$0xff]  ;;  %v71_v10 = vld [vmem:[%s320_s3 + $0x18] sm:$0xff] }
   0x4   :  { %56 = vmatpush.msra.mxu0 %v30_v1  ;;  %188 = vmatpush.msra.mxu3 %v30_v1  ;;  %v73_v8 = vld [vmem:[%s320_s3 + $0x28] sm:$0xff]  ;;  %v72_v9 = vld [vmem:[%s320_s3 + $0x20] sm:$0xff]  ;;  %v70_v11 = vld [vmem:[%s320_s3 + $0x10] sm:$0xff] }
   0x5   :  { %92 = vmatpush.msra.mxu1 %v74_v4  ;;  %192 = vmatpush.msra.mxu2 %v74_v4  ;;  %v69_v12 = vld [vmem:[%s320_s3 + $0x8] sm:$0xff]  ;;  %v68_v13 = vld [vmem:[%s320_s3] sm:$0xff] }
   0x6   :  { %57 = vmatpush.msra.mxu0 %v29_v2  ;;  %189 = vmatpush.msra.mxu3 %v29_v2  ;;  %v200_v14 = vld [vmem:[%s322_s2] ss:$0 sm:$0xff] }
   0x7   :  { %93 = vmatpush.msra.mxu1 %v73_v8  ;;  %193 = vmatpush.msra.mxu2 %v73_v8  ;;  %v201_v21 = vld [vmem:[%s323_s4] ss:$0 sm:$0xff]  ;;  %v205_v31 = vpop.eup %204 }
   0x8   :  { %58 = vmatpush.msra.mxu0 %v28_v5  ;;  %190 = vmatpush.msra.mxu3 %v28_v5  ;;  %v121_v32 = vmul.f32 32.0, %v205_v31  ;;  %vm125_vm2 = vweird.f32 %v205_v31  ;;  %v202_v59 = vld [vmem:[%s324_s5] ss:$0 sm:$0xff] }
   0x9   :  { %183 = vmatmul.msk.f32.vlgmr.msra.gmra.mxu0 %vm36_vm0, %v26_v6  ;;  %184 = vmatmul.msk.f32.vlgmr.msra.gmra.mxu3 %vm36_vm0, %v27_v7  ;;  %v203_v62 = vld [vmem:[%s325_s6] ss:$0 sm:$0xff] }
   0xa   :  { %94 = vmatpush.msra.mxu1 %v72_v9  ;;  %194 = vmatpush.msra.mxu2 %v72_v9  ;;  %v122_v33 = vsub.f32 1.0, %v121_v32 }
   0xc   :  { %95 = vmatpush.msra.mxu1 %v71_v10  ;;  %195 = vmatpush.msra.mxu2 %v71_v10  ;;  %v123_v34 = vmul.f32 %v205_v31, %v122_v33 }
   0xe   :  { %96 = vmatpush.msra.mxu1 %v70_v11  ;;  %196 = vmatpush.msra.mxu2 %v70_v11  ;;  %v124_v35 = vadd.f32 %v205_v31, %v123_v34 }
  0x10   :  { %97 = vmatpush.msra.mxu1 %v69_v12  ;;  %197 = vmatpush.msra.mxu2 %v69_v12  ;;  %v126_v36 = vsel %vm125_vm2, %v205_v31, %v124_v35 }
  0x12   :  { %98 = vmatpush.msra.mxu1 %v68_v13  ;;  %198 = vmatpush.msra.mxu2 %v68_v13 }
  0x86   :  { %v60_v15 = vpop.f32.mrf.mxu0 }
  0x87   :  { %v61_v16 = vadd.f32 %v200_v14, %v60_v15 }
  0x89   :  { %v66_v17 = vmax.f32 %v61_v16, 0.0 }
  0x8b   :  { %185 = vmatmul.msk.f32.vlgmr.msra.gmra.mxu1 %vm76_vm1, %v66_v17 }
  0x8c   :  { %v63_v18 = vpop.f32.mrf.mxu3 }
  0x8d   :  { %v64_v19 = vadd.f32 %v200_v14, %v63_v18 }
  0x8f   :  { %v67_v20 = vmax.f32 %v64_v19, 0.0 }
  0x91   :  { %186 = vmatmul.msk.f32.vlgmr.msra.gmra.mxu2 %vm76_vm1, %v67_v20 }
 0x108   :  { %v100_v22 = vpop.f32.mrf.mxu1 }
 0x109   :  { %v106_v23 = vadd.f32 %v100_v22, %v26_v6 }
 0x10b   :  { %v112_v24 = vadd.f32 %v201_v21, %v106_v23 }
 0x10d   :  { %v114_v25 = vsel %vm36_vm0, %v112_v24, 0.0 }
 0x10e   :  { %115 = vadd.xlane.f32.xlu0 %v114_v25 }
 0x114   :  { %v103_v26 = vpop.f32.mrf.mxu2 }
 0x115   :  { %v107_v27 = vadd.f32 %v103_v26, %v27_v7 }
 0x117   :  { %v113_v28 = vadd.f32 %v201_v21, %v107_v27 }
 0x119   :  { %v117_v29 = vsel %vm36_vm0, %v113_v28, 0.0 }
 0x11a   :  { %118 = vadd.xlane.f32.xlu0 %v117_v29 }
 0x181   :  { %v116_v37 = vpop.xlane.xlu0 %115 }
 0x182   :  { %v127_v38 = vmul.f32 %v126_v36, %v116_v37 }
 0x184   :  { %v129_v39 = vsub.f32 %v112_v24, %v127_v38 }
 0x186   :  { %v131_v40 = vmul.f32 %v129_v39, %v129_v39 }
 0x188   :  { %v133_v41 = vsel %vm36_vm0, %v131_v40, 0.0 }
 0x189   :  { %134 = vadd.xlane.f32.xlu1 %v133_v41 }
 0x18d   :  { %v119_v42 = vpop.xlane.xlu0 %118 }
 0x18e   :  { %v128_v43 = vmul.f32 %v126_v36, %v119_v42 }
 0x190   :  { %v130_v44 = vsub.f32 %v113_v28, %v128_v43 }
 0x192   :  { %v132_v45 = vmul.f32 %v130_v44, %v130_v44 }
 0x194   :  { %v136_v46 = vsel %vm36_vm0, %v132_v45, 0.0 }
 0x195   :  { %137 = vadd.xlane.f32.xlu1 %v136_v46 }
 0x1fc   :  { %v135_v47 = vpop.xlane.xlu1 %134 }
 0x1fd   :  { %v139_v48 = vmul.f32 %v135_v47, %v126_v36 }
 0x1ff   :  { %v141_v49 = vadd.f32 1e-05, %v139_v48 }
 0x201   :  { %206 = vrsqrt.f32 %v141_v49  ;;  %vm149_vm4 = vweird.f32 %v141_v49 }
 0x207   :  { %v207_v50 = vpop.eup %206 }
 0x208   :  { %v144_v51 = vmul.f32 %v207_v50, %v141_v49  ;;  %v138_v52 = vpop.xlane.xlu1 %137  ;;  %vm150_vm3 = vweird.f32 %v207_v50 }
 0x209   :  { %v140_v53 = vmul.f32 %v138_v52, %v126_v36  ;;  %vm151_vm5 = vmor %vm149_vm4, %vm150_vm3 }
 0x20a   :  { %v145_v54 = vmul.f32 %v207_v50, %v144_v51 }
 0x20b   :  { %v142_v55 = vadd.f32 1e-05, %v140_v53 }
 0x20c   :  { %v146_v56 = vmul.f32 0.5, %v145_v54 }
 0x20d   :  { %208 = vrsqrt.f32 %v142_v55  ;;  %vm159_vm7 = vweird.f32 %v142_v55 }
 0x20e   :  { %v147_v57 = vsub.f32 1.5, %v146_v56 }
 0x210   :  { %v148_v58 = vmul.f32 %v207_v50, %v147_v57 }
 0x212   :  { %v152_v60 = vsel %vm151_vm5, %v207_v50, %v148_v58 }
 0x213   :  { %v209_v61 = vpop.eup %208  ;;  %v163_v63 = vmul.f32 %v152_v60, %v129_v39 }
 0x214   :  { %v154_v0 = vmul.f32 %v209_v61, %v142_v55  ;;  %vm160_vm6 = vweird.f32 %v209_v61 }
 0x215   :  { %v169_v1 = vmul.f32 %v202_v59, %v163_v63  ;;  %vm161_vm8 = vmor %vm159_vm7, %vm160_vm6 }
 0x216   :  { %v155_v2 = vmul.f32 %v209_v61, %v154_v0 }
 0x217   :  { %v175_v3 = vadd.f32 %v203_v62, %v169_v1 }
 0x218   :  { %v156_v4 = vmul.f32 0.5, %v155_v2 }
 0x219   :  { %177 = vst.msk [vmem:[%s326_s7] sm:$0xff] %vm36_vm0, %v175_v3 }
 0x21a   :  { %v157_v5 = vsub.f32 1.5, %v156_v4 }
 0x21c   :  { %v158_v6 = vmul.f32 %v209_v61, %v157_v5 }
 0x21e   :  { %v162_v7 = vsel %vm161_vm8, %v209_v61, %v158_v6 }
 0x21f   :  { %v164_v8 = vmul.f32 %v162_v7, %v130_v44 }
 0x221   :  { %v170_v9 = vmul.f32 %v202_v59, %v164_v8 }
 0x223   :  { %v176_v10 = vadd.f32 %v203_v62, %v170_v9 }
 0x225   :  { %178 = vst.msk [vmem:[%s326_s7 + $0x8] sm:$0xff] %vm36_vm0, %v176_v10 }

// kernel: _lambda_.14
= control target key start
LH: loop header
LB: loop body
LE: loop exit
PB: predicated region body
PF: predicated region fallthrough
CT: control target
= control target key end

     0   :  { %12 = vsyncpa [#allocation3], 0  ;;  %s252_s27 = smov [#allocation2]   ;;  %s362_s0 = inlined_call_operand.vmem [shape: f32[16,32], index: 0, kind: input, shape index: {}]   ;;  %s363_s1 = inlined_call_operand.vmem [shape: f32[32,64], index: 1, kind: input, shape index: {}]   ;;  %s364_s2 = inlined_call_operand.vmem [shape: f32[1,64], index: 2, kind: input, shape index: {}]   ;;  %s365_s3 = inlined_call_operand.vmem [shape: f32[64,32], index: 3, kind: input, shape index: {}]   ;;  %s366_s4 = inlined_call_operand.vmem [shape: f32[1,32], index: 4, kind: input, shape index: {}]   ;;  %s367_s5 = inlined_call_operand.vmem [shape: f32[1,32], index: 5, kind: input, shape index: {}]   ;;  %s368_s6 = inlined_call_operand.hbm [shape: f32[1,32], index: 6, kind: input, shape index: {}]   ;;  %s369_s7 = inlined_call_operand.vmem [shape: f32[16,32], index: 7, kind: output, shape index: {}]  }
   0x1   :  { %s30_s26 = sshll.u32 %s368_s6, 4  ;;  %s32_s28 = sshll.u32 %s252_s27, 4  ;;  %s31_s26 = int_to_ptr.hbm [resolvable:$true] %s30_s26  ;;  %s33_s28 = int_to_ptr.vmem [resolvable:$true] %s32_s28 }
   0x2   :  { %35 = dma.hbm_to_vmem [thread:$0]  %s31_s26, 16, %s33_s28, [#allocation3]  }
   0x3   :  { %250 = dma.done.wait [#allocation3], 16  }
   0x4   :  { %251 = vsyncadd [#allocation3], 4294967280  ;;  %v45_v0 = vld [vmem:[%s363_s1 + $0x18] sm:$0xff]  ;;  %v44_v1 = vld [vmem:[%s363_s1 + $0x10] sm:$0xff]  ;;  %vm50_vm0 = vcmask 261120   ;;  %vm90_vm1 = vcmask 523264  }
   0x5   :  { %69 = vmatpush.msra.mxu0 %v45_v0  ;;  %202 = vmatpush.msra.mxu3 %v45_v0  ;;  %v43_v2 = vld [vmem:[%s363_s1 + $0x8] sm:$0xff]  ;;  %v89_v3 = vld [vmem:[%s365_s3 + $0x38] sm:$0xff]  ;;  %v88_v4 = vld [vmem:[%s365_s3 + $0x30] sm:$0xff]  ;;  %v253_v30 = vmov 32.0  }
   0x6   :  { %v42_v5 = vld [vmem:[%s363_s1] sm:$0xff]  ;;  %105 = vmatpush.msra.mxu1 %v89_v3  ;;  %206 = vmatpush.msra.mxu2 %v89_v3  ;;  %v41_v7 = vld [vmem:[%s362_s0 + $0x8] sm:$0xff]  ;;  %v85_v10 = vld [vmem:[%s365_s3 + $0x18] sm:$0xff]  ;;  %220 = vrcp.f32 %v253_v30 }
   0x7   :  { %70 = vmatpush.msra.mxu0 %v44_v1  ;;  %203 = vmatpush.msra.mxu3 %v44_v1  ;;  %v40_v6 = vld [vmem:[%s362_s0] sm:$0xff]  ;;  %v87_v8 = vld [vmem:[%s365_s3 + $0x28] sm:$0xff]  ;;  %v84_v11 = vld [vmem:[%s365_s3 + $0x10] sm:$0xff] }
   0x8   :  { %106 = vmatpush.msra.mxu1 %v88_v4  ;;  %207 = vmatpush.msra.mxu2 %v88_v4  ;;  %v86_v9 = vld [vmem:[%s365_s3 + $0x20] sm:$0xff]  ;;  %v83_v12 = vld [vmem:[%s365_s3 + $0x8] sm:$0xff] }
   0x9   :  { %71 = vmatpush.msra.mxu0 %v43_v2  ;;  %204 = vmatpush.msra.mxu3 %v43_v2  ;;  %v82_v13 = vld [vmem:[%s365_s3] sm:$0xff] }
   0xa   :  { %107 = vmatpush.msra.mxu1 %v87_v8  ;;  %208 = vmatpush.msra.mxu2 %v87_v8  ;;  %v216_v14 = vld [vmem:[%s364_s2] ss:$0 sm:$0xff] }
   0xb   :  { %72 = vmatpush.msra.mxu0 %v42_v5  ;;  %205 = vmatpush.msra.mxu3 %v42_v5  ;;  %v217_v21 = vld [vmem:[%s366_s4] ss:$0 sm:$0xff] }
   0xc   :  { %198 = vmatmul.msk.f32.vlgmr.msra.gmra.mxu0 %vm50_vm0, %v40_v6  ;;  %199 = vmatmul.msk.f32.vlgmr.msra.gmra.mxu3 %vm50_vm0, %v41_v7  ;;  %v221_v31 = vpop.eup %220  ;;  %v218_v59 = vld [vmem:[%s367_s5] ss:$0 sm:$0xff] }
   0xd   :  { %108 = vmatpush.msra.mxu1 %v86_v9  ;;  %209 = vmatpush.msra.mxu2 %v86_v9  ;;  %v135_v32 = vmul.f32 32.0, %v221_v31  ;;  %vm139_vm2 = vweird.f32 %v221_v31  ;;  %v219_v62 = vld [vmem:[#allocation2] ss:$0 sm:$0xff] }
   0xf   :  { %109 = vmatpush.msra.mxu1 %v85_v10  ;;  %210 = vmatpush.msra.mxu2 %v85_v10  ;;  %v136_v33 = vsub.f32 1.0, %v135_v32 }
  0x11   :  { %110 = vmatpush.msra.mxu1 %v84_v11  ;;  %211 = vmatpush.msra.mxu2 %v84_v11  ;;  %v137_v34 = vmul.f32 %v221_v31, %v136_v33 }
  0x13   :  { %111 = vmatpush.msra.mxu1 %v83_v12  ;;  %212 = vmatpush.msra.mxu2 %v83_v12  ;;  %v138_v35 = vadd.f32 %v221_v31, %v137_v34 }
  0x15   :  { %112 = vmatpush.msra.mxu1 %v82_v13  ;;  %213 = vmatpush.msra.mxu2 %v82_v13  ;;  %v140_v36 = vsel %vm139_vm2, %v221_v31, %v138_v35 }
  0x89   :  { %v74_v15 = vpop.f32.mrf.mxu0 }
  0x8a   :  { %v75_v16 = vadd.f32 %v216_v14, %v74_v15 }
  0x8c   :  { %v80_v17 = vmax.f32 %v75_v16, 0.0 }
  0x8e   :  { %200 = vmatmul.msk.f32.vlgmr.msra.gmra.mxu1 %vm90_vm1, %v80_v17 }
  0x8f   :  { %v77_v18 = vpop.f32.mrf.mxu3 }
  0x90   :  { %v78_v19 = vadd.f32 %v216_v14, %v77_v18 }
  0x92   :  { %v81_v20 = vmax.f32 %v78_v19, 0.0 }
  0x94   :  { %201 = vmatmul.msk.f32.vlgmr.msra.gmra.mxu2 %vm90_vm1, %v81_v20 }
 0x10b   :  { %v114_v22 = vpop.f32.mrf.mxu1 }
 0x10c   :  { %v120_v23 = vadd.f32 %v114_v22, %v40_v6 }
 0x10e   :  { %v126_v24 = vadd.f32 %v217_v21, %v120_v23 }
 0x110   :  { %v128_v25 = vsel %vm50_vm0, %v126_v24, 0.0 }
 0x111   :  { %129 = vadd.xlane.f32.xlu0 %v128_v25 }
 0x117   :  { %v117_v26 = vpop.f32.mrf.mxu2 }
 0x118   :  { %v121_v27 = vadd.f32 %v117_v26, %v41_v7 }
 0x11a   :  { %v127_v28 = vadd.f32 %v217_v21, %v121_v27 }
 0x11c   :  { %v131_v29 = vsel %vm50_vm0, %v127_v28, 0.0 }
 0x11d   :  { %132 = vadd.xlane.f32.xlu0 %v131_v29 }
 0x184   :  { %v130_v37 = vpop.xlane.xlu0 %129 }
 0x185   :  { %v141_v38 = vmul.f32 %v140_v36, %v130_v37 }
 0x187   :  { %v143_v39 = vsub.f32 %v126_v24, %v141_v38 }
 0x189   :  { %v145_v40 = vmul.f32 %v143_v39, %v143_v39 }
 0x18b   :  { %v147_v41 = vsel %vm50_vm0, %v145_v40, 0.0 }
 0x18c   :  { %148 = vadd.xlane.f32.xlu1 %v147_v41 }
 0x190   :  { %v133_v42 = vpop.xlane.xlu0 %132 }
 0x191   :  { %v142_v43 = vmul.f32 %v140_v36, %v133_v42 }
 0x193   :  { %v144_v44 = vsub.f32 %v127_v28, %v142_v43 }
 0x195   :  { %v146_v45 = vmul.f32 %v144_v44, %v144_v44 }
 0x197   :  { %v150_v46 = vsel %vm50_vm0, %v146_v45, 0.0 }
 0x198   :  { %151 = vadd.xlane.f32.xlu1 %v150_v46 }
 0x1ff   :  { %v149_v47 = vpop.xlane.xlu1 %148 }
 0x200   :  { %v153_v48 = vmul.f32 %v149_v47, %v140_v36 }
 0x202   :  { %v155_v49 = vadd.f32 1e-05, %v153_v48 }
 0x204   :  { %222 = vrsqrt.f32 %v155_v49  ;;  %vm163_vm4 = vweird.f32 %v155_v49 }
 0x20a   :  { %v223_v50 = vpop.eup %222 }
 0x20b   :  { %v158_v51 = vmul.f32 %v223_v50, %v155_v49  ;;  %v152_v52 = vpop.xlane.xlu1 %151  ;;  %vm164_vm3 = vweird.f32 %v223_v50 }
 0x20c   :  { %v154_v53 = vmul.f32 %v152_v52, %v140_v36  ;;  %vm165_vm5 = vmor %vm163_vm4, %vm164_vm3 }
 0x20d   :  { %v159_v54 = vmul.f32 %v223_v50, %v158_v51 }
 0x20e   :  { %v156_v55 = vadd.f32 1e-05, %v154_v53 }
 0x20f   :  { %v160_v56 = vmul.f32 0.5, %v159_v54 }
 0x210   :  { %224 = vrsqrt.f32 %v156_v55  ;;  %vm173_vm7 = vweird.f32 %v156_v55 }
 0x211   :  { %v161_v57 = vsub.f32 1.5, %v160_v56 }
 0x213   :  { %v162_v58 = vmul.f32 %v223_v50, %v161_v57 }
 0x215   :  { %v166_v60 = vsel %vm165_vm5, %v223_v50, %v162_v58 }
 0x216   :  { %v225_v61 = vpop.eup %224  ;;  %v177_v63 = vmul.f32 %v166_v60, %v143_v39 }
 0x217   :  { %v168_v0 = vmul.f32 %v225_v61, %v156_v55  ;;  %vm174_vm6 = vweird.f32 %v225_v61 }
 0x218   :  { %v183_v1 = vmul.f32 %v218_v59, %v177_v63  ;;  %vm175_vm8 = vmor %vm173_vm7, %vm174_vm6 }
 0x219   :  { %v169_v2 = vmul.f32 %v225_v61, %v168_v0 }
 0x21a   :  { %v189_v3 = vadd.f32 %v219_v62, %v183_v1 }
 0x21b   :  { %v170_v4 = vmul.f32 0.5, %v169_v2 }
 0x21c   :  { %191 = vst.msk [vmem:[%s369_s7] sm:$0xff] %vm50_vm0, %v189_v3 }
 0x21d   :  { %v171_v5 = vsub.f32 1.5, %v170_v4 }
 0x21f   :  { %v172_v6 = vmul.f32 %v225_v61, %v171_v5 }
 0x221   :  { %v176_v7 = vsel %vm175_vm8, %v225_v61, %v172_v6 }
 0x222   :  { %v178_v8 = vmul.f32 %v176_v7, %v144_v44 }
 0x224   :  { %v184_v9 = vmul.f32 %v218_v59, %v178_v8 }
 0x226   :  { %v190_v10 = vadd.f32 %v219_v62, %v184_v9 }
 0x228   :  { %192 = vst.msk [vmem:[%s369_s7 + $0x8] sm:$0xff] %vm50_vm0, %v190_v10 }
 0x229   :  { %197 = vsyncpa [#allocation3], 1 }

// kernel: _lambda_.11
= control target key start
LH: loop header
LB: loop body
LE: loop exit
PB: predicated region body
PF: predicated region fallthrough
CT: control target
= control target key end

     0   :  { %vm45_vm0 = vcmask 261120   ;;  %vm119_vm1 = vcmask 64512   ;;  %s1097_s15 = smov 96   ;;  %s1101_s18 = smov 104   ;;  %s1381_s2 = inlined_call_operand.vmem [shape: f32[32,32], index: 2, kind: input, shape index: {}]   ;;  %s1382_s4 = inlined_call_operand.vmem [shape: f32[32,64], index: 4, kind: input, shape index: {}]   ;;  %s1383_s0 = inlined_call_operand.vmem [shape: f32[16,32], index: 0, kind: input, shape index: {}, may-alias: {0,1}]   ;;  %s1384_s1 = inlined_call_operand.vmem [shape: f32[16,32], index: 1, kind: input, shape index: {}, may-alias: {0,1}]   ;;  %s1385_s3 = inlined_call_operand.vmem [shape: f32[1,32], index: 3, kind: input, shape index: {}]   ;;  %s1386_s5 = inlined_call_operand.vmem [shape: f32[1,64], index: 5, kind: input, shape index: {}]   ;;  %s1387_s6 = inlined_call_operand.vmem [shape: f32[32,32], index: 6, kind: input, shape index: {}]   ;;  %s1388_s7 = inlined_call_operand.vmem [shape: f32[1,32], index: 7, kind: input, shape index: {}]   ;;  %s1389_s8 = inlined_call_operand.vmem [shape: f32[1,32], index: 8, kind: input, shape index: {}]   ;;  %s1390_s9 = inlined_call_operand.vmem [shape: f32[1,32], index: 9, kind: input, shape index: {}]   ;;  %s1391_s10 = inlined_call_operand.vmem [shape: f32[16,32], index: 10, kind: output, shape index: {}]  }
   0x1   :  { %v40_v0 = vld [vmem:[%s1381_s2 + $0x18] sm:$0xff]  ;;  %v39_v2 = vld [vmem:[%s1381_s2 + $0x10] sm:$0xff]  ;;  %v38_v4 = vld [vmem:[%s1381_s2 + $0x8] sm:$0xff]  ;;  %s1102_s19 = smov 80   ;;  %s1103_s27 = smov 72  }
   0x2   :  { %v82_v1 = vld [vmem:[%s1382_s4 + $0x18] sm:$0xff]  ;;  %64 = vmatpush.msra.mxu0 %v40_v0  ;;  %v81_v3 = vld [vmem:[%s1382_s4 + $0x10] sm:$0xff]  ;;  %v80_v5 = vld [vmem:[%s1382_s4 + $0x8] sm:$0xff] }
   0x3   :  { %105 = vmatpush.msra.mxu1 %v82_v1  ;;  %v37_v6 = vld [vmem:[%s1381_s2] sm:$0xff]  ;;  %v1227_v28 = vld [vmem:[%s1383_s0 + $0x8] sm:$0xff] }
   0x4   :  { %65 = vmatpush.msra.mxu0 %v39_v2  ;;  %v79_v7 = vld [vmem:[%s1382_s4] sm:$0xff]  ;;  %v78_v59 = vld [vmem:[%s1384_s1 + $0x8] sm:$0xff] }
   0x5   :  { %106 = vmatpush.msra.mxu1 %v81_v3  ;;  %v1187_v8 = vld [vmem:[%s1383_s0] sm:$0xff]  ;;  %s1100_s0 = smov 88  }
   0x6   :  { %66 = vmatpush.msra.mxu0 %v38_v4  ;;  %v77_v9 = vld [vmem:[%s1384_s1] sm:$0xff] }
   0x7   :  { %107 = vmatpush.msra.mxu1 %v80_v5  ;;  %v1198_v10 = vld [vmem:[%s1385_s3] ss:$0 sm:$0xff]  ;;  %s1098_s3 = smov 120  }
   0x8   :  { %67 = vmatpush.msra.mxu0 %v37_v6  ;;  %v1203_v11 = vld [vmem:[%s1386_s5] ss:$0 sm:$0xff]  ;;  %s1099_s5 = smov 112  }
   0x9   :  { %108 = vmatpush.msra.mxu1 %v79_v7  ;;  %1010 = vmatmul.msk.f32.vlgmr.msra.gmra.mxu0 %vm45_vm0, %v1187_v8  ;;  %v1256_v60 = vld [vmem:[%s1387_s6] sm:$0xff] }
   0xa   :  { %1012 = vmatmul.msk.f32.vlgmr.msra.gmra.mxu1 %vm45_vm0, %v77_v9 }
  0x11   :  { %1011 = vmatmul.msk.f32.gmra.mxu0 %vm45_vm0, %v1227_v28 }
  0x12   :  { %1013 = vmatmul.msk.f32.gmra.mxu1 %vm45_vm0, %v78_v59 }
  0x86   :  { %v69_v12 = vpop.f32.mrf.mxu0 }
  0x87   :  { %v110_v13 = vpop.f32.mrf.mxu1  ;;  %v70_v14 = vadd.f32 %v1198_v10, %v69_v12 }
  0x88   :  { %v1207_v15 = vadd.f32 %v1203_v11, %v110_v13 }
  0x89   :  { %v75_v16 = vmul.f32 0.35355338, %v70_v14 }
  0x8a   :  { %170 = vrot.lane.b32.xlu1 %v1207_v15, %s1097_s15  ;;  %1014 = vmatpush.xpose.msk.msra.mxu2 %vm119_vm1, %v1207_v15 }
  0x8b   :  { %197 = vrot.lane.b32.xlu2 %v75_v16, %s1098_s3 }
  0x8d   :  { %1015 = vmatmul.msk.f32.vlgmr.msra.gmra.mxu2 %vm119_vm1, %v75_v16 }
  0x8e   :  { %v1234_v42 = vpop.f32.mrf.mxu0 }
  0x92   :  { %199 = vrot.lane.b32.xlu1 %v1207_v15, %s1098_s3 }
  0x93   :  { %324 = vrot.lane.b32.xlu2 %v1207_v15, %s1099_s5 }
  0xe5   :  { %v198_v17 = vpop.permute.xlu2 %197 }
  0xed   :  { %v325_v18 = vpop.permute.xlu2 %324 }
  0xee   :  { %1022 = vmatpush.xpose.msk.msrb.mxu0 %vm119_vm1, %v325_v18 }
  0xfc   :  { %v171_v19 = vpop.permute.xlu1 %170 }
  0xfd   :  { %191 = vmatpush.msra.mxu3 %v171_v19 }
 0x104   :  { %v200_v20 = vpop.permute.xlu1 %199 }
 0x105   :  { %1017 = vmatpush.xpose.msk.msrb.mxu3 %vm119_vm1, %v200_v20 }
 0x110   :  { %v143_v21 = vpop.f32.mrf.mxu2 }
 0x111   :  { %v146_v22 = vsel %vm119_vm1, %v143_v21, -inf }
 0x112   :  { %147 = vmax.xlane.f32.xlu0 %v146_v22 }
 0x185   :  { %v148_v23 = vpop.xlane.xlu0 %147 }
 0x186   :  { %v149_v24 = vsub.f32 %v143_v21, %v148_v23 }
 0x188   :  { %v150_v25 = vmul.f32 1.442695, %v149_v24 }
 0x18a   :  { %1059 = vpow2.f32 %v150_v25 }
 0x190   :  { %v1060_v26 = vpop.eup %1059 }
 0x191   :  { %v152_v27 = vsel %vm119_vm1, %v1060_v26, 0.0 }
 0x192   :  { %153 = vadd.xlane.f32.xlu0 %v152_v27 }
 0x1a6   :  { %322 = vrot.lane.b32.xlu0 %v75_v16, %s1099_s5 }
 0x205   :  { %v154_v29 = vpop.xlane.xlu0 %153 }
 0x206   :  { %1061 = vrcp.f32 %v154_v29  ;;  %v166_v33 = vand.u32 2147483648, %v154_v29  ;;  %v164_v35 = vand.u32 2147483647, %v154_v29  ;;  %vm160_vm3 = vweird.f32 %v154_v29 }
 0x208   :  { %v167_v37 = vor.u32 1.1754944e-38, %v166_v33  ;;  %vm165_vm5 = vcmp.eq.f32.partialorder %v164_v35, 8.507059e+37  ;;  %v73_v35 = vadd.f32 %v1198_v10, %v1234_v42 }
 0x20c   :  { %v1062_v30 = vpop.eup %1061 }
 0x20d   :  { %v156_v31 = vmul.f32 %v1062_v30, %v154_v29  ;;  %vm161_vm2 = vweird.f32 %v1062_v30  ;;  %v113_v29 = vpop.f32.mrf.mxu1 }
 0x20e   :  { %vm162_vm4 = vmor %vm160_vm3, %vm161_vm2 }
 0x20f   :  { %v157_v32 = vsub.f32 1.0, %v156_v31  ;;  %v275_v31 = vld [vmem:[%s1387_s6 + $0x8] sm:$0xff] }
 0x211   :  { %v158_v34 = vmul.f32 %v1062_v30, %v157_v32  ;;  %v400_v32 = vld [vmem:[%s1387_s6 + $0x10] sm:$0xff] }
 0x213   :  { %v159_v36 = vadd.f32 %v1062_v30, %v158_v34 }
 0x215   :  { %v163_v38 = vsel %vm162_vm4, %v1062_v30, %v159_v36  ;;  %v1266_v30 = vadd.f32 %v1203_v11, %v113_v29  ;;  %v76_v36 = vmul.f32 0.35355338, %v73_v35 }
 0x216   :  { %v168_v39 = vsel %vm165_vm5, %v167_v37, %v163_v38 }
 0x217   :  { %v169_v40 = vmul.f32 %v1060_v26, %v168_v39 }
 0x218   :  { %v323_v41 = vpop.permute.xlu0 %322 }
 0x219   :  { %1016 = vmatmul.msk.f32.vlgmr.msra.gmra.mxu3 %vm119_vm1, %v169_v40  ;;  %1023 = vmatmul.msk.f32.vlgmr.msrb.gmra.mxu0 %vm119_vm1, %v323_v41 }
 0x21a   :  { %294 = vmatpush.msra.mxu3 %v275_v31 }
 0x221   :  { %1018 = vmatmul.msk.f32.vlgmr.msrb.gmra.mxu3 %vm119_vm1, %v198_v17 }
 0x222   :  { %419 = vmatpush.msrb.mxu3 %v400_v32 }
 0x296   :  { %v347_v43 = vpop.f32.mrf.mxu0 }
 0x297   :  { %v350_v44 = vsel %vm119_vm1, %v347_v43, -inf }
 0x298   :  { %351 = vmax.xlane.f32.xlu2 %v350_v44 }
 0x29c   :  { %v1237_v45 = vpop.f32.mrf.mxu3 }
 0x2a4   :  { %v222_v46 = vpop.f32.mrf.mxu3 }
 0x2a5   :  { %v225_v47 = vsel %vm119_vm1, %v222_v46, -inf }
 0x2a6   :  { %226 = vmax.xlane.f32.xlu1 %v225_v47 }
 0x2bf   :  { %249 = vrot.lane.b32.xlu1 %v1207_v15, %s1100_s0 }
 0x2c7   :  { %425 = vrot.lane.b32.xlu1 %v75_v16, %s1101_s18 }
 0x30b   :  { %v352_v48 = vpop.xlane.xlu2 %351 }
 0x30c   :  { %v353_v49 = vsub.f32 %v347_v43, %v352_v48 }
 0x30e   :  { %v354_v50 = vmul.f32 1.442695, %v353_v49 }
 0x310   :  { %1063 = vpow2.f32 %v354_v50 }
 0x316   :  { %v1064_v51 = vpop.eup %1063 }
 0x317   :  { %v356_v52 = vsel %vm119_vm1, %v1064_v51, 0.0 }
 0x318   :  { %357 = vadd.xlane.f32.xlu2 %v356_v52 }
 0x319   :  { %v227_v53 = vpop.xlane.xlu1 %226 }
 0x31a   :  { %v228_v54 = vsub.f32 %v222_v46, %v227_v53 }
 0x31c   :  { %v229_v55 = vmul.f32 1.442695, %v228_v54 }
 0x31e   :  { %1065 = vpow2.f32 %v229_v55 }
 0x324   :  { %v1066_v56 = vpop.eup %1065 }
 0x325   :  { %v231_v57 = vsel %vm119_vm1, %v1066_v56, 0.0 }
 0x326   :  { %232 = vadd.xlane.f32.xlu0 %v231_v57 }
 0x330   :  { %374 = vrot.lane.b32.xlu2 %v1207_v15, %s1102_s19 }
 0x331   :  { %v250_v58 = vpop.permute.xlu1 %249 }
 0x332   :  { %270 = vmatpush.msrb.mxu2 %v250_v58 }
 0x334   :  { %317 = vmatpush.msra.mxu2 %v1256_v60 }
 0x339   :  { %v426_v27 = vpop.permute.xlu1 %425 }
 0x33a   :  { %427 = vrot.lane.b32.xlu0 %v1207_v15, %s1101_s18 }
 0x342   :  { %621 = vrot.lane.b32.xlu0 %v1266_v30, %s1097_s15 }
 0x38b   :  { %v358_v61 = vpop.xlane.xlu2 %357 }
 0x38c   :  { %1067 = vrcp.f32 %v358_v61  ;;  %v370_v2 = vand.u32 2147483648, %v358_v61  ;;  %v368_v4 = vand.u32 2147483647, %v358_v61  ;;  %vm364_vm7 = vweird.f32 %v358_v61 }
 0x38e   :  { %v371_v7 = vor.u32 1.1754944e-38, %v370_v2  ;;  %vm369_vm9 = vcmp.eq.f32.partialorder %v368_v4, 8.507059e+37 }
 0x392   :  { %v1068_v62 = vpop.eup %1067 }
 0x393   :  { %v360_v63 = vmul.f32 %v1068_v62, %v358_v61  ;;  %v375_v0 = vpop.permute.xlu2 %374  ;;  %vm365_vm6 = vweird.f32 %v1068_v62 }
 0x394   :  { %395 = vmatpush.msrb.mxu1 %v375_v0  ;;  %vm366_vm8 = vmor %vm364_vm7, %vm365_vm6 }
 0x395   :  { %v361_v1 = vsub.f32 1.0, %v360_v63 }
 0x397   :  { %v362_v3 = vmul.f32 %v1068_v62, %v361_v1 }
 0x399   :  { %v363_v5 = vadd.f32 %v1068_v62, %v362_v3  ;;  %v233_v6 = vpop.xlane.xlu0 %232 }
 0x39a   :  { %1069 = vrcp.f32 %v233_v6  ;;  %v245_v18 = vand.u32 2147483648, %v233_v6  ;;  %v243_v20 = vand.u32 2147483647, %v233_v6  ;;  %vm239_vm11 = vweird.f32 %v233_v6 }
 0x39b   :  { %v367_v9 = vsel %vm366_vm8, %v1068_v62, %v363_v5 }
 0x39c   :  { %v372_v12 = vsel %vm369_vm9, %v371_v7, %v367_v9  ;;  %v246_v22 = vor.u32 1.1754944e-38, %v245_v18  ;;  %vm244_vm13 = vcmp.eq.f32.partialorder %v243_v20, 8.507059e+37 }
 0x39d   :  { %v373_v13 = vmul.f32 %v1064_v51, %v372_v12 }
 0x39f   :  { %1024 = vmatmul.msk.f32.vlgmr.msrb.gmra.mxu1 %vm119_vm1, %v373_v13 }
 0x3a0   :  { %v1070_v14 = vpop.eup %1069 }
 0x3a1   :  { %v235_v16 = vmul.f32 %v1070_v14, %v233_v6  ;;  %vm240_vm10 = vweird.f32 %v1070_v14 }
 0x3a2   :  { %vm241_vm12 = vmor %vm239_vm11, %vm240_vm10 }
 0x3a3   :  { %v236_v17 = vsub.f32 1.0, %v235_v16 }
 0x3a5   :  { %v237_v19 = vmul.f32 %v1070_v14, %v236_v17 }
 0x3a7   :  { %v238_v21 = vadd.f32 %v1070_v14, %v237_v19 }
 0x3a9   :  { %v242_v23 = vsel %vm241_vm12, %v1070_v14, %v238_v21 }
 0x3aa   :  { %v247_v24 = vsel %vm244_vm13, %v246_v22, %v242_v23 }
 0x3ab   :  { %v248_v25 = vmul.f32 %v1066_v56, %v247_v24  ;;  %v1311_v24 = vld [vmem:[%s1387_s6 + $0x18] sm:$0xff] }
 0x3ac   :  { %v428_v26 = vpop.permute.xlu0 %427  ;;  %522 = vmatpush.msra.mxu1 %v1311_v24 }
 0x3ad   :  { %1019 = vmatmul.msk.f32.vlgmr.msrb.gmra.mxu2 %vm119_vm1, %v248_v25 }
 0x3ae   :  { %1026 = vmatpush.xpose.msk.msrb.mxu2 %vm119_vm1, %v428_v26 }
 0x3b4   :  { %v622_v39 = vpop.permute.xlu0 %621 }
 0x3b5   :  { %1021 = vmatmul.msk.f32.vlgmr.msra.gmra.mxu2 %vm119_vm1, %v1237_v45 }
 0x3b6   :  { %642 = vmatpush.msra.mxu2 %v622_v39 }
 0x3bd   :  { %1027 = vmatmul.msk.f32.vlgmr.msrb.gmra.mxu2 %vm119_vm1, %v426_v27 }
 0x3be   :  { %768 = vmatpush.msrb.mxu2 %v1256_v60 }
 0x41c   :  { %v397_v11 = vpop.f32.mrf.mxu1 }
 0x430   :  { %v272_v33 = vpop.f32.mrf.mxu2 }
 0x431   :  { %1020 = vmatmul.msk.f32.vlgmr.msra.gmra.mxu3 %vm119_vm1, %v272_v33 }
 0x432   :  { %1030 = vmatpush.xpose.msk.msra.mxu3 %vm119_vm1, %v1266_v30 }
 0x438   :  { %v319_v34 = vpop.f32.mrf.mxu2 }
 0x439   :  { %1025 = vmatmul.msk.f32.vlgmr.msrb.gmra.mxu3 %vm119_vm1, %v397_v11 }
 0x43a   :  { %745 = vmatpush.msrb.mxu3 %v275_v31 }
 0x440   :  { %v450_v37 = vpop.f32.mrf.mxu2 }
 0x441   :  { %1031 = vmatmul.msk.f32.vlgmr.msra.gmra.mxu3 %vm119_vm1, %v76_v36  ;;  %v453_v38 = vsel %vm119_vm1, %v450_v37, -inf }
 0x442   :  { %454 = vmax.xlane.f32.xlu0 %v453_v38  ;;  %870 = vmatpush.msra.mxu3 %v400_v32 }
 0x456   :  { %648 = vrot.lane.b32.xlu0 %v76_v36, %s1098_s3 }
 0x45e   :  { %876 = vrot.lane.b32.xlu0 %v76_v36, %s1101_s18 }
 0x4b4   :  { %v296_v40 = vpop.f32.mrf.mxu3 }
 0x4b5   :  { %v455_v41 = vpop.xlane.xlu0 %454  ;;  %v320_v43 = vadd.f32 %v319_v34, %v296_v40 }
 0x4b6   :  { %v456_v10 = vsub.f32 %v450_v37, %v455_v41 }
 0x4b8   :  { %v457_v45 = vmul.f32 1.442695, %v456_v10 }
 0x4ba   :  { %1071 = vpow2.f32 %v457_v45 }
 0x4bc   :  { %v421_v42 = vpop.f32.mrf.mxu3 }
 0x4bd   :  { %v1287_v44 = vadd.f32 %v421_v42, %v320_v43 }
 0x4c0   :  { %v1072_v48 = vpop.eup %1071 }
 0x4c1   :  { %v459_v49 = vsel %vm119_vm1, %v1072_v48, 0.0 }
 0x4c4   :  { %v594_v46 = vpop.f32.mrf.mxu3 }
 0x4c5   :  { %v597_v47 = vsel %vm119_vm1, %v594_v46, -inf }
 0x4c6   :  { %598 = vmax.xlane.f32.xlu2 %v597_v47 }
 0x4c8   :  { %v649_v22 = vpop.permute.xlu0 %648 }
 0x4ce   :  { %460 = vadd.xlane.f32.xlu2 %v459_v49  ;;  %v1333_v49 = vld [vmem:[%s1388_s7] ss:$0 sm:$0xff] }
 0x4d0   :  { %v877_v27 = vpop.permute.xlu0 %876 }
 0x4e6   :  { %650 = vrot.lane.b32.xlu2 %v1266_v30, %s1098_s3 }
 0x4ee   :  { %878 = vrot.lane.b32.xlu2 %v1266_v30, %s1101_s18 }
 0x539   :  { %v599_v50 = vpop.xlane.xlu2 %598 }
 0x53a   :  { %v600_v51 = vsub.f32 %v594_v46, %v599_v50 }
 0x53c   :  { %v601_v52 = vmul.f32 1.442695, %v600_v51 }
 0x53e   :  { %1073 = vpow2.f32 %v601_v52 }
 0x541   :  { %v461_v55 = vpop.xlane.xlu2 %460 }
 0x542   :  { %1075 = vrcp.f32 %v461_v55  ;;  %v473_v5 = vand.u32 2147483648, %v461_v55  ;;  %vm467_vm4 = vweird.f32 %v461_v55  ;;  %v471_v7 = vand.u32 2147483647, %v461_v55 }
 0x544   :  { %v1074_v53 = vpop.eup %1073  ;;  %v474_v16 = vor.u32 1.1754944e-38, %v473_v5  ;;  %vm472_vm7 = vcmp.eq.f32.partialorder %v471_v7, 8.507059e+37 }
 0x545   :  { %v603_v54 = vsel %vm119_vm1, %v1074_v53, 0.0 }
 0x546   :  { %604 = vadd.xlane.f32.xlu1 %v603_v54 }
 0x548   :  { %v1076_v56 = vpop.eup %1075 }
 0x549   :  { %v463_v58 = vmul.f32 %v1076_v56, %v461_v55  ;;  %v651_v63 = vpop.permute.xlu2 %650  ;;  %vm468_vm15 = vweird.f32 %v1076_v56 }
 0x54a   :  { %vm469_vm6 = vmor %vm467_vm4, %vm468_vm15 }
 0x54b   :  { %v464_v59 = vsub.f32 1.0, %v463_v58 }
 0x54d   :  { %v465_v62 = vmul.f32 %v1076_v56, %v464_v59 }
 0x54f   :  { %v466_v3 = vadd.f32 %v1076_v56, %v465_v62 }
 0x551   :  { %v470_v13 = vsel %vm469_vm6, %v1076_v56, %v466_v3  ;;  %v879_v17 = vpop.permute.xlu2 %878 }
 0x552   :  { %v475_v18 = vsel %vm472_vm7, %v474_v16, %v470_v13 }
 0x553   :  { %v476_v20 = vmul.f32 %v1072_v48, %v475_v18 }
 0x55f   :  { %477 = vrot.lane.b32.xlu1 %v1207_v15, %s1103_s27 }
 0x567   :  { %775 = vrot.lane.b32.xlu1 %v1266_v30, %s1099_s5 }
 0x56f   :  { %773 = vrot.lane.b32.xlu1 %v76_v36, %s1099_s5 }
 0x5b9   :  { %v605_v57 = vpop.xlane.xlu1 %604 }
 0x5ba   :  { %1077 = vrcp.f32 %v605_v57  ;;  %v617_v1 = vand.u32 2147483648, %v605_v57  ;;  %v615_v15 = vand.u32 2147483647, %v605_v57  ;;  %vm611_vm2 = vweird.f32 %v605_v57 }
 0x5bc   :  { %v618_v6 = vor.u32 1.1754944e-38, %v617_v1  ;;  %vm616_vm5 = vcmp.eq.f32.partialorder %v615_v15, 8.507059e+37 }
 0x5c0   :  { %v1078_v60 = vpop.eup %1077 }
 0x5c1   :  { %v607_v61 = vmul.f32 %v1078_v60, %v605_v57  ;;  %vm612_vm14 = vweird.f32 %v1078_v60 }
 0x5c2   :  { %vm613_vm3 = vmor %vm611_vm2, %vm612_vm14 }
 0x5c3   :  { %v608_v0 = vsub.f32 1.0, %v607_v61 }
 0x5c5   :  { %v609_v2 = vmul.f32 %v1078_v60, %v608_v0 }
 0x5c7   :  { %v610_v4 = vadd.f32 %v1078_v60, %v609_v2 }
 0x5c9   :  { %v614_v9 = vsel %vm613_vm3, %v1078_v60, %v610_v4 }
 0x5ca   :  { %v619_v12 = vsel %vm616_vm5, %v618_v6, %v614_v9 }
 0x5cb   :  { %v620_v14 = vmul.f32 %v1074_v53, %v619_v12 }
 0x5cd   :  { %1032 = vmatmul.msk.f32.vlgmr.msra.gmra.mxu2 %vm119_vm1, %v620_v14 }
 0x5ce   :  { %1042 = vmatpush.xpose.msk.msra.mxu2 %vm119_vm1, %v879_v17 }
 0x5d1   :  { %v478_v19 = vpop.permute.xlu1 %477 }
 0x5d2   :  { %498 = vmatpush.msra.mxu0 %v478_v19 }
 0x5d3   :  { %1028 = vmatmul.msk.f32.vlgmr.msra.gmra.mxu0 %vm119_vm1, %v476_v20  ;;  %v1104_v20 = vmov 32.0  }
 0x5d4   :  { %1033 = vmatpush.xpose.msk.msrb.mxu0 %vm119_vm1, %v651_v63 }
 0x5d9   :  { %v776_v21 = vpop.permute.xlu1 %775 }
 0x5da   :  { %1038 = vmatpush.xpose.msk.msra.mxu0 %vm119_vm1, %v776_v21 }
 0x5db   :  { %1034 = vmatmul.msk.f32.vlgmr.msrb.gmra.mxu0 %vm119_vm1, %v649_v22 }
 0x5e1   :  { %v774_v23 = vpop.permute.xlu1 %773 }
 0x5e3   :  { %1039 = vmatmul.msk.f32.vlgmr.msra.gmra.mxu0 %vm119_vm1, %v774_v23 }
 0x650   :  { %v500_v25 = vpop.f32.mrf.mxu0  ;;  %v644_v26 = vpop.f32.mrf.mxu2 }
 0x651   :  { %1029 = vmatmul.msk.f32.vlgmr.msra.gmra.mxu1 %vm119_vm1, %v500_v25  ;;  %1037 = vmatmul.msk.f32.vlgmr.msrb.gmra.mxu2 %vm119_vm1, %v644_v26 }
 0x658   :  { %v673_v29 = vpop.f32.mrf.mxu0 }
 0x659   :  { %1043 = vmatmul.msk.f32.vlgmr.msra.gmra.mxu2 %vm119_vm1, %v877_v27  ;;  %v676_v31 = vsel %vm119_vm1, %v673_v29, -inf }
 0x65a   :  { %677 = vmax.xlane.f32.xlu2 %v676_v31 }
 0x660   :  { %v798_v32 = vpop.f32.mrf.mxu0 }
 0x661   :  { %v801_v33 = vsel %vm119_vm1, %v798_v32, -inf }
 0x662   :  { %802 = vmax.xlane.f32.xlu1 %v801_v33 }
 0x6cd   :  { %v678_v11 = vpop.xlane.xlu2 %677 }
 0x6ce   :  { %v679_v34 = vsub.f32 %v673_v29, %v678_v11  ;;  %v524_v46 = vpop.f32.mrf.mxu1 }
 0x6cf   :  { %v527_v47 = vadd.f32 %v524_v46, %v1287_v44 }
 0x6d0   :  { %v680_v35 = vmul.f32 1.442695, %v679_v34 }
 0x6d1   :  { %v528_v48 = vadd.f32 %v527_v47, %v1187_v8 }
 0x6d2   :  { %1079 = vpow2.f32 %v680_v35 }
 0x6d3   :  { %v1336_v50 = vadd.f32 %v1333_v49, %v528_v48 }
 0x6d4   :  { %v1319_v36 = vpop.f32.mrf.mxu2 }
 0x6d5   :  { %v803_v37 = vpop.xlane.xlu1 %802  ;;  %v533_v51 = vsel %vm45_vm0, %v1336_v50, 0.0 }
 0x6d6   :  { %v804_v38 = vsub.f32 %v798_v32, %v803_v37 }
 0x6d8   :  { %v1080_v39 = vpop.eup %1079  ;;  %v805_v40 = vmul.f32 1.442695, %v804_v38 }
 0x6d9   :  { %v682_v41 = vsel %vm119_vm1, %v1080_v39, 0.0 }
 0x6da   :  { %1081 = vpow2.f32 %v805_v40  ;;  %683 = vadd.xlane.f32.xlu2 %v682_v41 }
 0x6dc   :  { %v901_v43 = vpop.f32.mrf.mxu2 }
 0x6dd   :  { %v904_v10 = vsel %vm119_vm1, %v901_v43, -inf }
 0x6de   :  { %905 = vmax.xlane.f32.xlu0 %v904_v10 }
 0x6e0   :  { %v1082_v42 = vpop.eup %1081 }
 0x6e1   :  { %v807_v45 = vsel %vm119_vm1, %v1082_v42, 0.0 }
 0x6e2   :  { %808 = vadd.xlane.f32.xlu1 %v807_v45 }
 0x6f2   :  { %700 = vrot.lane.b32.xlu2 %v1266_v30, %s1100_s0 }
 0x6fb   :  { %825 = vrot.lane.b32.xlu1 %v1266_v30, %s1102_s19 }
 0x71b   :  { %534 = vadd.xlane.f32.xlu2 %v533_v51 }
 0x74d   :  { %v684_v52 = vpop.xlane.xlu2 %683 }
 0x74e   :  { %1083 = vrcp.f32 %v684_v52  ;;  %v696_v59 = vand.u32 2147483648, %v684_v52  ;;  %v694_v61 = vand.u32 2147483647, %v684_v52  ;;  %vm690_vm9 = vweird.f32 %v684_v52 }
 0x750   :  { %v697_v0 = vor.u32 1.1754944e-38, %v696_v59  ;;  %vm695_vm11 = vcmp.eq.f32.partialorder %v694_v61, 8.507059e+37 }
 0x751   :  { %v906_v53 = vpop.xlane.xlu0 %905 }
 0x752   :  { %v907_v54 = vsub.f32 %v901_v43, %v906_v53 }
 0x754   :  { %v1084_v55 = vpop.eup %1083  ;;  %v908_v44 = vmul.f32 1.442695, %v907_v54 }
 0x755   :  { %v686_v56 = vmul.f32 %v1084_v55, %v684_v52  ;;  %v809_v8 = vpop.xlane.xlu1 %808  ;;  %v701_v57 = vpop.permute.xlu2 %700  ;;  %vm691_vm8 = vweird.f32 %v1084_v55 }
 0x756   :  { %1085 = vpow2.f32 %v908_v44  ;;  %721 = vmatpush.msrb.mxu1 %v701_v57  ;;  %vm692_vm10 = vmor %vm690_vm9, %vm691_vm8  ;;  %v821_v12 = vand.u32 2147483648, %v809_v8  ;;  %vm815_vm13 = vweird.f32 %v809_v8  ;;  %v819_v13 = vand.u32 2147483647, %v809_v8 }
 0x757   :  { %v687_v58 = vsub.f32 1.0, %v686_v56  ;;  %1087 = vrcp.f32 %v809_v8 }
 0x758   :  { %v822_v16 = vor.u32 1.1754944e-38, %v821_v12  ;;  %vm820_vm15 = vcmp.eq.f32.partialorder %v819_v13, 8.507059e+37  ;;  %1089 = vrcp.f32 %v1104_v20 }
 0x759   :  { %v688_v60 = vmul.f32 %v1084_v55, %v687_v58  ;;  %v1058_v58 = vld [vmem:[%s1390_s9] ss:$0 sm:$0xff] }
 0x75b   :  { %v689_v62 = vadd.f32 %v1084_v55, %v688_v60 }
 0x75c   :  { %v1340_v63 = vpop.eup %1085 }
 0x75d   :  { %v1088_v1 = vpop.eup %1087  ;;  %v693_v2 = vsel %vm692_vm10, %v1084_v55, %v689_v62  ;;  %v910_v15 = vsel %vm119_vm1, %v1340_v63, 0.0 }
 0x75e   :  { %v698_v3 = vsel %vm695_vm11, %v697_v0, %v693_v2  ;;  %v811_v4 = vmul.f32 %v1088_v1, %v809_v8  ;;  %911 = vadd.xlane.f32.xlu0 %v910_v15  ;;  %vm816_vm12 = vweird.f32 %v1088_v1  ;;  %v1090_v21 = vpop.eup %1089  ;;  %v1057_v8 = vld [vmem:[%s1389_s8] ss:$0 sm:$0xff] }
 0x75f   :  { %v699_v5 = vmul.f32 %v1080_v39, %v698_v3  ;;  %vm817_vm14 = vmor %vm815_vm13, %vm816_vm12  ;;  %v537_v22 = vmul.f32 32.0, %v1090_v21  ;;  %vm541_vm2 = vweird.f32 %v1090_v21 }
 0x760   :  { %v812_v6 = vsub.f32 1.0, %v811_v4 }
 0x761   :  { %1035 = vmatmul.msk.f32.vlgmr.msrb.gmra.mxu1 %vm119_vm1, %v699_v5  ;;  %v538_v23 = vsub.f32 1.0, %v537_v22 }
 0x762   :  { %v813_v7 = vmul.f32 %v1088_v1, %v812_v6 }
 0x763   :  { %v539_v25 = vmul.f32 %v1090_v21, %v538_v23 }
 0x764   :  { %v814_v9 = vadd.f32 %v1088_v1, %v813_v7 }
 0x765   :  { %v540_v26 = vadd.f32 %v1090_v21, %v539_v25 }
 0x766   :  { %v818_v14 = vsel %vm817_vm14, %v1088_v1, %v814_v9 }
 0x767   :  { %v823_v17 = vsel %vm820_vm15, %v822_v16, %v818_v14  ;;  %v1349_v27 = vsel %vm541_vm2, %v1090_v21, %v540_v26 }
 0x768   :  { %v824_v19 = vmul.f32 %v1082_v42, %v823_v17 }
 0x76d   :  { %v826_v18 = vpop.permute.xlu1 %825 }
 0x76e   :  { %846 = vmatpush.msra.mxu1 %v826_v18 }
 0x76f   :  { %1040 = vmatmul.msk.f32.vlgmr.msra.gmra.mxu1 %vm119_vm1, %v824_v19 }
 0x770   :  { %973 = vmatpush.msrb.mxu1 %v1311_v24 }
 0x772   :  { %928 = vrot.lane.b32.xlu0 %v1266_v30, %s1103_s27 }
 0x78e   :  { %v535_v29 = vpop.xlane.xlu2 %534 }
 0x78f   :  { %v543_v31 = vmul.f32 %v1349_v27, %v535_v29 }
 0x791   :  { %v544_v32 = vsub.f32 %v1336_v50, %v543_v31 }
 0x793   :  { %v545_v33 = vmul.f32 %v544_v32, %v544_v32 }
 0x795   :  { %v546_v24 = vsel %vm45_vm0, %v545_v33, 0.0 }
 0x796   :  { %547 = vadd.xlane.f32.xlu1 %v546_v24 }
 0x7d1   :  { %v912_v30 = vpop.xlane.xlu0 %911 }
 0x7d2   :  { %1091 = vrcp.f32 %v912_v30  ;;  %v924_v37 = vand.u32 2147483648, %v912_v30  ;;  %v922_v39 = vand.u32 2147483647, %v912_v30  ;;  %vm918_vm4 = vweird.f32 %v912_v30 }
 0x7d4   :  { %v925_v43 = vor.u32 1.1754944e-38, %v924_v37  ;;  %vm923_vm6 = vcmp.eq.f32.partialorder %v922_v39, 8.507059e+37 }
 0x7d8   :  { %v1092_v11 = vpop.eup %1091 }
 0x7d9   :  { %v914_v34 = vmul.f32 %v1092_v11, %v912_v30  ;;  %vm919_vm3 = vweird.f32 %v1092_v11 }
 0x7da   :  { %vm920_vm5 = vmor %vm918_vm4, %vm919_vm3 }
 0x7db   :  { %v915_v35 = vsub.f32 1.0, %v914_v34 }
 0x7dd   :  { %v916_v38 = vmul.f32 %v1092_v11, %v915_v35 }
 0x7de   :  { %v723_v40 = vpop.f32.mrf.mxu1 }
 0x7df   :  { %v917_v41 = vadd.f32 %v1092_v11, %v916_v38  ;;  %1036 = vmatmul.msk.f32.vlgmr.msrb.gmra.mxu3 %vm119_vm1, %v723_v40 }
 0x7e1   :  { %v921_v10 = vsel %vm920_vm5, %v1092_v11, %v917_v41 }
 0x7e2   :  { %v926_v42 = vsel %vm923_vm6, %v925_v43, %v921_v10 }
 0x7e3   :  { %v927_v45 = vmul.f32 %v1340_v63, %v926_v42 }
 0x7e4   :  { %v929_v46 = vpop.permute.xlu0 %928 }
 0x7e5   :  { %949 = vmatpush.msrb.mxu0 %v929_v46 }
 0x7e6   :  { %1044 = vmatmul.msk.f32.vlgmr.msrb.gmra.mxu0 %vm119_vm1, %v927_v45 }
 0x7ec   :  { %v848_v47 = vpop.f32.mrf.mxu1 }
 0x7ed   :  { %1041 = vmatmul.msk.f32.vlgmr.msra.gmra.mxu3 %vm119_vm1, %v848_v47 }
 0x809   :  { %v548_v48 = vpop.xlane.xlu1 %547 }
 0x80a   :  { %v549_v50 = vmul.f32 %v548_v48, %v1349_v27 }
 0x80c   :  { %v550_v51 = vadd.f32 1e-05, %v549_v50 }
 0x80e   :  { %1093 = vrsqrt.f32 %v550_v51  ;;  %vm557_vm8 = vweird.f32 %v550_v51 }
 0x814   :  { %v1094_v52 = vpop.eup %1093 }
 0x815   :  { %v552_v53 = vmul.f32 %v1094_v52, %v550_v51  ;;  %vm558_vm7 = vweird.f32 %v1094_v52 }
 0x816   :  { %vm559_vm9 = vmor %vm557_vm8, %vm558_vm7 }
 0x817   :  { %v553_v54 = vmul.f32 %v1094_v52, %v552_v53 }
 0x819   :  { %v554_v55 = vmul.f32 0.5, %v553_v54 }
 0x81b   :  { %v555_v44 = vsub.f32 1.5, %v554_v55 }
 0x81d   :  { %v556_v56 = vmul.f32 %v1094_v52, %v555_v44 }
 0x81f   :  { %v560_v57 = vsel %vm559_vm9, %v1094_v52, %v556_v56 }
 0x820   :  { %v561_v59 = vmul.f32 %v560_v57, %v544_v32 }
 0x822   :  { %v565_v60 = vmul.f32 %v1057_v8, %v561_v59 }
 0x824   :  { %v569_v61 = vadd.f32 %v1058_v58, %v565_v60 }
 0x826   :  { %570 = vst.msk [vmem:[%s1391_s10] sm:$0xff] %vm45_vm0, %v569_v61 }
 0x862   :  { %v747_v63 = vpop.f32.mrf.mxu3 }
 0x863   :  { %v951_v62 = vpop.f32.mrf.mxu0  ;;  %v771_v1 = vadd.f32 %v1319_v36, %v747_v63 }
 0x864   :  { %1045 = vmatmul.msk.f32.vlgmr.msrb.gmra.mxu1 %vm119_vm1, %v951_v62 }
 0x870   :  { %v872_v0 = vpop.f32.mrf.mxu3 }
 0x871   :  { %v875_v2 = vadd.f32 %v872_v0, %v771_v1 }
 0x8e1   :  { %v975_v15 = vpop.f32.mrf.mxu1 }
 0x8e2   :  { %v978_v3 = vadd.f32 %v975_v15, %v875_v2 }
 0x8e4   :  { %v979_v4 = vadd.f32 %v978_v3, %v1227_v28 }
 0x8e6   :  { %v980_v5 = vadd.f32 %v1333_v49, %v979_v4 }
 0x8e8   :  { %v981_v6 = vsel %vm45_vm0, %v980_v5, 0.0 }
 0x8e9   :  { %982 = vadd.xlane.f32.xlu0 %v981_v6 }
 0x95c   :  { %v983_v7 = vpop.xlane.xlu0 %982 }
 0x95d   :  { %v984_v9 = vmul.f32 %v983_v7, %v1349_v27 }
 0x95f   :  { %v985_v12 = vsub.f32 %v980_v5, %v984_v9 }
 0x961   :  { %v986_v13 = vmul.f32 %v985_v12, %v985_v12 }
 0x963   :  { %v987_v14 = vsel %vm45_vm0, %v986_v13, 0.0 }
 0x964   :  { %988 = vadd.xlane.f32.xlu2 %v987_v14 }
 0x9d7   :  { %v989_v16 = vpop.xlane.xlu2 %988 }
 0x9d8   :  { %v990_v36 = vmul.f32 %v989_v16, %v1349_v27 }
 0x9da   :  { %v991_v17 = vadd.f32 1e-05, %v990_v36 }
 0x9dc   :  { %1095 = vrsqrt.f32 %v991_v17  ;;  %vm998_vm10 = vweird.f32 %v991_v17 }
 0x9e2   :  { %v1096_v18 = vpop.eup %1095 }
 0x9e3   :  { %v993_v28 = vmul.f32 %v1096_v18, %v991_v17  ;;  %vm999_vm1 = vweird.f32 %v1096_v18 }
 0x9e4   :  { %vm1000_vm11 = vmor %vm998_vm10, %vm999_vm1 }
 0x9e5   :  { %v994_v19 = vmul.f32 %v1096_v18, %v993_v28 }
 0x9e7   :  { %v995_v49 = vmul.f32 0.5, %v994_v19 }
 0x9e9   :  { %v996_v20 = vsub.f32 1.5, %v995_v49 }
 0x9eb   :  { %v997_v21 = vmul.f32 %v1096_v18, %v996_v20 }
 0x9ed   :  { %v1001_v22 = vsel %vm1000_vm11, %v1096_v18, %v997_v21 }
 0x9ee   :  { %v1002_v23 = vmul.f32 %v1001_v22, %v985_v12 }
 0x9f0   :  { %v1003_v25 = vmul.f32 %v1057_v8, %v1002_v23 }
 0x9f2   :  { %v1004_v26 = vadd.f32 %v1058_v58, %v1003_v25 }
 0x9f4   :  { %1005 = vst.msk [vmem:[%s1391_s10 + $0x8] sm:$0xff] %vm45_vm0, %v1004_v26 }

// kernel: _lambda_.15
= control target key start
LH: loop header
LB: loop body
LE: loop exit
PB: predicated region body
PF: predicated region fallthrough
CT: control target
= control target key end

     0   :  { %15 = vsyncpa [#allocation3], 0  ;;  %s1612_s0 = inlined_call_operand.vmem [shape: f32[16,32], index: 0, kind: input, shape index: {}, may-alias: {0,1}]   ;;  %s1613_s1 = inlined_call_operand.vmem [shape: f32[16,32], index: 1, kind: input, shape index: {}, may-alias: {0,1}]   ;;  %s1614_s2 = inlined_call_operand.vmem [shape: f32[32,32], index: 2, kind: input, shape index: {}]   ;;  %s1615_s3 = inlined_call_operand.hbm [shape: f32[1,32], index: 3, kind: input, shape index: {}]   ;;  %s1616_s4 = inlined_call_operand.vmem [shape: f32[32,64], index: 4, kind: input, shape index: {}]   ;;  %s1617_s5 = inlined_call_operand.hbm [shape: f32[1,64], index: 5, kind: input, shape index: {}]   ;;  %s1618_s6 = inlined_call_operand.vmem [shape: f32[32,32], index: 6, kind: input, shape index: {}]   ;;  %s1619_s7 = inlined_call_operand.hbm [shape: f32[1,32], index: 7, kind: input, shape index: {}]   ;;  %s1620_s8 = inlined_call_operand.hbm [shape: f32[1,32], index: 8, kind: input, shape index: {}]   ;;  %s1621_s9 = inlined_call_operand.hbm [shape: f32[1,32], index: 9, kind: input, shape index: {}]   ;;  %s1622_s10 = inlined_call_operand.vmem [shape: f32[16,32], index: 10, kind: output, shape index: {}]  }
   0x1   :  { %16 = vsyncpa [#allocation5], 0  ;;  %s42_s15 = sshll.u32 %s1617_s5, 4  ;;  %s43_s15 = int_to_ptr.hbm [resolvable:$true] %s42_s15 }
   0x2   :  { %17 = vsyncpa [#allocation8], 0  ;;  %s1306_s16 = smov [#allocation4]   ;;  %s66_s20 = sshll.u32 %s1620_s8, 4  ;;  %s67_s20 = int_to_ptr.hbm [resolvable:$true] %s66_s20 }
   0x3   :  { %s44_s17 = sshll.u32 %s1306_s16, 4  ;;  %s1307_s21 = smov [#allocation7]   ;;  %s45_s17 = int_to_ptr.vmem [resolvable:$true] %s44_s17 }
   0x4   :  { %47 = dma.hbm_to_vmem [thread:$0]  %s43_s15, 16, %s45_s17, [#allocation5]  }
   0x5   :  { %s68_s22 = sshll.u32 %s1307_s21, 4  ;;  %s29_s25 = sshll.u32 %s1615_s3, 4  ;;  %s69_s22 = int_to_ptr.vmem [resolvable:$true] %s68_s22  ;;  %s30_s25 = int_to_ptr.hbm [resolvable:$true] %s29_s25 }
   0x6   :  { %71 = dma.hbm_to_vmem [thread:$0]  %s67_s20, 16, %s69_s22, [#allocation8]  }
   0x7   :  { %s55_s27 = sshll.u32 %s1619_s7, 4  ;;  %s1308_s28 = smov [#allocation2]   ;;  %s56_s27 = int_to_ptr.hbm [resolvable:$true] %s55_s27 }
   0x8   :  { %s31_s29 = sshll.u32 %s1308_s28, 4  ;;  %s1309_s8 = smov [#allocation6]   ;;  %s32_s29 = int_to_ptr.vmem [resolvable:$true] %s31_s29 }
   0x9   :  { %34 = dma.hbm_to_vmem [thread:$0]  %s30_s25, 16, %s32_s29, [#allocation3]  }
   0xa   :  { %s57_s30 = sshll.u32 %s1309_s8, 4  ;;  %s77_s13 = sshll.u32 %s1621_s9, 4  ;;  %s58_s30 = int_to_ptr.vmem [resolvable:$true] %s57_s30  ;;  %s78_s13 = int_to_ptr.hbm [resolvable:$true] %s77_s13 }
   0xb   :  { %60 = dma.hbm_to_vmem [thread:$0]  %s56_s27, 16, %s58_s30, [#allocation5]  }
   0xc   :  { %s1310_s3 = smov [#allocation9]  }
   0xd   :  { %s79_s14 = sshll.u32 %s1310_s3, 4  ;;  %s80_s14 = int_to_ptr.vmem [resolvable:$true] %s79_s14 }
   0xe   :  { %82 = dma.hbm_to_vmem [thread:$0]  %s78_s13, 16, %s80_s14, [#allocation8]  }
   0xf   :  { %1300 = dma.done.wait [#allocation3], 16  }
  0x10   :  { %1301 = vsyncadd [#allocation3], 4294967280 }
  0x11   :  { %1302 = dma.done.wait [#allocation5], 32  }
  0x12   :  { %1303 = vsyncadd [#allocation5], 4294967264 }
  0x13   :  { %1304 = dma.done.wait [#allocation8], 32  }
  0x14   :  { %1305 = vsyncadd [#allocation8], 4294967264  ;;  %v108_v0 = vld [vmem:[%s1614_s2 + $0x18] sm:$0xff]  ;;  %v107_v2 = vld [vmem:[%s1614_s2 + $0x10] sm:$0xff]  ;;  %vm113_vm0 = vcmask 261120   ;;  %vm193_vm1 = vcmask 64512   ;;  %v184_v20 = vlaneseq }
  0x15   :  { %v150_v1 = vld [vmem:[%s1616_s4 + $0x18] sm:$0xff]  ;;  %132 = vmatpush.msra.mxu0 %v108_v0  ;;  %v149_v3 = vld [vmem:[%s1616_s4 + $0x10] sm:$0xff]  ;;  %v106_v4 = vld [vmem:[%s1614_s2 + $0x8] sm:$0xff]  ;;  %s1313_s11 = smov 112   ;;  %v1314_v24 = vmov 0.0   ;;  %s1316_s3 = smov 104  }
  0x16   :  { %173 = vmatpush.msra.mxu1 %v150_v1  ;;  %v148_v5 = vld [vmem:[%s1616_s4 + $0x8] sm:$0xff]  ;;  %v105_v6 = vld [vmem:[%s1614_s2] sm:$0xff]  ;;  %s1311_s2 = smov 96   ;;  %v185_v22 = vshrl.u32 %v184_v20, 7  ;;  %v187_v23 = vand.u32 127, %v184_v20  ;;  %s1317_s14 = smov 80  }
  0x17   :  { %133 = vmatpush.msra.mxu0 %v107_v2  ;;  %v147_v7 = vld [vmem:[%s1616_s4] sm:$0xff]  ;;  %s1312_s4 = smov 120   ;;  %v1459_v34 = vld [vmem:[%s1612_s0 + $0x8] sm:$0xff]  ;;  %s1318_s20 = smov 72  }
  0x18   :  { %174 = vmatpush.msra.mxu1 %v149_v3  ;;  %v1417_v8 = vld [vmem:[%s1612_s0] sm:$0xff]  ;;  %vm188_vm2 = vcmp.gt.s32.totalorder %v187_v23, %v185_v22  ;;  %s1315_s0 = smov 88   ;;  %v146_v3 = vld [vmem:[%s1613_s1 + $0x8] sm:$0xff] }
  0x19   :  { %134 = vmatpush.msra.mxu0 %v106_v4  ;;  %v145_v9 = vld [vmem:[%s1613_s1] sm:$0xff]  ;;  %v1449_v25 = vsel %vm188_vm2, -1e+09, %v1314_v24 }
  0x1a   :  { %175 = vmatpush.msra.mxu1 %v148_v5  ;;  %v1425_v10 = vld [vmem:[#allocation2] ss:$0 sm:$0xff]  ;;  %v1427_v11 = vld [vmem:[#allocation4] ss:$0 sm:$0xff] }
  0x1b   :  { %135 = vmatpush.msra.mxu0 %v105_v6  ;;  %v1491_v4 = vld [vmem:[%s1618_s6] sm:$0xff] }
  0x1c   :  { %176 = vmatpush.msra.mxu1 %v147_v7  ;;  %1087 = vmatmul.msk.f32.vlgmr.msra.gmra.mxu0 %vm113_vm0, %v1417_v8 }
  0x1d   :  { %1089 = vmatmul.msk.f32.vlgmr.msra.gmra.mxu1 %vm113_vm0, %v145_v9 }
  0x24   :  { %1088 = vmatmul.msk.f32.gmra.mxu0 %vm113_vm0, %v1459_v34 }
  0x25   :  { %1090 = vmatmul.msk.f32.gmra.mxu1 %vm113_vm0, %v146_v3 }
  0x99   :  { %v137_v12 = vpop.f32.mrf.mxu0 }
  0x9a   :  { %v178_v13 = vpop.f32.mrf.mxu1  ;;  %v138_v14 = vadd.f32 %v1425_v10, %v137_v12 }
  0x9b   :  { %v1431_v15 = vadd.f32 %v1427_v11, %v178_v13 }
  0x9c   :  { %v1433_v16 = vmul.f32 0.35355338, %v138_v14 }
  0x9d   :  { %244 = vrot.lane.b32.xlu1 %v1431_v15, %s1311_s2  ;;  %1091 = vmatpush.xpose.msk.msra.mxu2 %vm193_vm1, %v1431_v15 }
  0x9e   :  { %271 = vrot.lane.b32.xlu2 %v1433_v16, %s1312_s4 }
  0xa0   :  { %1092 = vmatmul.msk.f32.vlgmr.msra.gmra.mxu2 %vm193_vm1, %v1433_v16 }
  0xa1   :  { %v1466_v48 = vpop.f32.mrf.mxu0 }
  0xa5   :  { %273 = vrot.lane.b32.xlu1 %v1431_v15, %s1312_s4 }
  0xa6   :  { %398 = vrot.lane.b32.xlu2 %v1431_v15, %s1313_s11 }
  0xf8   :  { %v272_v17 = vpop.permute.xlu2 %271 }
 0x100   :  { %v399_v18 = vpop.permute.xlu2 %398 }
 0x101   :  { %1099 = vmatpush.xpose.msk.msrb.mxu0 %vm193_vm1, %v399_v18 }
 0x10f   :  { %v245_v19 = vpop.permute.xlu1 %244 }
 0x110   :  { %265 = vmatpush.msra.mxu3 %v245_v19 }
 0x117   :  { %v274_v21 = vpop.permute.xlu1 %273 }
 0x118   :  { %1094 = vmatpush.xpose.msk.msrb.mxu3 %vm193_vm1, %v274_v21 }
 0x123   :  { %v217_v26 = vpop.f32.mrf.mxu2 }
 0x124   :  { %v218_v27 = vadd.f32 %v217_v26, %v1449_v25 }
 0x126   :  { %v220_v28 = vsel %vm193_vm1, %v218_v27, -inf }
 0x127   :  { %221 = vmax.xlane.f32.xlu0 %v220_v28 }
 0x19a   :  { %v222_v29 = vpop.xlane.xlu0 %221 }
 0x19b   :  { %v223_v30 = vsub.f32 %v218_v27, %v222_v29 }
 0x19d   :  { %v224_v31 = vmul.f32 1.442695, %v223_v30 }
 0x19f   :  { %1142 = vpow2.f32 %v224_v31 }
 0x1a5   :  { %v1143_v32 = vpop.eup %1142 }
 0x1a6   :  { %v226_v33 = vsel %vm193_vm1, %v1143_v32, 0.0 }
 0x1a7   :  { %227 = vadd.xlane.f32.xlu0 %v226_v33 }
 0x1bb   :  { %396 = vrot.lane.b32.xlu0 %v1433_v16, %s1313_s11 }
 0x21a   :  { %v228_v35 = vpop.xlane.xlu0 %227 }
 0x21b   :  { %1144 = vrcp.f32 %v228_v35  ;;  %v240_v39 = vand.u32 2147483648, %v228_v35  ;;  %v238_v41 = vand.u32 2147483647, %v228_v35  ;;  %vm234_vm4 = vweird.f32 %v228_v35 }
 0x21d   :  { %v241_v43 = vor.u32 1.1754944e-38, %v240_v39  ;;  %vm239_vm6 = vcmp.eq.f32.partialorder %v238_v41, 8.507059e+37  ;;  %v474_v41 = vld [vmem:[%s1618_s6 + $0x10] sm:$0xff] }
 0x221   :  { %v1145_v36 = vpop.eup %1144 }
 0x222   :  { %v230_v37 = vmul.f32 %v1145_v36, %v228_v35  ;;  %vm235_vm3 = vweird.f32 %v1145_v36 }
 0x223   :  { %vm236_vm5 = vmor %vm234_vm4, %vm235_vm3 }
 0x224   :  { %v231_v38 = vsub.f32 1.0, %v230_v37 }
 0x226   :  { %v232_v40 = vmul.f32 %v1145_v36, %v231_v38  ;;  %v181_v38 = vpop.f32.mrf.mxu1 }
 0x227   :  { %v1501_v39 = vadd.f32 %v1427_v11, %v181_v38 }
 0x228   :  { %v233_v42 = vadd.f32 %v1145_v36, %v232_v40  ;;  %v349_v40 = vld [vmem:[%s1618_s6 + $0x8] sm:$0xff] }
 0x22a   :  { %v237_v44 = vsel %vm236_vm5, %v1145_v36, %v233_v42 }
 0x22b   :  { %v242_v45 = vsel %vm239_vm6, %v241_v43, %v237_v44  ;;  %v141_v44 = vadd.f32 %v1425_v10, %v1466_v48 }
 0x22c   :  { %v243_v46 = vmul.f32 %v1143_v32, %v242_v45 }
 0x22d   :  { %v397_v47 = vpop.permute.xlu0 %396  ;;  %v144_v45 = vmul.f32 0.35355338, %v141_v44 }
 0x22e   :  { %1093 = vmatmul.msk.f32.vlgmr.msra.gmra.mxu3 %vm193_vm1, %v243_v46  ;;  %1100 = vmatmul.msk.f32.vlgmr.msrb.gmra.mxu0 %vm193_vm1, %v397_v47 }
 0x22f   :  { %368 = vmatpush.msra.mxu3 %v349_v40 }
 0x236   :  { %1095 = vmatmul.msk.f32.vlgmr.msrb.gmra.mxu3 %vm193_vm1, %v272_v17 }
 0x237   :  { %493 = vmatpush.msrb.mxu3 %v474_v41 }
 0x2ab   :  { %v421_v49 = vpop.f32.mrf.mxu0 }
 0x2ac   :  { %v422_v50 = vadd.f32 %v421_v49, %v1449_v25 }
 0x2ae   :  { %v424_v51 = vsel %vm193_vm1, %v422_v50, -inf }
 0x2af   :  { %425 = vmax.xlane.f32.xlu2 %v424_v51 }
 0x2b1   :  { %v1470_v52 = vpop.f32.mrf.mxu3 }
 0x2b9   :  { %v296_v53 = vpop.f32.mrf.mxu3 }
 0x2ba   :  { %v297_v54 = vadd.f32 %v296_v53, %v1449_v25 }
 0x2bc   :  { %v299_v55 = vsel %vm193_vm1, %v297_v54, -inf }
 0x2bd   :  { %300 = vmax.xlane.f32.xlu1 %v299_v55 }
 0x2d6   :  { %323 = vrot.lane.b32.xlu1 %v1431_v15, %s1315_s0 }
 0x2de   :  { %499 = vrot.lane.b32.xlu1 %v1433_v16, %s1316_s3 }
 0x322   :  { %v426_v56 = vpop.xlane.xlu2 %425 }
 0x323   :  { %v427_v57 = vsub.f32 %v422_v50, %v426_v56 }
 0x325   :  { %v428_v58 = vmul.f32 1.442695, %v427_v57 }
 0x327   :  { %1146 = vpow2.f32 %v428_v58 }
 0x32d   :  { %v1147_v59 = vpop.eup %1146 }
 0x32e   :  { %v430_v60 = vsel %vm193_vm1, %v1147_v59, 0.0 }
 0x32f   :  { %431 = vadd.xlane.f32.xlu2 %v430_v60 }
 0x330   :  { %v301_v61 = vpop.xlane.xlu1 %300 }
 0x331   :  { %v302_v62 = vsub.f32 %v297_v54, %v301_v61 }
 0x333   :  { %v303_v63 = vmul.f32 1.442695, %v302_v62 }
 0x335   :  { %1148 = vpow2.f32 %v303_v63 }
 0x33b   :  { %v1149_v0 = vpop.eup %1148 }
 0x33c   :  { %v305_v1 = vsel %vm193_vm1, %v1149_v0, 0.0 }
 0x33d   :  { %306 = vadd.xlane.f32.xlu0 %v305_v1 }
 0x347   :  { %448 = vrot.lane.b32.xlu2 %v1431_v15, %s1317_s14 }
 0x348   :  { %v324_v2 = vpop.permute.xlu1 %323 }
 0x349   :  { %344 = vmatpush.msrb.mxu2 %v324_v2 }
 0x34b   :  { %391 = vmatpush.msra.mxu2 %v1491_v4 }
 0x350   :  { %v500_v37 = vpop.permute.xlu1 %499 }
 0x351   :  { %501 = vrot.lane.b32.xlu0 %v1431_v15, %s1316_s3 }
 0x359   :  { %695 = vrot.lane.b32.xlu0 %v1501_v39, %s1311_s2 }
 0x3a2   :  { %v432_v5 = vpop.xlane.xlu2 %431 }
 0x3a3   :  { %1150 = vrcp.f32 %v432_v5  ;;  %v444_v13 = vand.u32 2147483648, %v432_v5  ;;  %v442_v16 = vand.u32 2147483647, %v432_v5  ;;  %vm438_vm8 = vweird.f32 %v432_v5 }
 0x3a5   :  { %v445_v19 = vor.u32 1.1754944e-38, %v444_v13  ;;  %vm443_vm10 = vcmp.eq.f32.partialorder %v442_v16, 8.507059e+37 }
 0x3a9   :  { %v1151_v6 = vpop.eup %1150 }
 0x3aa   :  { %v434_v7 = vmul.f32 %v1151_v6, %v432_v5  ;;  %v449_v9 = vpop.permute.xlu2 %448  ;;  %vm439_vm7 = vweird.f32 %v1151_v6 }
 0x3ab   :  { %469 = vmatpush.msrb.mxu1 %v449_v9  ;;  %vm440_vm9 = vmor %vm438_vm8, %vm439_vm7 }
 0x3ac   :  { %v435_v12 = vsub.f32 1.0, %v434_v7 }
 0x3ae   :  { %v436_v14 = vmul.f32 %v1151_v6, %v435_v12 }
 0x3b0   :  { %v437_v17 = vadd.f32 %v1151_v6, %v436_v14  ;;  %v307_v18 = vpop.xlane.xlu0 %306 }
 0x3b1   :  { %1152 = vrcp.f32 %v307_v18  ;;  %v319_v27 = vand.u32 2147483648, %v307_v18  ;;  %v317_v29 = vand.u32 2147483647, %v307_v18  ;;  %vm313_vm12 = vweird.f32 %v307_v18 }
 0x3b2   :  { %v441_v20 = vsel %vm440_vm9, %v1151_v6, %v437_v17 }
 0x3b3   :  { %v446_v21 = vsel %vm443_vm10, %v445_v19, %v441_v20  ;;  %v320_v31 = vor.u32 1.1754944e-38, %v319_v27  ;;  %vm318_vm14 = vcmp.eq.f32.partialorder %v317_v29, 8.507059e+37 }
 0x3b4   :  { %v447_v22 = vmul.f32 %v1147_v59, %v446_v21 }
 0x3b6   :  { %1101 = vmatmul.msk.f32.vlgmr.msrb.gmra.mxu1 %vm193_vm1, %v447_v22 }
 0x3b7   :  { %v1153_v23 = vpop.eup %1152 }
 0x3b8   :  { %v309_v24 = vmul.f32 %v1153_v23, %v307_v18  ;;  %vm314_vm11 = vweird.f32 %v1153_v23 }
 0x3b9   :  { %vm315_vm13 = vmor %vm313_vm12, %vm314_vm11 }
 0x3ba   :  { %v310_v26 = vsub.f32 1.0, %v309_v24 }
 0x3bc   :  { %v311_v28 = vmul.f32 %v1153_v23, %v310_v26 }
 0x3be   :  { %v312_v30 = vadd.f32 %v1153_v23, %v311_v28 }
 0x3c0   :  { %v316_v32 = vsel %vm315_vm13, %v1153_v23, %v312_v30 }
 0x3c1   :  { %v321_v33 = vsel %vm318_vm14, %v320_v31, %v316_v32 }
 0x3c2   :  { %v322_v35 = vmul.f32 %v1149_v0, %v321_v33 }
 0x3c3   :  { %v502_v36 = vpop.permute.xlu0 %501 }
 0x3c4   :  { %1096 = vmatmul.msk.f32.vlgmr.msrb.gmra.mxu2 %vm193_vm1, %v322_v35 }
 0x3c5   :  { %1103 = vmatpush.xpose.msk.msrb.mxu2 %vm193_vm1, %v502_v36 }
 0x3cb   :  { %v696_v50 = vpop.permute.xlu0 %695 }
 0x3cc   :  { %1098 = vmatmul.msk.f32.vlgmr.msra.gmra.mxu2 %vm193_vm1, %v1470_v52 }
 0x3cd   :  { %716 = vmatpush.msra.mxu2 %v696_v50 }
 0x3d4   :  { %1104 = vmatmul.msk.f32.vlgmr.msrb.gmra.mxu2 %vm193_vm1, %v500_v37  ;;  %v1548_v37 = vld [vmem:[%s1618_s6 + $0x18] sm:$0xff] }
 0x3d5   :  { %842 = vmatpush.msrb.mxu2 %v1491_v4  ;;  %596 = vmatpush.msra.mxu1 %v1548_v37 }
 0x433   :  { %v471_v11 = vpop.f32.mrf.mxu1 }
 0x447   :  { %v346_v42 = vpop.f32.mrf.mxu2 }
 0x448   :  { %1097 = vmatmul.msk.f32.vlgmr.msra.gmra.mxu3 %vm193_vm1, %v346_v42 }
 0x449   :  { %1107 = vmatpush.xpose.msk.msra.mxu3 %vm193_vm1, %v1501_v39 }
 0x44f   :  { %v393_v43 = vpop.f32.mrf.mxu2 }
 0x450   :  { %1102 = vmatmul.msk.f32.vlgmr.msrb.gmra.mxu3 %vm193_vm1, %v471_v11 }
 0x451   :  { %819 = vmatpush.msrb.mxu3 %v349_v40 }
 0x457   :  { %v524_v46 = vpop.f32.mrf.mxu2 }
 0x458   :  { %v525_v47 = vadd.f32 %v524_v46, %v1449_v25  ;;  %1108 = vmatmul.msk.f32.vlgmr.msra.gmra.mxu3 %vm193_vm1, %v144_v45 }
 0x459   :  { %944 = vmatpush.msra.mxu3 %v474_v41 }
 0x45a   :  { %v527_v49 = vsel %vm193_vm1, %v525_v47, -inf }
 0x45b   :  { %528 = vmax.xlane.f32.xlu0 %v527_v49 }
 0x46f   :  { %722 = vrot.lane.b32.xlu0 %v144_v45, %s1312_s4 }
 0x477   :  { %950 = vrot.lane.b32.xlu0 %v144_v45, %s1316_s3 }
 0x4cb   :  { %v370_v51 = vpop.f32.mrf.mxu3 }
 0x4cc   :  { %v394_v10 = vadd.f32 %v393_v43, %v370_v51 }
 0x4ce   :  { %v529_v48 = vpop.xlane.xlu0 %528 }
 0x4cf   :  { %v530_v54 = vsub.f32 %v525_v47, %v529_v48 }
 0x4d1   :  { %v531_v55 = vmul.f32 1.442695, %v530_v54 }
 0x4d3   :  { %v495_v52 = vpop.f32.mrf.mxu3  ;;  %1154 = vpow2.f32 %v531_v55 }
 0x4d4   :  { %v1523_v53 = vadd.f32 %v495_v52, %v394_v10 }
 0x4d9   :  { %v1155_v59 = vpop.eup %1154 }
 0x4da   :  { %v533_v60 = vsel %vm193_vm1, %v1155_v59, 0.0 }
 0x4db   :  { %v668_v56 = vpop.f32.mrf.mxu3 }
 0x4dc   :  { %v669_v57 = vadd.f32 %v668_v56, %v1449_v25 }
 0x4de   :  { %v671_v58 = vsel %vm193_vm1, %v669_v57, -inf }
 0x4df   :  { %672 = vmax.xlane.f32.xlu2 %v671_v58 }
 0x4e1   :  { %v723_v35 = vpop.permute.xlu0 %722 }
 0x4e7   :  { %534 = vadd.xlane.f32.xlu2 %v533_v60 }
 0x4e9   :  { %v951_v41 = vpop.permute.xlu0 %950 }
 0x4ff   :  { %724 = vrot.lane.b32.xlu2 %v1501_v39, %s1312_s4 }
 0x507   :  { %952 = vrot.lane.b32.xlu2 %v1501_v39, %s1316_s3 }
 0x552   :  { %v673_v61 = vpop.xlane.xlu2 %672 }
 0x553   :  { %v674_v62 = vsub.f32 %v669_v57, %v673_v61 }
 0x555   :  { %v675_v63 = vmul.f32 1.442695, %v674_v62 }
 0x557   :  { %1156 = vpow2.f32 %v675_v63 }
 0x55a   :  { %v535_v2 = vpop.xlane.xlu2 %534 }
 0x55b   :  { %1158 = vrcp.f32 %v535_v2  ;;  %v547_v20 = vand.u32 2147483648, %v535_v2  ;;  %vm541_vm5 = vweird.f32 %v535_v2  ;;  %v545_v22 = vand.u32 2147483647, %v535_v2 }
 0x55d   :  { %v1157_v0 = vpop.eup %1156  ;;  %v548_v28 = vor.u32 1.1754944e-38, %v547_v20  ;;  %vm546_vm8 = vcmp.eq.f32.partialorder %v545_v22, 8.507059e+37 }
 0x55e   :  { %v677_v1 = vsel %vm193_vm1, %v1157_v0, 0.0 }
 0x55f   :  { %678 = vadd.xlane.f32.xlu1 %v677_v1 }
 0x561   :  { %v1159_v3 = vpop.eup %1158 }
 0x562   :  { %v537_v5 = vmul.f32 %v1159_v3, %v535_v2  ;;  %v725_v13 = vpop.permute.xlu2 %724  ;;  %vm542_vm2 = vweird.f32 %v1159_v3 }
 0x563   :  { %vm543_vm7 = vmor %vm541_vm5, %vm542_vm2 }
 0x564   :  { %v538_v6 = vsub.f32 1.0, %v537_v5 }
 0x566   :  { %v539_v12 = vmul.f32 %v1159_v3, %v538_v6 }
 0x568   :  { %v540_v18 = vadd.f32 %v1159_v3, %v539_v12 }
 0x56a   :  { %v544_v26 = vsel %vm543_vm7, %v1159_v3, %v540_v18  ;;  %v953_v29 = vpop.permute.xlu2 %952 }
 0x56b   :  { %v549_v30 = vsel %vm546_vm8, %v548_v28, %v544_v26 }
 0x56c   :  { %v550_v32 = vmul.f32 %v1155_v59, %v549_v30 }
 0x578   :  { %551 = vrot.lane.b32.xlu1 %v1431_v15, %s1318_s20 }
 0x580   :  { %849 = vrot.lane.b32.xlu1 %v1501_v39, %s1313_s11 }
 0x588   :  { %847 = vrot.lane.b32.xlu1 %v144_v45, %s1313_s11 }
 0x5d2   :  { %v679_v4 = vpop.xlane.xlu1 %678 }
 0x5d3   :  { %1160 = vrcp.f32 %v679_v4  ;;  %v691_v16 = vand.u32 2147483648, %v679_v4  ;;  %v689_v15 = vand.u32 2147483647, %v679_v4  ;;  %vm685_vm3 = vweird.f32 %v679_v4 }
 0x5d5   :  { %v692_v21 = vor.u32 1.1754944e-38, %v691_v16  ;;  %vm690_vm6 = vcmp.eq.f32.partialorder %v689_v15, 8.507059e+37 }
 0x5d9   :  { %v1161_v7 = vpop.eup %1160 }
 0x5da   :  { %v681_v9 = vmul.f32 %v1161_v7, %v679_v4  ;;  %vm686_vm15 = vweird.f32 %v1161_v7 }
 0x5db   :  { %vm687_vm4 = vmor %vm685_vm3, %vm686_vm15 }
 0x5dc   :  { %v682_v14 = vsub.f32 1.0, %v681_v9 }
 0x5de   :  { %v683_v17 = vmul.f32 %v1161_v7, %v682_v14 }
 0x5e0   :  { %v684_v19 = vadd.f32 %v1161_v7, %v683_v17 }
 0x5e2   :  { %v688_v23 = vsel %vm687_vm4, %v1161_v7, %v684_v19 }
 0x5e3   :  { %v693_v24 = vsel %vm690_vm6, %v692_v21, %v688_v23 }
 0x5e4   :  { %v694_v27 = vmul.f32 %v1157_v0, %v693_v24  ;;  %v1570_v0 = vld [vmem:[#allocation6] ss:$0 sm:$0xff] }
 0x5e6   :  { %1109 = vmatmul.msk.f32.vlgmr.msra.gmra.mxu2 %vm193_vm1, %v694_v27 }
 0x5e7   :  { %1119 = vmatpush.xpose.msk.msra.mxu2 %vm193_vm1, %v953_v29 }
 0x5ea   :  { %v552_v31 = vpop.permute.xlu1 %551 }
 0x5eb   :  { %572 = vmatpush.msra.mxu0 %v552_v31 }
 0x5ec   :  { %1105 = vmatmul.msk.f32.vlgmr.msra.gmra.mxu0 %vm193_vm1, %v550_v32 }
 0x5ed   :  { %1110 = vmatpush.xpose.msk.msrb.mxu0 %vm193_vm1, %v725_v13 }
 0x5f2   :  { %v850_v33 = vpop.permute.xlu1 %849 }
 0x5f3   :  { %1115 = vmatpush.xpose.msk.msra.mxu0 %vm193_vm1, %v850_v33 }
 0x5f4   :  { %1111 = vmatmul.msk.f32.vlgmr.msrb.gmra.mxu0 %vm193_vm1, %v723_v35 }
 0x5fa   :  { %v848_v36 = vpop.permute.xlu1 %847 }
 0x5fc   :  { %1116 = vmatmul.msk.f32.vlgmr.msra.gmra.mxu0 %vm193_vm1, %v848_v36  ;;  %v1319_v36 = vmov 32.0  }
 0x669   :  { %v574_v38 = vpop.f32.mrf.mxu0  ;;  %v718_v40 = vpop.f32.mrf.mxu2 }
 0x66a   :  { %1106 = vmatmul.msk.f32.vlgmr.msra.gmra.mxu1 %vm193_vm1, %v574_v38  ;;  %1114 = vmatmul.msk.f32.vlgmr.msrb.gmra.mxu2 %vm193_vm1, %v718_v40 }
 0x671   :  { %v747_v42 = vpop.f32.mrf.mxu0 }
 0x672   :  { %v748_v11 = vadd.f32 %v747_v42, %v1449_v25  ;;  %1120 = vmatmul.msk.f32.vlgmr.msra.gmra.mxu2 %vm193_vm1, %v951_v41 }
 0x674   :  { %v750_v43 = vsel %vm193_vm1, %v748_v11, -inf }
 0x675   :  { %751 = vmax.xlane.f32.xlu2 %v750_v43 }
 0x679   :  { %v872_v44 = vpop.f32.mrf.mxu0 }
 0x67a   :  { %v873_v45 = vadd.f32 %v872_v44, %v1449_v25 }
 0x67c   :  { %v875_v46 = vsel %vm193_vm1, %v873_v45, -inf }
 0x67d   :  { %876 = vmax.xlane.f32.xlu1 %v875_v46 }
 0x6e7   :  { %v598_v61 = vpop.f32.mrf.mxu1 }
 0x6e8   :  { %v752_v47 = vpop.xlane.xlu2 %751  ;;  %v601_v62 = vadd.f32 %v598_v61, %v1523_v53 }
 0x6e9   :  { %v753_v49 = vsub.f32 %v748_v11, %v752_v47 }
 0x6ea   :  { %v602_v63 = vadd.f32 %v601_v62, %v1417_v8 }
 0x6eb   :  { %v754_v50 = vmul.f32 1.442695, %v753_v49 }
 0x6ed   :  { %1162 = vpow2.f32 %v754_v50  ;;  %v1558_v51 = vpop.f32.mrf.mxu2 }
 0x6f0   :  { %v877_v10 = vpop.xlane.xlu1 %876 }
 0x6f1   :  { %v878_v48 = vsub.f32 %v873_v45, %v877_v10 }
 0x6f3   :  { %v1163_v52 = vpop.eup %1162  ;;  %v879_v54 = vmul.f32 1.442695, %v878_v48 }
 0x6f4   :  { %v756_v55 = vsel %vm193_vm1, %v1163_v52, 0.0 }
 0x6f5   :  { %1164 = vpow2.f32 %v879_v54  ;;  %757 = vadd.xlane.f32.xlu2 %v756_v55  ;;  %v975_v56 = vpop.f32.mrf.mxu2 }
 0x6f6   :  { %v976_v57 = vadd.f32 %v975_v56, %v1449_v25  ;;  %v1573_v25 = vadd.f32 %v1570_v0, %v602_v63 }
 0x6f8   :  { %v978_v58 = vsel %vm193_vm1, %v976_v57, -inf  ;;  %v607_v1 = vsel %vm113_vm0, %v1573_v25, 0.0 }
 0x6f9   :  { %979 = vmax.xlane.f32.xlu0 %v978_v58 }
 0x6fb   :  { %v1165_v59 = vpop.eup %1164 }
 0x6fc   :  { %v881_v60 = vsel %vm193_vm1, %v1165_v59, 0.0 }
 0x6fd   :  { %882 = vadd.xlane.f32.xlu1 %v881_v60 }
 0x70d   :  { %774 = vrot.lane.b32.xlu2 %v1501_v39, %s1315_s0 }
 0x716   :  { %899 = vrot.lane.b32.xlu1 %v1501_v39, %s1317_s14 }
 0x736   :  { %608 = vadd.xlane.f32.xlu2 %v607_v1 }
 0x768   :  { %v758_v2 = vpop.xlane.xlu2 %757 }
 0x769   :  { %1166 = vrcp.f32 %v758_v2  ;;  %v770_v12 = vand.u32 2147483648, %v758_v2  ;;  %v768_v14 = vand.u32 2147483647, %v758_v2  ;;  %vm764_vm10 = vweird.f32 %v758_v2 }
 0x76b   :  { %v771_v15 = vor.u32 1.1754944e-38, %v770_v12  ;;  %vm769_vm12 = vcmp.eq.f32.partialorder %v768_v14, 8.507059e+37 }
 0x76c   :  { %v980_v3 = vpop.xlane.xlu0 %979 }
 0x76d   :  { %v981_v4 = vsub.f32 %v976_v57, %v980_v3 }
 0x76f   :  { %v1167_v5 = vpop.eup %1166  ;;  %v982_v6 = vmul.f32 1.442695, %v981_v4 }
 0x770   :  { %v760_v7 = vmul.f32 %v1167_v5, %v758_v2  ;;  %v883_v9 = vpop.xlane.xlu1 %882  ;;  %v775_v53 = vpop.permute.xlu2 %774  ;;  %vm765_vm9 = vweird.f32 %v1167_v5 }
 0x771   :  { %1168 = vpow2.f32 %v982_v6  ;;  %795 = vmatpush.msrb.mxu1 %v775_v53  ;;  %vm766_vm11 = vmor %vm764_vm10, %vm765_vm9  ;;  %v895_v28 = vand.u32 2147483648, %v883_v9  ;;  %vm889_vm14 = vweird.f32 %v883_v9  ;;  %v893_v29 = vand.u32 2147483647, %v883_v9 }
 0x772   :  { %v761_v8 = vsub.f32 1.0, %v760_v7  ;;  %1170 = vrcp.f32 %v883_v9 }
 0x773   :  { %v896_v31 = vor.u32 1.1754944e-38, %v895_v28  ;;  %vm894_vm2 = vcmp.eq.f32.partialorder %v893_v29, 8.507059e+37  ;;  %1172 = vrcp.f32 %v1319_v36 }
 0x774   :  { %v762_v13 = vmul.f32 %v1167_v5, %v761_v8  ;;  %v1141_v8 = vld [vmem:[#allocation9] ss:$0 sm:$0xff] }
 0x776   :  { %v763_v16 = vadd.f32 %v1167_v5, %v762_v13 }
 0x777   :  { %v1577_v17 = vpop.eup %1168 }
 0x778   :  { %v1171_v18 = vpop.eup %1170  ;;  %v767_v19 = vsel %vm766_vm11, %v1167_v5, %v763_v16  ;;  %v984_v20 = vsel %vm193_vm1, %v1577_v17, 0.0 }
 0x779   :  { %v772_v21 = vsel %vm769_vm12, %v771_v15, %v767_v19  ;;  %v885_v22 = vmul.f32 %v1171_v18, %v883_v9  ;;  %985 = vadd.xlane.f32.xlu0 %v984_v20  ;;  %vm890_vm13 = vweird.f32 %v1171_v18  ;;  %v1173_v38 = vpop.eup %1172  ;;  %v1140_v9 = vld [vmem:[#allocation7] ss:$0 sm:$0xff] }
 0x77a   :  { %v773_v23 = vmul.f32 %v1163_v52, %v772_v21  ;;  %vm891_vm15 = vmor %vm889_vm14, %vm890_vm13  ;;  %v611_v40 = vmul.f32 32.0, %v1173_v38  ;;  %vm615_vm3 = vweird.f32 %v1173_v38 }
 0x77b   :  { %v886_v24 = vsub.f32 1.0, %v885_v22 }
 0x77c   :  { %1112 = vmatmul.msk.f32.vlgmr.msrb.gmra.mxu1 %vm193_vm1, %v773_v23  ;;  %v612_v41 = vsub.f32 1.0, %v611_v40 }
 0x77d   :  { %v887_v26 = vmul.f32 %v1171_v18, %v886_v24 }
 0x77e   :  { %v613_v42 = vmul.f32 %v1173_v38, %v612_v41 }
 0x77f   :  { %v888_v27 = vadd.f32 %v1171_v18, %v887_v26 }
 0x780   :  { %v614_v11 = vadd.f32 %v1173_v38, %v613_v42 }
 0x781   :  { %v892_v30 = vsel %vm891_vm15, %v1171_v18, %v888_v27 }
 0x782   :  { %v897_v32 = vsel %vm894_vm2, %v896_v31, %v892_v30  ;;  %v1586_v43 = vsel %vm615_vm3, %v1173_v38, %v614_v11 }
 0x783   :  { %v898_v35 = vmul.f32 %v1165_v59, %v897_v32 }
 0x788   :  { %v900_v33 = vpop.permute.xlu1 %899 }
 0x789   :  { %920 = vmatpush.msra.mxu1 %v900_v33 }
 0x78a   :  { %1117 = vmatmul.msk.f32.vlgmr.msra.gmra.mxu1 %vm193_vm1, %v898_v35 }
 0x78b   :  { %1047 = vmatpush.msrb.mxu1 %v1548_v37 }
 0x78d   :  { %1002 = vrot.lane.b32.xlu0 %v1501_v39, %s1318_s20 }
 0x7a9   :  { %v609_v44 = vpop.xlane.xlu2 %608 }
 0x7aa   :  { %v617_v45 = vmul.f32 %v1586_v43, %v609_v44 }
 0x7ac   :  { %v618_v46 = vsub.f32 %v1573_v25, %v617_v45 }
 0x7ae   :  { %v619_v47 = vmul.f32 %v618_v46, %v618_v46 }
 0x7b0   :  { %v620_v37 = vsel %vm113_vm0, %v619_v47, 0.0 }
 0x7b1   :  { %621 = vadd.xlane.f32.xlu1 %v620_v37 }
 0x7ec   :  { %v986_v39 = vpop.xlane.xlu0 %985 }
 0x7ed   :  { %1174 = vrcp.f32 %v986_v39  ;;  %v998_v48 = vand.u32 2147483648, %v986_v39  ;;  %v996_v54 = vand.u32 2147483647, %v986_v39  ;;  %vm992_vm5 = vweird.f32 %v986_v39 }
 0x7ef   :  { %v999_v57 = vor.u32 1.1754944e-38, %v998_v48  ;;  %vm997_vm7 = vcmp.eq.f32.partialorder %v996_v54, 8.507059e+37 }
 0x7f3   :  { %v1175_v49 = vpop.eup %1174 }
 0x7f4   :  { %v988_v50 = vmul.f32 %v1175_v49, %v986_v39  ;;  %vm993_vm4 = vweird.f32 %v1175_v49 }
 0x7f5   :  { %vm994_vm6 = vmor %vm992_vm5, %vm993_vm4 }
 0x7f6   :  { %v989_v10 = vsub.f32 1.0, %v988_v50 }
 0x7f8   :  { %v990_v52 = vmul.f32 %v1175_v49, %v989_v10 }
 0x7f9   :  { %v797_v55 = vpop.f32.mrf.mxu1 }
 0x7fa   :  { %v991_v56 = vadd.f32 %v1175_v49, %v990_v52  ;;  %1113 = vmatmul.msk.f32.vlgmr.msrb.gmra.mxu3 %vm193_vm1, %v797_v55 }
 0x7fc   :  { %v995_v58 = vsel %vm994_vm6, %v1175_v49, %v991_v56 }
 0x7fd   :  { %v1000_v59 = vsel %vm997_vm7, %v999_v57, %v995_v58 }
 0x7fe   :  { %v1001_v60 = vmul.f32 %v1577_v17, %v1000_v59 }
 0x7ff   :  { %v1003_v61 = vpop.permute.xlu0 %1002 }
 0x800   :  { %1023 = vmatpush.msrb.mxu0 %v1003_v61 }
 0x801   :  { %1121 = vmatmul.msk.f32.vlgmr.msrb.gmra.mxu0 %vm193_vm1, %v1001_v60 }
 0x807   :  { %v922_v62 = vpop.f32.mrf.mxu1 }
 0x808   :  { %1118 = vmatmul.msk.f32.vlgmr.msra.gmra.mxu3 %vm193_vm1, %v922_v62 }
 0x824   :  { %v622_v63 = vpop.xlane.xlu1 %621 }
 0x825   :  { %v623_v25 = vmul.f32 %v622_v63, %v1586_v43 }
 0x827   :  { %v624_v1 = vadd.f32 1e-05, %v623_v25 }
 0x829   :  { %1176 = vrsqrt.f32 %v624_v1  ;;  %vm631_vm9 = vweird.f32 %v624_v1 }
 0x82f   :  { %v1177_v2 = vpop.eup %1176 }
 0x830   :  { %v626_v3 = vmul.f32 %v1177_v2, %v624_v1  ;;  %vm632_vm8 = vweird.f32 %v1177_v2 }
 0x831   :  { %vm633_vm10 = vmor %vm631_vm9, %vm632_vm8 }
 0x832   :  { %v627_v4 = vmul.f32 %v1177_v2, %v626_v3 }
 0x834   :  { %v628_v5 = vmul.f32 0.5, %v627_v4 }
 0x836   :  { %v629_v6 = vsub.f32 1.5, %v628_v5 }
 0x838   :  { %v630_v7 = vmul.f32 %v1177_v2, %v629_v6 }
 0x83a   :  { %v634_v53 = vsel %vm633_vm10, %v1177_v2, %v630_v7 }
 0x83b   :  { %v635_v12 = vmul.f32 %v634_v53, %v618_v46 }
 0x83d   :  { %v639_v13 = vmul.f32 %v1140_v9, %v635_v12 }
 0x83f   :  { %v643_v14 = vadd.f32 %v1141_v8, %v639_v13 }
 0x841   :  { %644 = vst.msk [vmem:[%s1622_s10] sm:$0xff] %vm113_vm0, %v643_v14 }
 0x87d   :  { %v821_v17 = vpop.f32.mrf.mxu3 }
 0x87e   :  { %v1025_v16 = vpop.f32.mrf.mxu0  ;;  %v845_v18 = vadd.f32 %v1558_v51, %v821_v17 }
 0x87f   :  { %1122 = vmatmul.msk.f32.vlgmr.msrb.gmra.mxu1 %vm193_vm1, %v1025_v16 }
 0x88b   :  { %v946_v15 = vpop.f32.mrf.mxu3 }
 0x88c   :  { %v949_v19 = vadd.f32 %v946_v15, %v845_v18 }
 0x8fc   :  { %v1049_v20 = vpop.f32.mrf.mxu1 }
 0x8fd   :  { %v1052_v21 = vadd.f32 %v1049_v20, %v949_v19 }
 0x8ff   :  { %v1053_v22 = vadd.f32 %v1052_v21, %v1459_v34 }
 0x901   :  { %v1054_v23 = vadd.f32 %v1570_v0, %v1053_v22 }
 0x903   :  { %v1055_v24 = vsel %vm113_vm0, %v1054_v23, 0.0 }
 0x904   :  { %1056 = vadd.xlane.f32.xlu0 %v1055_v24 }
 0x977   :  { %v1057_v26 = vpop.xlane.xlu0 %1056 }
 0x978   :  { %v1058_v27 = vmul.f32 %v1057_v26, %v1586_v43 }
 0x97a   :  { %v1059_v28 = vsub.f32 %v1054_v23, %v1058_v27 }
 0x97c   :  { %v1060_v29 = vmul.f32 %v1059_v28, %v1059_v28 }
 0x97e   :  { %v1061_v30 = vsel %vm113_vm0, %v1060_v29, 0.0 }
 0x97f   :  { %1062 = vadd.xlane.f32.xlu2 %v1061_v30 }
 0x9f2   :  { %v1063_v31 = vpop.xlane.xlu2 %1062 }
 0x9f3   :  { %v1064_v51 = vmul.f32 %v1063_v31, %v1586_v43 }
 0x9f5   :  { %v1065_v32 = vadd.f32 1e-05, %v1064_v51 }
 0x9f7   :  { %1178 = vrsqrt.f32 %v1065_v32  ;;  %vm1072_vm11 = vweird.f32 %v1065_v32 }
 0x9fd   :  { %v1179_v33 = vpop.eup %1178 }
 0x9fe   :  { %v1067_v34 = vmul.f32 %v1179_v33, %v1065_v32  ;;  %vm1073_vm1 = vweird.f32 %v1179_v33 }
 0x9ff   :  { %vm1074_vm12 = vmor %vm1072_vm11, %vm1073_vm1 }
 0xa00   :  { %v1068_v35 = vmul.f32 %v1179_v33, %v1067_v34 }
 0xa02   :  { %v1069_v0 = vmul.f32 0.5, %v1068_v35 }
 0xa04   :  { %v1070_v36 = vsub.f32 1.5, %v1069_v0 }
 0xa06   :  { %v1071_v38 = vmul.f32 %v1179_v33, %v1070_v36 }
 0xa08   :  { %v1075_v40 = vsel %vm1074_vm12, %v1179_v33, %v1071_v38 }
 0xa09   :  { %v1076_v41 = vmul.f32 %v1075_v40, %v1059_v28 }
 0xa0b   :  { %v1077_v42 = vmul.f32 %v1140_v9, %v1076_v41 }
 0xa0d   :  { %v1078_v11 = vadd.f32 %v1141_v8, %v1077_v42 }
 0xa0f   :  { %1079 = vst.msk [vmem:[%s1622_s10 + $0x8] sm:$0xff] %vm113_vm0, %v1078_v11 }
 0xa10   :  { %1084 = vsyncpa [#allocation3], 1 }
 0xa11   :  { %1085 = vsyncpa [#allocation5], 1 }
 0xa12   :  { %1086 = vsyncpa [#allocation8], 1 }

// kernel: _lambda_.17
= control target key start
LH: loop header
LB: loop body
LE: loop exit
PB: predicated region body
PF: predicated region fallthrough
CT: control target
= control target key end

     0   :  { %12 = vsyncpa [#allocation3], 0  ;;  %s487_s0 = inlined_call_operand.vmem [shape: f32[16,32], index: 0, kind: input, shape index: {}]   ;;  %s488_s1 = inlined_call_operand.vmem [shape: f32[32,64], index: 1, kind: input, shape index: {}]   ;;  %s489_s2 = inlined_call_operand.hbm [shape: f32[1,64], index: 2, kind: input, shape index: {}]   ;;  %s490_s3 = inlined_call_operand.vmem [shape: f32[64,32], index: 3, kind: input, shape index: {}]   ;;  %s491_s4 = inlined_call_operand.hbm [shape: f32[1,32], index: 4, kind: input, shape index: {}]   ;;  %s492_s5 = inlined_call_operand.hbm [shape: f32[1,32], index: 5, kind: input, shape index: {}]   ;;  %s493_s6 = inlined_call_operand.hbm [shape: f32[1,32], index: 6, kind: input, shape index: {}]   ;;  %s494_s7 = inlined_call_operand.vmem [shape: f32[16,32], index: 7, kind: output, shape index: {}]  }
   0x1   :  { %13 = vsyncpa [#allocation5], 0  ;;  %s37_s26 = sshll.u32 %s491_s4, 4  ;;  %s38_s26 = int_to_ptr.hbm [resolvable:$true] %s37_s26 }
   0x2   :  { %14 = vsyncpa [#allocation8], 0  ;;  %s374_s27 = smov [#allocation4]   ;;  %s24_s8 = sshll.u32 %s489_s2, 4  ;;  %s25_s8 = int_to_ptr.hbm [resolvable:$true] %s24_s8 }
   0x3   :  { %s39_s28 = sshll.u32 %s374_s27, 4  ;;  %s375_s9 = smov [#allocation2]   ;;  %s40_s28 = int_to_ptr.vmem [resolvable:$true] %s39_s28 }
   0x4   :  { %42 = dma.hbm_to_vmem [thread:$0]  %s38_s26, 16, %s40_s28, [#allocation5]  }
   0x5   :  { %s26_s10 = sshll.u32 %s375_s9, 4  ;;  %s48_s13 = sshll.u32 %s492_s5, 4  ;;  %s27_s10 = int_to_ptr.vmem [resolvable:$true] %s26_s10  ;;  %s49_s13 = int_to_ptr.hbm [resolvable:$true] %s48_s13 }
   0x6   :  { %29 = dma.hbm_to_vmem [thread:$0]  %s25_s8, 16, %s27_s10, [#allocation3]  }
   0x7   :  { %s59_s15 = sshll.u32 %s493_s6, 4  ;;  %s376_s16 = smov [#allocation6]   ;;  %s60_s15 = int_to_ptr.hbm [resolvable:$true] %s59_s15 }
   0x8   :  { %s50_s17 = sshll.u32 %s376_s16, 4  ;;  %s377_s2 = smov [#allocation7]   ;;  %s51_s17 = int_to_ptr.vmem [resolvable:$true] %s50_s17 }
   0x9   :  { %53 = dma.hbm_to_vmem [thread:$0]  %s49_s13, 16, %s51_s17, [#allocation5]  }
   0xa   :  { %s61_s18 = sshll.u32 %s377_s2, 4  ;;  %s62_s18 = int_to_ptr.vmem [resolvable:$true] %s61_s18 }
   0xb   :  { %64 = dma.hbm_to_vmem [thread:$0]  %s60_s15, 16, %s62_s18, [#allocation8]  }
   0xc   :  { %368 = dma.done.wait [#allocation3], 16  }
   0xd   :  { %369 = vsyncadd [#allocation3], 4294967280 }
   0xe   :  { %370 = dma.done.wait [#allocation5], 32  }
   0xf   :  { %371 = vsyncadd [#allocation5], 4294967264 }
  0x10   :  { %372 = dma.done.wait [#allocation8], 16  }
  0x11   :  { %373 = vsyncadd [#allocation8], 4294967280  ;;  %v86_v0 = vld [vmem:[%s488_s1 + $0x18] sm:$0xff]  ;;  %v85_v1 = vld [vmem:[%s488_s1 + $0x10] sm:$0xff]  ;;  %vm91_vm0 = vcmask 261120   ;;  %vm131_vm1 = vcmask 523264  }
  0x12   :  { %110 = vmatpush.msra.mxu0 %v86_v0  ;;  %245 = vmatpush.msra.mxu3 %v86_v0  ;;  %v84_v2 = vld [vmem:[%s488_s1 + $0x8] sm:$0xff]  ;;  %v130_v3 = vld [vmem:[%s490_s3 + $0x38] sm:$0xff]  ;;  %v129_v4 = vld [vmem:[%s490_s3 + $0x30] sm:$0xff]  ;;  %v378_v30 = vmov 32.0  }
  0x13   :  { %v83_v5 = vld [vmem:[%s488_s1] sm:$0xff]  ;;  %146 = vmatpush.msra.mxu1 %v130_v3  ;;  %249 = vmatpush.msra.mxu2 %v130_v3  ;;  %v82_v7 = vld [vmem:[%s487_s0 + $0x8] sm:$0xff]  ;;  %v126_v10 = vld [vmem:[%s490_s3 + $0x18] sm:$0xff]  ;;  %266 = vrcp.f32 %v378_v30 }
  0x14   :  { %111 = vmatpush.msra.mxu0 %v85_v1  ;;  %246 = vmatpush.msra.mxu3 %v85_v1  ;;  %v81_v6 = vld [vmem:[%s487_s0] sm:$0xff]  ;;  %v128_v8 = vld [vmem:[%s490_s3 + $0x28] sm:$0xff]  ;;  %v125_v11 = vld [vmem:[%s490_s3 + $0x10] sm:$0xff] }
  0x15   :  { %147 = vmatpush.msra.mxu1 %v129_v4  ;;  %250 = vmatpush.msra.mxu2 %v129_v4  ;;  %v127_v9 = vld [vmem:[%s490_s3 + $0x20] sm:$0xff]  ;;  %v124_v12 = vld [vmem:[%s490_s3 + $0x8] sm:$0xff] }
  0x16   :  { %112 = vmatpush.msra.mxu0 %v84_v2  ;;  %247 = vmatpush.msra.mxu3 %v84_v2  ;;  %v123_v13 = vld [vmem:[%s490_s3] sm:$0xff] }
  0x17   :  { %148 = vmatpush.msra.mxu1 %v128_v8  ;;  %251 = vmatpush.msra.mxu2 %v128_v8  ;;  %v262_v14 = vld [vmem:[#allocation2] ss:$0 sm:$0xff]  ;;  %v263_v21 = vld [vmem:[#allocation4] ss:$0 sm:$0xff]  ;;  %v264_v59 = vld [vmem:[#allocation6] ss:$0 sm:$0xff] }
  0x18   :  { %113 = vmatpush.msra.mxu0 %v83_v5  ;;  %248 = vmatpush.msra.mxu3 %v83_v5  ;;  %v265_v62 = vld [vmem:[#allocation7] ss:$0 sm:$0xff] }
  0x19   :  { %241 = vmatmul.msk.f32.vlgmr.msra.gmra.mxu0 %vm91_vm0, %v81_v6  ;;  %242 = vmatmul.msk.f32.vlgmr.msra.gmra.mxu3 %vm91_vm0, %v82_v7  ;;  %v267_v31 = vpop.eup %266 }
  0x1a   :  { %149 = vmatpush.msra.mxu1 %v127_v9  ;;  %252 = vmatpush.msra.mxu2 %v127_v9  ;;  %v176_v32 = vmul.f32 32.0, %v267_v31  ;;  %vm180_vm2 = vweird.f32 %v267_v31 }
  0x1c   :  { %150 = vmatpush.msra.mxu1 %v126_v10  ;;  %253 = vmatpush.msra.mxu2 %v126_v10  ;;  %v177_v33 = vsub.f32 1.0, %v176_v32 }
  0x1e   :  { %151 = vmatpush.msra.mxu1 %v125_v11  ;;  %254 = vmatpush.msra.mxu2 %v125_v11  ;;  %v178_v34 = vmul.f32 %v267_v31, %v177_v33 }
  0x20   :  { %152 = vmatpush.msra.mxu1 %v124_v12  ;;  %255 = vmatpush.msra.mxu2 %v124_v12  ;;  %v179_v35 = vadd.f32 %v267_v31, %v178_v34 }
  0x22   :  { %153 = vmatpush.msra.mxu1 %v123_v13  ;;  %256 = vmatpush.msra.mxu2 %v123_v13  ;;  %v181_v36 = vsel %vm180_vm2, %v267_v31, %v179_v35 }
  0x96   :  { %v115_v15 = vpop.f32.mrf.mxu0 }
  0x97   :  { %v116_v16 = vadd.f32 %v262_v14, %v115_v15 }
  0x99   :  { %v121_v17 = vmax.f32 %v116_v16, 0.0 }
  0x9b   :  { %243 = vmatmul.msk.f32.vlgmr.msra.gmra.mxu1 %vm131_vm1, %v121_v17 }
  0x9c   :  { %v118_v18 = vpop.f32.mrf.mxu3 }
  0x9d   :  { %v119_v19 = vadd.f32 %v262_v14, %v118_v18 }
  0x9f   :  { %v122_v20 = vmax.f32 %v119_v19, 0.0 }
  0xa1   :  { %244 = vmatmul.msk.f32.vlgmr.msra.gmra.mxu2 %vm131_vm1, %v122_v20 }
 0x118   :  { %v155_v22 = vpop.f32.mrf.mxu1 }
 0x119   :  { %v161_v23 = vadd.f32 %v155_v22, %v81_v6 }
 0x11b   :  { %v167_v24 = vadd.f32 %v263_v21, %v161_v23 }
 0x11d   :  { %v169_v25 = vsel %vm91_vm0, %v167_v24, 0.0 }
 0x11e   :  { %170 = vadd.xlane.f32.xlu0 %v169_v25 }
 0x124   :  { %v158_v26 = vpop.f32.mrf.mxu2 }
 0x125   :  { %v162_v27 = vadd.f32 %v158_v26, %v82_v7 }
 0x127   :  { %v168_v28 = vadd.f32 %v263_v21, %v162_v27 }
 0x129   :  { %v172_v29 = vsel %vm91_vm0, %v168_v28, 0.0 }
 0x12a   :  { %173 = vadd.xlane.f32.xlu0 %v172_v29 }
 0x191   :  { %v171_v37 = vpop.xlane.xlu0 %170 }
 0x192   :  { %v182_v38 = vmul.f32 %v181_v36, %v171_v37 }
 0x194   :  { %v184_v39 = vsub.f32 %v167_v24, %v182_v38 }
 0x196   :  { %v186_v40 = vmul.f32 %v184_v39, %v184_v39 }
 0x198   :  { %v188_v41 = vsel %vm91_vm0, %v186_v40, 0.0 }
 0x199   :  { %189 = vadd.xlane.f32.xlu1 %v188_v41 }
 0x19d   :  { %v174_v42 = vpop.xlane.xlu0 %173 }
 0x19e   :  { %v183_v43 = vmul.f32 %v181_v36, %v174_v42 }
 0x1a0   :  { %v185_v44 = vsub.f32 %v168_v28, %v183_v43 }
 0x1a2   :  { %v187_v45 = vmul.f32 %v185_v44, %v185_v44 }
 0x1a4   :  { %v191_v46 = vsel %vm91_vm0, %v187_v45, 0.0 }
 0x1a5   :  { %192 = vadd.xlane.f32.xlu1 %v191_v46 }
 0x20c   :  { %v190_v47 = vpop.xlane.xlu1 %189 }
 0x20d   :  { %v194_v48 = vmul.f32 %v190_v47, %v181_v36 }
 0x20f   :  { %v196_v49 = vadd.f32 1e-05, %v194_v48 }
 0x211   :  { %268 = vrsqrt.f32 %v196_v49  ;;  %vm204_vm4 = vweird.f32 %v196_v49 }
 0x217   :  { %v269_v50 = vpop.eup %268 }
 0x218   :  { %v199_v51 = vmul.f32 %v269_v50, %v196_v49  ;;  %v193_v52 = vpop.xlane.xlu1 %192  ;;  %vm205_vm3 = vweird.f32 %v269_v50 }
 0x219   :  { %v195_v53 = vmul.f32 %v193_v52, %v181_v36  ;;  %vm206_vm5 = vmor %vm204_vm4, %vm205_vm3 }
 0x21a   :  { %v200_v54 = vmul.f32 %v269_v50, %v199_v51 }
 0x21b   :  { %v197_v55 = vadd.f32 1e-05, %v195_v53 }
 0x21c   :  { %v201_v56 = vmul.f32 0.5, %v200_v54 }
 0x21d   :  { %270 = vrsqrt.f32 %v197_v55  ;;  %vm214_vm7 = vweird.f32 %v197_v55 }
 0x21e   :  { %v202_v57 = vsub.f32 1.5, %v201_v56 }
 0x220   :  { %v203_v58 = vmul.f32 %v269_v50, %v202_v57 }
 0x222   :  { %v207_v60 = vsel %vm206_vm5, %v269_v50, %v203_v58 }
 0x223   :  { %v271_v61 = vpop.eup %270  ;;  %v218_v63 = vmul.f32 %v207_v60, %v184_v39 }
 0x224   :  { %v209_v0 = vmul.f32 %v271_v61, %v197_v55  ;;  %vm215_vm6 = vweird.f32 %v271_v61 }
 0x225   :  { %v224_v1 = vmul.f32 %v264_v59, %v218_v63  ;;  %vm216_vm8 = vmor %vm214_vm7, %vm215_vm6 }
 0x226   :  { %v210_v2 = vmul.f32 %v271_v61, %v209_v0 }
 0x227   :  { %v230_v3 = vadd.f32 %v265_v62, %v224_v1 }
 0x228   :  { %v211_v4 = vmul.f32 0.5, %v210_v2 }
 0x229   :  { %232 = vst.msk [vmem:[%s494_s7] sm:$0xff] %vm91_vm0, %v230_v3 }
 0x22a   :  { %v212_v5 = vsub.f32 1.5, %v211_v4 }
 0x22c   :  { %v213_v6 = vmul.f32 %v271_v61, %v212_v5 }
 0x22e   :  { %v217_v7 = vsel %vm216_vm8, %v271_v61, %v213_v6 }
 0x22f   :  { %v219_v8 = vmul.f32 %v217_v7, %v185_v44 }
 0x231   :  { %v225_v9 = vmul.f32 %v264_v59, %v219_v8 }
 0x233   :  { %v231_v10 = vadd.f32 %v265_v62, %v225_v9 }
 0x235   :  { %233 = vst.msk [vmem:[%s494_s7 + $0x8] sm:$0xff] %vm91_vm0, %v231_v10 }
 0x236   :  { %238 = vsyncpa [#allocation3], 1 }
 0x237   :  { %239 = vsyncpa [#allocation5], 1 }
 0x238   :  { %240 = vsyncpa [#allocation8], 1 }

// kernel: _lambda_.21
= control target key start
LH: loop header
LB: loop body
LE: loop exit
PB: predicated region body
PF: predicated region fallthrough
CT: control target
= control target key end

     0   :  { %s159_s0 = inlined_call_operand.vmem [shape: f32[16,32], index: 0, kind: input, shape index: {}]   ;;  %s160_s1 = inlined_call_operand.vmem [shape: f32[32,60], index: 1, kind: input, shape index: {}]   ;;  %s161_s2 = inlined_call_operand.vmem [shape: f32[1,60], index: 2, kind: input, shape index: {}]   ;;  %s162_s3 = inlined_call_operand.hbm [shape: f32[16,60], index: 3, kind: output, shape index: {}]  }
   0x1   :  { %v20_v0 = vld [vmem:[%s160_s1 + $0x18] sm:$0xff]  ;;  %v19_v1 = vld [vmem:[%s160_s1 + $0x10] sm:$0xff]  ;;  %v18_v2 = vld [vmem:[%s160_s1 + $0x8] sm:$0xff] }
   0x2   :  { %44 = vmatpush.msra.mxu0 %v20_v0  ;;  %78 = vmatpush.msra.mxu1 %v20_v0 }
   0x3   :  { %8 = vsyncpa [#allocation3], 0  ;;  %v17_v3 = vld [vmem:[%s160_s1] sm:$0xff]  ;;  %vm25_vm0 = vcmask 261120   ;;  %v16_v5 = vld [vmem:[%s159_s0 + $0x8] sm:$0xff]  ;;  %s112_s1 = smov [#allocation2]  }
   0x4   :  { %45 = vmatpush.msra.mxu0 %v19_v1  ;;  %79 = vmatpush.msra.mxu1 %v19_v1  ;;  %v15_v4 = vld [vmem:[%s159_s0] sm:$0xff]  ;;  %s62_s26 = sshll.u32 %s112_s1, 4  ;;  %s64_s29 = sshll.u32 %s162_s3, 4  ;;  %vm55_vm1 = vcmask 490496   ;;  %s63_s26 = int_to_ptr.vmem [resolvable:$true] %s62_s26  ;;  %s65_s29 = int_to_ptr.hbm [resolvable:$true] %s64_s29 }
   0x5   :  { %v85_v6 = vld [vmem:[%s161_s2] ss:$0 sm:$0xff]  ;;  %s113_s0 = smov 128   ;;  %s114_s30 = smov 8  }
   0x6   :  { %46 = vmatpush.msra.mxu0 %v18_v2  ;;  %80 = vmatpush.msra.mxu1 %v18_v2 }
   0x8   :  { %47 = vmatpush.msra.mxu0 %v17_v3  ;;  %81 = vmatpush.msra.mxu1 %v17_v3 }
   0x9   :  { %76 = vmatmul.msk.f32.vlgmr.msra.gmra.mxu0 %vm25_vm0, %v15_v4  ;;  %77 = vmatmul.msk.f32.vlgmr.msra.gmra.mxu1 %vm25_vm0, %v16_v5 }
  0x86   :  { %v49_v7 = vpop.f32.mrf.mxu0  ;;  %v52_v8 = vpop.f32.mrf.mxu1 }
  0x87   :  { %v50_v9 = vadd.f32 %v85_v6, %v49_v7  ;;  %v53_v10 = vadd.f32 %v85_v6, %v52_v8 }
  0x89   :  { %56 = vst.msk [vmem:[#allocation2] sm:$0xff] %vm55_vm1, %v50_v9 }
  0x8a   :  { %57 = vst.msk [vmem:[#allocation2 + $0x8] sm:$0xff] %vm55_vm1, %v53_v10 }
  0x8b   :  { %70 = dma.vmem_to_hbm [thread:$0]  %s63_s26, 256, %s65_s29, [#allocation3], %s113_s0, %s113_s0, %s114_s30  }
  0x8c   :  { %110 = dma.done.wait [#allocation3], 256  }
  0x8d   :  { %111 = vsyncadd [#allocation3], 4294967040 }
  0x8e   :  { %75 = vsyncpa [#allocation3], 1 }

// kernel: _lambda_.16
= control target key start
LH: loop header
LB: loop body
LE: loop exit
PB: predicated region body
PF: predicated region fallthrough
CT: control target
= control target key end

     0   :  { %15 = vsyncpa [#allocation3], 0  ;;  %s1549_s0 = inlined_call_operand.vmem [shape: f32[16,32], index: 0, kind: input, shape index: {}]   ;;  %s1550_s1 = inlined_call_operand.vmem [shape: f32[16,32], index: 1, kind: input, shape index: {}]   ;;  %s1551_s2 = inlined_call_operand.vmem [shape: f32[32,32], index: 2, kind: input, shape index: {}]   ;;  %s1552_s3 = inlined_call_operand.vmem [shape: f32[1,32], index: 3, kind: input, shape index: {}]   ;;  %s1553_s4 = inlined_call_operand.vmem [shape: f32[32,64], index: 4, kind: input, shape index: {}]   ;;  %s1554_s5 = inlined_call_operand.hbm [shape: f32[1,64], index: 5, kind: input, shape index: {}]   ;;  %s1555_s6 = inlined_call_operand.vmem [shape: f32[32,32], index: 6, kind: input, shape index: {}]   ;;  %s1556_s7 = inlined_call_operand.hbm [shape: f32[1,32], index: 7, kind: input, shape index: {}]   ;;  %s1557_s8 = inlined_call_operand.hbm [shape: f32[1,32], index: 8, kind: input, shape index: {}]   ;;  %s1558_s9 = inlined_call_operand.hbm [shape: f32[1,32], index: 9, kind: input, shape index: {}]   ;;  %s1559_s10 = inlined_call_operand.vmem [shape: f32[16,32], index: 10, kind: output, shape index: {}]  }
   0x1   :  { %16 = vsyncpa [#allocation5], 0  ;;  %s46_s15 = sshll.u32 %s1556_s7, 4  ;;  %s47_s15 = int_to_ptr.hbm [resolvable:$true] %s46_s15 }
   0x2   :  { %17 = vsyncpa [#allocation8], 0  ;;  %s1261_s16 = smov [#allocation4]   ;;  %s33_s20 = sshll.u32 %s1554_s5, 4  ;;  %s34_s20 = int_to_ptr.hbm [resolvable:$true] %s33_s20 }
   0x3   :  { %s48_s17 = sshll.u32 %s1261_s16, 4  ;;  %s1262_s21 = smov [#allocation2]   ;;  %s49_s17 = int_to_ptr.vmem [resolvable:$true] %s48_s17 }
   0x4   :  { %51 = dma.hbm_to_vmem [thread:$0]  %s47_s15, 16, %s49_s17, [#allocation5]  }
   0x5   :  { %s35_s22 = sshll.u32 %s1262_s21, 4  ;;  %s57_s25 = sshll.u32 %s1557_s8, 4  ;;  %s36_s22 = int_to_ptr.vmem [resolvable:$true] %s35_s22  ;;  %s58_s25 = int_to_ptr.hbm [resolvable:$true] %s57_s25 }
   0x6   :  { %38 = dma.hbm_to_vmem [thread:$0]  %s34_s20, 16, %s36_s22, [#allocation3]  }
   0x7   :  { %s68_s27 = sshll.u32 %s1558_s9, 4  ;;  %s1263_s28 = smov [#allocation6]   ;;  %s69_s27 = int_to_ptr.hbm [resolvable:$true] %s68_s27 }
   0x8   :  { %s59_s29 = sshll.u32 %s1263_s28, 4  ;;  %s1264_s5 = smov [#allocation7]   ;;  %s60_s29 = int_to_ptr.vmem [resolvable:$true] %s59_s29 }
   0x9   :  { %62 = dma.hbm_to_vmem [thread:$0]  %s58_s25, 16, %s60_s29, [#allocation5]  }
   0xa   :  { %s70_s30 = sshll.u32 %s1264_s5, 4  ;;  %s71_s30 = int_to_ptr.vmem [resolvable:$true] %s70_s30 }
   0xb   :  { %73 = dma.hbm_to_vmem [thread:$0]  %s69_s27, 16, %s71_s30, [#allocation8]  }
   0xc   :  { %1255 = dma.done.wait [#allocation3], 16  }
   0xd   :  { %1256 = vsyncadd [#allocation3], 4294967280 }
   0xe   :  { %1257 = dma.done.wait [#allocation5], 32  }
   0xf   :  { %1258 = vsyncadd [#allocation5], 4294967264 }
  0x10   :  { %1259 = dma.done.wait [#allocation8], 16  }
  0x11   :  { %1260 = vsyncadd [#allocation8], 4294967280  ;;  %v95_v0 = vld [vmem:[%s1551_s2 + $0x18] sm:$0xff]  ;;  %v94_v2 = vld [vmem:[%s1551_s2 + $0x10] sm:$0xff]  ;;  %vm100_vm0 = vcmask 261120   ;;  %vm174_vm1 = vcmask 64512  }
  0x12   :  { %v137_v1 = vld [vmem:[%s1553_s4 + $0x18] sm:$0xff]  ;;  %119 = vmatpush.msra.mxu0 %v95_v0  ;;  %v136_v3 = vld [vmem:[%s1553_s4 + $0x10] sm:$0xff]  ;;  %v93_v4 = vld [vmem:[%s1551_s2 + $0x8] sm:$0xff]  ;;  %s1265_s28 = smov 96   ;;  %s1267_s29 = smov 112  }
  0x13   :  { %160 = vmatpush.msra.mxu1 %v137_v1  ;;  %v135_v5 = vld [vmem:[%s1553_s4 + $0x8] sm:$0xff]  ;;  %v92_v6 = vld [vmem:[%s1551_s2] sm:$0xff]  ;;  %s1269_s8 = smov 104   ;;  %s1270_s11 = smov 80  }
  0x14   :  { %120 = vmatpush.msra.mxu0 %v94_v2  ;;  %v134_v7 = vld [vmem:[%s1553_s4] sm:$0xff]  ;;  %v1404_v28 = vld [vmem:[%s1549_s0 + $0x8] sm:$0xff]  ;;  %s1271_s18 = smov 72  }
  0x15   :  { %161 = vmatpush.msra.mxu1 %v136_v3  ;;  %v1367_v8 = vld [vmem:[%s1549_s0] sm:$0xff]  ;;  %s1268_s0 = smov 88   ;;  %v133_v59 = vld [vmem:[%s1550_s1 + $0x8] sm:$0xff] }
  0x16   :  { %121 = vmatpush.msra.mxu0 %v93_v4  ;;  %v132_v9 = vld [vmem:[%s1550_s1] sm:$0xff] }
  0x17   :  { %162 = vmatpush.msra.mxu1 %v135_v5  ;;  %v1378_v10 = vld [vmem:[%s1552_s3] ss:$0 sm:$0xff]  ;;  %s1266_s3 = smov 120  }
  0x18   :  { %122 = vmatpush.msra.mxu0 %v92_v6  ;;  %v1380_v11 = vld [vmem:[#allocation2] ss:$0 sm:$0xff] }
  0x19   :  { %163 = vmatpush.msra.mxu1 %v134_v7  ;;  %1068 = vmatmul.msk.f32.vlgmr.msra.gmra.mxu0 %vm100_vm0, %v1367_v8  ;;  %v1433_v60 = vld [vmem:[%s1555_s6] sm:$0xff] }
  0x1a   :  { %1070 = vmatmul.msk.f32.vlgmr.msra.gmra.mxu1 %vm100_vm0, %v132_v9 }
  0x21   :  { %1069 = vmatmul.msk.f32.gmra.mxu0 %vm100_vm0, %v1404_v28 }
  0x22   :  { %1071 = vmatmul.msk.f32.gmra.mxu1 %vm100_vm0, %v133_v59 }
  0x96   :  { %v124_v12 = vpop.f32.mrf.mxu0 }
  0x97   :  { %v165_v13 = vpop.f32.mrf.mxu1  ;;  %v125_v14 = vadd.f32 %v1378_v10, %v124_v12 }
  0x98   :  { %v1384_v15 = vadd.f32 %v1380_v11, %v165_v13 }
  0x99   :  { %v130_v16 = vmul.f32 0.35355338, %v125_v14 }
  0x9a   :  { %225 = vrot.lane.b32.xlu1 %v1384_v15, %s1265_s28  ;;  %1072 = vmatpush.xpose.msk.msra.mxu2 %vm174_vm1, %v1384_v15 }
  0x9b   :  { %252 = vrot.lane.b32.xlu2 %v130_v16, %s1266_s3 }
  0x9d   :  { %1073 = vmatmul.msk.f32.vlgmr.msra.gmra.mxu2 %vm174_vm1, %v130_v16 }
  0x9e   :  { %v1411_v42 = vpop.f32.mrf.mxu0 }
  0xa2   :  { %254 = vrot.lane.b32.xlu1 %v1384_v15, %s1266_s3 }
  0xa3   :  { %379 = vrot.lane.b32.xlu2 %v1384_v15, %s1267_s29 }
  0xf5   :  { %v253_v17 = vpop.permute.xlu2 %252 }
  0xfd   :  { %v380_v18 = vpop.permute.xlu2 %379 }
  0xfe   :  { %1080 = vmatpush.xpose.msk.msrb.mxu0 %vm174_vm1, %v380_v18 }
 0x10c   :  { %v226_v19 = vpop.permute.xlu1 %225 }
 0x10d   :  { %246 = vmatpush.msra.mxu3 %v226_v19 }
 0x114   :  { %v255_v20 = vpop.permute.xlu1 %254 }
 0x115   :  { %1075 = vmatpush.xpose.msk.msrb.mxu3 %vm174_vm1, %v255_v20 }
 0x120   :  { %v198_v21 = vpop.f32.mrf.mxu2 }
 0x121   :  { %v201_v22 = vsel %vm174_vm1, %v198_v21, -inf }
 0x122   :  { %202 = vmax.xlane.f32.xlu0 %v201_v22 }
 0x195   :  { %v203_v23 = vpop.xlane.xlu0 %202 }
 0x196   :  { %v204_v24 = vsub.f32 %v198_v21, %v203_v23 }
 0x198   :  { %v205_v25 = vmul.f32 1.442695, %v204_v24 }
 0x19a   :  { %1121 = vpow2.f32 %v205_v25 }
 0x1a0   :  { %v1122_v26 = vpop.eup %1121 }
 0x1a1   :  { %v207_v27 = vsel %vm174_vm1, %v1122_v26, 0.0 }
 0x1a2   :  { %208 = vadd.xlane.f32.xlu0 %v207_v27 }
 0x1b6   :  { %377 = vrot.lane.b32.xlu0 %v130_v16, %s1267_s29 }
 0x215   :  { %v209_v29 = vpop.xlane.xlu0 %208 }
 0x216   :  { %1123 = vrcp.f32 %v209_v29  ;;  %v221_v33 = vand.u32 2147483648, %v209_v29  ;;  %v219_v35 = vand.u32 2147483647, %v209_v29  ;;  %vm215_vm3 = vweird.f32 %v209_v29 }
 0x218   :  { %v222_v37 = vor.u32 1.1754944e-38, %v221_v33  ;;  %vm220_vm5 = vcmp.eq.f32.partialorder %v219_v35, 8.507059e+37  ;;  %v128_v35 = vadd.f32 %v1378_v10, %v1411_v42 }
 0x21c   :  { %v1124_v30 = vpop.eup %1123 }
 0x21d   :  { %v211_v31 = vmul.f32 %v1124_v30, %v209_v29  ;;  %vm216_vm2 = vweird.f32 %v1124_v30  ;;  %v168_v29 = vpop.f32.mrf.mxu1 }
 0x21e   :  { %vm217_vm4 = vmor %vm215_vm3, %vm216_vm2 }
 0x21f   :  { %v212_v32 = vsub.f32 1.0, %v211_v31  ;;  %v330_v31 = vld [vmem:[%s1555_s6 + $0x8] sm:$0xff] }
 0x221   :  { %v213_v34 = vmul.f32 %v1124_v30, %v212_v32  ;;  %v455_v32 = vld [vmem:[%s1555_s6 + $0x10] sm:$0xff] }
 0x223   :  { %v214_v36 = vadd.f32 %v1124_v30, %v213_v34 }
 0x225   :  { %v218_v38 = vsel %vm217_vm4, %v1124_v30, %v214_v36  ;;  %v1443_v30 = vadd.f32 %v1380_v11, %v168_v29  ;;  %v131_v36 = vmul.f32 0.35355338, %v128_v35 }
 0x226   :  { %v223_v39 = vsel %vm220_vm5, %v222_v37, %v218_v38 }
 0x227   :  { %v224_v40 = vmul.f32 %v1122_v26, %v223_v39 }
 0x228   :  { %v378_v41 = vpop.permute.xlu0 %377 }
 0x229   :  { %1074 = vmatmul.msk.f32.vlgmr.msra.gmra.mxu3 %vm174_vm1, %v224_v40  ;;  %1081 = vmatmul.msk.f32.vlgmr.msrb.gmra.mxu0 %vm174_vm1, %v378_v41 }
 0x22a   :  { %349 = vmatpush.msra.mxu3 %v330_v31 }
 0x231   :  { %1076 = vmatmul.msk.f32.vlgmr.msrb.gmra.mxu3 %vm174_vm1, %v253_v17 }
 0x232   :  { %474 = vmatpush.msrb.mxu3 %v455_v32 }
 0x2a6   :  { %v402_v43 = vpop.f32.mrf.mxu0 }
 0x2a7   :  { %v405_v44 = vsel %vm174_vm1, %v402_v43, -inf }
 0x2a8   :  { %406 = vmax.xlane.f32.xlu2 %v405_v44 }
 0x2ac   :  { %v1414_v45 = vpop.f32.mrf.mxu3 }
 0x2b4   :  { %v277_v46 = vpop.f32.mrf.mxu3 }
 0x2b5   :  { %v280_v47 = vsel %vm174_vm1, %v277_v46, -inf }
 0x2b6   :  { %281 = vmax.xlane.f32.xlu1 %v280_v47 }
 0x2cf   :  { %304 = vrot.lane.b32.xlu1 %v1384_v15, %s1268_s0 }
 0x2d7   :  { %480 = vrot.lane.b32.xlu1 %v130_v16, %s1269_s8 }
 0x31b   :  { %v407_v48 = vpop.xlane.xlu2 %406 }
 0x31c   :  { %v408_v49 = vsub.f32 %v402_v43, %v407_v48 }
 0x31e   :  { %v409_v50 = vmul.f32 1.442695, %v408_v49 }
 0x320   :  { %1125 = vpow2.f32 %v409_v50 }
 0x326   :  { %v1126_v51 = vpop.eup %1125 }
 0x327   :  { %v411_v52 = vsel %vm174_vm1, %v1126_v51, 0.0 }
 0x328   :  { %412 = vadd.xlane.f32.xlu2 %v411_v52 }
 0x329   :  { %v282_v53 = vpop.xlane.xlu1 %281 }
 0x32a   :  { %v283_v54 = vsub.f32 %v277_v46, %v282_v53 }
 0x32c   :  { %v284_v55 = vmul.f32 1.442695, %v283_v54 }
 0x32e   :  { %1127 = vpow2.f32 %v284_v55 }
 0x334   :  { %v1128_v56 = vpop.eup %1127 }
 0x335   :  { %v286_v57 = vsel %vm174_vm1, %v1128_v56, 0.0 }
 0x336   :  { %287 = vadd.xlane.f32.xlu0 %v286_v57 }
 0x340   :  { %429 = vrot.lane.b32.xlu2 %v1384_v15, %s1270_s11 }
 0x341   :  { %v305_v58 = vpop.permute.xlu1 %304 }
 0x342   :  { %325 = vmatpush.msrb.mxu2 %v305_v58 }
 0x344   :  { %372 = vmatpush.msra.mxu2 %v1433_v60 }
 0x349   :  { %v481_v27 = vpop.permute.xlu1 %480 }
 0x34a   :  { %482 = vrot.lane.b32.xlu0 %v1384_v15, %s1269_s8 }
 0x352   :  { %676 = vrot.lane.b32.xlu0 %v1443_v30, %s1265_s28 }
 0x39b   :  { %v413_v61 = vpop.xlane.xlu2 %412 }
 0x39c   :  { %1129 = vrcp.f32 %v413_v61  ;;  %v425_v2 = vand.u32 2147483648, %v413_v61  ;;  %v423_v4 = vand.u32 2147483647, %v413_v61  ;;  %vm419_vm7 = vweird.f32 %v413_v61 }
 0x39e   :  { %v426_v7 = vor.u32 1.1754944e-38, %v425_v2  ;;  %vm424_vm9 = vcmp.eq.f32.partialorder %v423_v4, 8.507059e+37 }
 0x3a2   :  { %v1130_v62 = vpop.eup %1129 }
 0x3a3   :  { %v415_v63 = vmul.f32 %v1130_v62, %v413_v61  ;;  %v430_v0 = vpop.permute.xlu2 %429  ;;  %vm420_vm6 = vweird.f32 %v1130_v62 }
 0x3a4   :  { %450 = vmatpush.msrb.mxu1 %v430_v0  ;;  %vm421_vm8 = vmor %vm419_vm7, %vm420_vm6 }
 0x3a5   :  { %v416_v1 = vsub.f32 1.0, %v415_v63 }
 0x3a7   :  { %v417_v3 = vmul.f32 %v1130_v62, %v416_v1 }
 0x3a9   :  { %v418_v5 = vadd.f32 %v1130_v62, %v417_v3  ;;  %v288_v6 = vpop.xlane.xlu0 %287 }
 0x3aa   :  { %1131 = vrcp.f32 %v288_v6  ;;  %v300_v18 = vand.u32 2147483648, %v288_v6  ;;  %v298_v20 = vand.u32 2147483647, %v288_v6  ;;  %vm294_vm11 = vweird.f32 %v288_v6 }
 0x3ab   :  { %v422_v9 = vsel %vm421_vm8, %v1130_v62, %v418_v5 }
 0x3ac   :  { %v427_v12 = vsel %vm424_vm9, %v426_v7, %v422_v9  ;;  %v301_v22 = vor.u32 1.1754944e-38, %v300_v18  ;;  %vm299_vm13 = vcmp.eq.f32.partialorder %v298_v20, 8.507059e+37 }
 0x3ad   :  { %v428_v13 = vmul.f32 %v1126_v51, %v427_v12 }
 0x3af   :  { %1082 = vmatmul.msk.f32.vlgmr.msrb.gmra.mxu1 %vm174_vm1, %v428_v13 }
 0x3b0   :  { %v1132_v14 = vpop.eup %1131 }
 0x3b1   :  { %v290_v16 = vmul.f32 %v1132_v14, %v288_v6  ;;  %vm295_vm10 = vweird.f32 %v1132_v14 }
 0x3b2   :  { %vm296_vm12 = vmor %vm294_vm11, %vm295_vm10 }
 0x3b3   :  { %v291_v17 = vsub.f32 1.0, %v290_v16 }
 0x3b5   :  { %v292_v19 = vmul.f32 %v1132_v14, %v291_v17 }
 0x3b7   :  { %v293_v21 = vadd.f32 %v1132_v14, %v292_v19 }
 0x3b9   :  { %v297_v23 = vsel %vm296_vm12, %v1132_v14, %v293_v21 }
 0x3ba   :  { %v302_v24 = vsel %vm299_vm13, %v301_v22, %v297_v23 }
 0x3bb   :  { %v303_v25 = vmul.f32 %v1128_v56, %v302_v24  ;;  %v1488_v24 = vld [vmem:[%s1555_s6 + $0x18] sm:$0xff] }
 0x3bc   :  { %v483_v26 = vpop.permute.xlu0 %482  ;;  %577 = vmatpush.msra.mxu1 %v1488_v24 }
 0x3bd   :  { %1077 = vmatmul.msk.f32.vlgmr.msrb.gmra.mxu2 %vm174_vm1, %v303_v25 }
 0x3be   :  { %1084 = vmatpush.xpose.msk.msrb.mxu2 %vm174_vm1, %v483_v26 }
 0x3c4   :  { %v677_v39 = vpop.permute.xlu0 %676 }
 0x3c5   :  { %1079 = vmatmul.msk.f32.vlgmr.msra.gmra.mxu2 %vm174_vm1, %v1414_v45 }
 0x3c6   :  { %697 = vmatpush.msra.mxu2 %v677_v39 }
 0x3cd   :  { %1085 = vmatmul.msk.f32.vlgmr.msrb.gmra.mxu2 %vm174_vm1, %v481_v27 }
 0x3ce   :  { %823 = vmatpush.msrb.mxu2 %v1433_v60 }
 0x42c   :  { %v452_v11 = vpop.f32.mrf.mxu1 }
 0x440   :  { %v327_v33 = vpop.f32.mrf.mxu2 }
 0x441   :  { %1078 = vmatmul.msk.f32.vlgmr.msra.gmra.mxu3 %vm174_vm1, %v327_v33 }
 0x442   :  { %1088 = vmatpush.xpose.msk.msra.mxu3 %vm174_vm1, %v1443_v30 }
 0x448   :  { %v374_v34 = vpop.f32.mrf.mxu2 }
 0x449   :  { %1083 = vmatmul.msk.f32.vlgmr.msrb.gmra.mxu3 %vm174_vm1, %v452_v11 }
 0x44a   :  { %800 = vmatpush.msrb.mxu3 %v330_v31 }
 0x450   :  { %v505_v37 = vpop.f32.mrf.mxu2 }
 0x451   :  { %1089 = vmatmul.msk.f32.vlgmr.msra.gmra.mxu3 %vm174_vm1, %v131_v36  ;;  %v508_v38 = vsel %vm174_vm1, %v505_v37, -inf }
 0x452   :  { %509 = vmax.xlane.f32.xlu0 %v508_v38  ;;  %925 = vmatpush.msra.mxu3 %v455_v32 }
 0x466   :  { %703 = vrot.lane.b32.xlu0 %v131_v36, %s1266_s3 }
 0x46e   :  { %931 = vrot.lane.b32.xlu0 %v131_v36, %s1269_s8 }
 0x4c4   :  { %v351_v40 = vpop.f32.mrf.mxu3 }
 0x4c5   :  { %v510_v41 = vpop.xlane.xlu0 %509  ;;  %v375_v43 = vadd.f32 %v374_v34, %v351_v40 }
 0x4c6   :  { %v511_v10 = vsub.f32 %v505_v37, %v510_v41 }
 0x4c8   :  { %v512_v45 = vmul.f32 1.442695, %v511_v10 }
 0x4ca   :  { %1133 = vpow2.f32 %v512_v45 }
 0x4cc   :  { %v476_v42 = vpop.f32.mrf.mxu3 }
 0x4cd   :  { %v1464_v44 = vadd.f32 %v476_v42, %v375_v43 }
 0x4d0   :  { %v1134_v48 = vpop.eup %1133 }
 0x4d1   :  { %v514_v49 = vsel %vm174_vm1, %v1134_v48, 0.0 }
 0x4d4   :  { %v649_v46 = vpop.f32.mrf.mxu3 }
 0x4d5   :  { %v652_v47 = vsel %vm174_vm1, %v649_v46, -inf }
 0x4d6   :  { %653 = vmax.xlane.f32.xlu2 %v652_v47 }
 0x4d8   :  { %v704_v22 = vpop.permute.xlu0 %703 }
 0x4de   :  { %515 = vadd.xlane.f32.xlu2 %v514_v49  ;;  %v1507_v49 = vld [vmem:[#allocation4] ss:$0 sm:$0xff] }
 0x4e0   :  { %v932_v27 = vpop.permute.xlu0 %931 }
 0x4f6   :  { %705 = vrot.lane.b32.xlu2 %v1443_v30, %s1266_s3 }
 0x4fe   :  { %933 = vrot.lane.b32.xlu2 %v1443_v30, %s1269_s8 }
 0x549   :  { %v654_v50 = vpop.xlane.xlu2 %653 }
 0x54a   :  { %v655_v51 = vsub.f32 %v649_v46, %v654_v50 }
 0x54c   :  { %v656_v52 = vmul.f32 1.442695, %v655_v51 }
 0x54e   :  { %1135 = vpow2.f32 %v656_v52 }
 0x551   :  { %v516_v55 = vpop.xlane.xlu2 %515 }
 0x552   :  { %1137 = vrcp.f32 %v516_v55  ;;  %v528_v5 = vand.u32 2147483648, %v516_v55  ;;  %vm522_vm4 = vweird.f32 %v516_v55  ;;  %v526_v7 = vand.u32 2147483647, %v516_v55 }
 0x554   :  { %v1136_v53 = vpop.eup %1135  ;;  %v529_v16 = vor.u32 1.1754944e-38, %v528_v5  ;;  %vm527_vm7 = vcmp.eq.f32.partialorder %v526_v7, 8.507059e+37 }
 0x555   :  { %v658_v54 = vsel %vm174_vm1, %v1136_v53, 0.0 }
 0x556   :  { %659 = vadd.xlane.f32.xlu1 %v658_v54 }
 0x558   :  { %v1138_v56 = vpop.eup %1137 }
 0x559   :  { %v518_v58 = vmul.f32 %v1138_v56, %v516_v55  ;;  %v706_v63 = vpop.permute.xlu2 %705  ;;  %vm523_vm15 = vweird.f32 %v1138_v56 }
 0x55a   :  { %vm524_vm6 = vmor %vm522_vm4, %vm523_vm15 }
 0x55b   :  { %v519_v59 = vsub.f32 1.0, %v518_v58 }
 0x55d   :  { %v520_v62 = vmul.f32 %v1138_v56, %v519_v59 }
 0x55f   :  { %v521_v3 = vadd.f32 %v1138_v56, %v520_v62 }
 0x561   :  { %v525_v13 = vsel %vm524_vm6, %v1138_v56, %v521_v3  ;;  %v934_v17 = vpop.permute.xlu2 %933 }
 0x562   :  { %v530_v18 = vsel %vm527_vm7, %v529_v16, %v525_v13 }
 0x563   :  { %v531_v20 = vmul.f32 %v1134_v48, %v530_v18 }
 0x56f   :  { %532 = vrot.lane.b32.xlu1 %v1384_v15, %s1271_s18 }
 0x577   :  { %830 = vrot.lane.b32.xlu1 %v1443_v30, %s1267_s29 }
 0x57f   :  { %828 = vrot.lane.b32.xlu1 %v131_v36, %s1267_s29 }
 0x5c9   :  { %v660_v57 = vpop.xlane.xlu1 %659 }
 0x5ca   :  { %1139 = vrcp.f32 %v660_v57  ;;  %v672_v1 = vand.u32 2147483648, %v660_v57  ;;  %v670_v15 = vand.u32 2147483647, %v660_v57  ;;  %vm666_vm2 = vweird.f32 %v660_v57 }
 0x5cc   :  { %v673_v6 = vor.u32 1.1754944e-38, %v672_v1  ;;  %vm671_vm5 = vcmp.eq.f32.partialorder %v670_v15, 8.507059e+37 }
 0x5d0   :  { %v1140_v60 = vpop.eup %1139 }
 0x5d1   :  { %v662_v61 = vmul.f32 %v1140_v60, %v660_v57  ;;  %vm667_vm14 = vweird.f32 %v1140_v60 }
 0x5d2   :  { %vm668_vm3 = vmor %vm666_vm2, %vm667_vm14 }
 0x5d3   :  { %v663_v0 = vsub.f32 1.0, %v662_v61 }
 0x5d5   :  { %v664_v2 = vmul.f32 %v1140_v60, %v663_v0 }
 0x5d7   :  { %v665_v4 = vadd.f32 %v1140_v60, %v664_v2 }
 0x5d9   :  { %v669_v9 = vsel %vm668_vm3, %v1140_v60, %v665_v4 }
 0x5da   :  { %v674_v12 = vsel %vm671_vm5, %v673_v6, %v669_v9 }
 0x5db   :  { %v675_v14 = vmul.f32 %v1136_v53, %v674_v12 }
 0x5dd   :  { %1090 = vmatmul.msk.f32.vlgmr.msra.gmra.mxu2 %vm174_vm1, %v675_v14 }
 0x5de   :  { %1100 = vmatpush.xpose.msk.msra.mxu2 %vm174_vm1, %v934_v17 }
 0x5e1   :  { %v533_v19 = vpop.permute.xlu1 %532 }
 0x5e2   :  { %553 = vmatpush.msra.mxu0 %v533_v19 }
 0x5e3   :  { %1086 = vmatmul.msk.f32.vlgmr.msra.gmra.mxu0 %vm174_vm1, %v531_v20  ;;  %v1272_v20 = vmov 32.0  }
 0x5e4   :  { %1091 = vmatpush.xpose.msk.msrb.mxu0 %vm174_vm1, %v706_v63 }
 0x5e9   :  { %v831_v21 = vpop.permute.xlu1 %830 }
 0x5ea   :  { %1096 = vmatpush.xpose.msk.msra.mxu0 %vm174_vm1, %v831_v21 }
 0x5eb   :  { %1092 = vmatmul.msk.f32.vlgmr.msrb.gmra.mxu0 %vm174_vm1, %v704_v22 }
 0x5f1   :  { %v829_v23 = vpop.permute.xlu1 %828 }
 0x5f3   :  { %1097 = vmatmul.msk.f32.vlgmr.msra.gmra.mxu0 %vm174_vm1, %v829_v23 }
 0x660   :  { %v555_v25 = vpop.f32.mrf.mxu0  ;;  %v699_v26 = vpop.f32.mrf.mxu2 }
 0x661   :  { %1087 = vmatmul.msk.f32.vlgmr.msra.gmra.mxu1 %vm174_vm1, %v555_v25  ;;  %1095 = vmatmul.msk.f32.vlgmr.msrb.gmra.mxu2 %vm174_vm1, %v699_v26 }
 0x668   :  { %v728_v29 = vpop.f32.mrf.mxu0 }
 0x669   :  { %1101 = vmatmul.msk.f32.vlgmr.msra.gmra.mxu2 %vm174_vm1, %v932_v27  ;;  %v731_v31 = vsel %vm174_vm1, %v728_v29, -inf }
 0x66a   :  { %732 = vmax.xlane.f32.xlu2 %v731_v31 }
 0x670   :  { %v853_v32 = vpop.f32.mrf.mxu0 }
 0x671   :  { %v856_v33 = vsel %vm174_vm1, %v853_v32, -inf }
 0x672   :  { %857 = vmax.xlane.f32.xlu1 %v856_v33 }
 0x6dd   :  { %v733_v11 = vpop.xlane.xlu2 %732 }
 0x6de   :  { %v734_v34 = vsub.f32 %v728_v29, %v733_v11  ;;  %v579_v46 = vpop.f32.mrf.mxu1 }
 0x6df   :  { %v582_v47 = vadd.f32 %v579_v46, %v1464_v44 }
 0x6e0   :  { %v735_v35 = vmul.f32 1.442695, %v734_v34 }
 0x6e1   :  { %v583_v48 = vadd.f32 %v582_v47, %v1367_v8 }
 0x6e2   :  { %1141 = vpow2.f32 %v735_v35 }
 0x6e3   :  { %v1510_v50 = vadd.f32 %v1507_v49, %v583_v48 }
 0x6e4   :  { %v1496_v36 = vpop.f32.mrf.mxu2 }
 0x6e5   :  { %v858_v37 = vpop.xlane.xlu1 %857  ;;  %v588_v51 = vsel %vm100_vm0, %v1510_v50, 0.0 }
 0x6e6   :  { %v859_v38 = vsub.f32 %v853_v32, %v858_v37 }
 0x6e8   :  { %v1142_v39 = vpop.eup %1141  ;;  %v860_v40 = vmul.f32 1.442695, %v859_v38 }
 0x6e9   :  { %v737_v41 = vsel %vm174_vm1, %v1142_v39, 0.0 }
 0x6ea   :  { %1143 = vpow2.f32 %v860_v40  ;;  %738 = vadd.xlane.f32.xlu2 %v737_v41 }
 0x6ec   :  { %v956_v43 = vpop.f32.mrf.mxu2 }
 0x6ed   :  { %v959_v10 = vsel %vm174_vm1, %v956_v43, -inf }
 0x6ee   :  { %960 = vmax.xlane.f32.xlu0 %v959_v10 }
 0x6f0   :  { %v1144_v42 = vpop.eup %1143 }
 0x6f1   :  { %v862_v45 = vsel %vm174_vm1, %v1144_v42, 0.0 }
 0x6f2   :  { %863 = vadd.xlane.f32.xlu1 %v862_v45 }
 0x702   :  { %755 = vrot.lane.b32.xlu2 %v1443_v30, %s1268_s0 }
 0x70b   :  { %880 = vrot.lane.b32.xlu1 %v1443_v30, %s1270_s11 }
 0x72b   :  { %589 = vadd.xlane.f32.xlu2 %v588_v51 }
 0x75d   :  { %v739_v52 = vpop.xlane.xlu2 %738 }
 0x75e   :  { %1145 = vrcp.f32 %v739_v52  ;;  %v751_v59 = vand.u32 2147483648, %v739_v52  ;;  %v749_v61 = vand.u32 2147483647, %v739_v52  ;;  %vm745_vm9 = vweird.f32 %v739_v52 }
 0x760   :  { %v752_v0 = vor.u32 1.1754944e-38, %v751_v59  ;;  %vm750_vm11 = vcmp.eq.f32.partialorder %v749_v61, 8.507059e+37 }
 0x761   :  { %v961_v53 = vpop.xlane.xlu0 %960 }
 0x762   :  { %v962_v54 = vsub.f32 %v956_v43, %v961_v53 }
 0x764   :  { %v1146_v55 = vpop.eup %1145  ;;  %v963_v56 = vmul.f32 1.442695, %v962_v54 }
 0x765   :  { %v741_v57 = vmul.f32 %v1146_v55, %v739_v52  ;;  %v864_v58 = vpop.xlane.xlu1 %863  ;;  %v756_v44 = vpop.permute.xlu2 %755  ;;  %vm746_vm8 = vweird.f32 %v1146_v55 }
 0x766   :  { %1147 = vpow2.f32 %v963_v56  ;;  %776 = vmatpush.msrb.mxu1 %v756_v44  ;;  %vm747_vm10 = vmor %vm745_vm9, %vm746_vm8  ;;  %v876_v12 = vand.u32 2147483648, %v864_v58  ;;  %vm870_vm13 = vweird.f32 %v864_v58  ;;  %v874_v13 = vand.u32 2147483647, %v864_v58 }
 0x767   :  { %v742_v8 = vsub.f32 1.0, %v741_v57  ;;  %1149 = vrcp.f32 %v864_v58 }
 0x768   :  { %v877_v16 = vor.u32 1.1754944e-38, %v876_v12  ;;  %vm875_vm15 = vcmp.eq.f32.partialorder %v874_v13, 8.507059e+37  ;;  %1151 = vrcp.f32 %v1272_v20 }
 0x769   :  { %v743_v60 = vmul.f32 %v1146_v55, %v742_v8  ;;  %v1120_v8 = vld [vmem:[#allocation7] ss:$0 sm:$0xff] }
 0x76b   :  { %v744_v62 = vadd.f32 %v1146_v55, %v743_v60 }
 0x76c   :  { %v1514_v63 = vpop.eup %1147 }
 0x76d   :  { %v1150_v1 = vpop.eup %1149  ;;  %v748_v2 = vsel %vm747_vm10, %v1146_v55, %v744_v62  ;;  %v965_v15 = vsel %vm174_vm1, %v1514_v63, 0.0 }
 0x76e   :  { %v753_v3 = vsel %vm750_vm11, %v752_v0, %v748_v2  ;;  %v866_v4 = vmul.f32 %v1150_v1, %v864_v58  ;;  %966 = vadd.xlane.f32.xlu0 %v965_v15  ;;  %vm871_vm12 = vweird.f32 %v1150_v1  ;;  %v1152_v21 = vpop.eup %1151  ;;  %v1119_v58 = vld [vmem:[#allocation6] ss:$0 sm:$0xff] }
 0x76f   :  { %v754_v5 = vmul.f32 %v1142_v39, %v753_v3  ;;  %vm872_vm14 = vmor %vm870_vm13, %vm871_vm12  ;;  %v592_v22 = vmul.f32 32.0, %v1152_v21  ;;  %vm596_vm2 = vweird.f32 %v1152_v21 }
 0x770   :  { %v867_v6 = vsub.f32 1.0, %v866_v4 }
 0x771   :  { %1093 = vmatmul.msk.f32.vlgmr.msrb.gmra.mxu1 %vm174_vm1, %v754_v5  ;;  %v593_v23 = vsub.f32 1.0, %v592_v22 }
 0x772   :  { %v868_v7 = vmul.f32 %v1150_v1, %v867_v6 }
 0x773   :  { %v594_v25 = vmul.f32 %v1152_v21, %v593_v23 }
 0x774   :  { %v869_v9 = vadd.f32 %v1150_v1, %v868_v7 }
 0x775   :  { %v595_v26 = vadd.f32 %v1152_v21, %v594_v25 }
 0x776   :  { %v873_v14 = vsel %vm872_vm14, %v1150_v1, %v869_v9 }
 0x777   :  { %v878_v17 = vsel %vm875_vm15, %v877_v16, %v873_v14  ;;  %v1523_v27 = vsel %vm596_vm2, %v1152_v21, %v595_v26 }
 0x778   :  { %v879_v19 = vmul.f32 %v1144_v42, %v878_v17 }
 0x77d   :  { %v881_v18 = vpop.permute.xlu1 %880 }
 0x77e   :  { %901 = vmatpush.msra.mxu1 %v881_v18 }
 0x77f   :  { %1098 = vmatmul.msk.f32.vlgmr.msra.gmra.mxu1 %vm174_vm1, %v879_v19 }
 0x780   :  { %1028 = vmatpush.msrb.mxu1 %v1488_v24 }
 0x782   :  { %983 = vrot.lane.b32.xlu0 %v1443_v30, %s1271_s18 }
 0x79e   :  { %v590_v29 = vpop.xlane.xlu2 %589 }
 0x79f   :  { %v598_v31 = vmul.f32 %v1523_v27, %v590_v29 }
 0x7a1   :  { %v599_v32 = vsub.f32 %v1510_v50, %v598_v31 }
 0x7a3   :  { %v600_v33 = vmul.f32 %v599_v32, %v599_v32 }
 0x7a5   :  { %v601_v24 = vsel %vm100_vm0, %v600_v33, 0.0 }
 0x7a6   :  { %602 = vadd.xlane.f32.xlu1 %v601_v24 }
 0x7e1   :  { %v967_v30 = vpop.xlane.xlu0 %966 }
 0x7e2   :  { %1153 = vrcp.f32 %v967_v30  ;;  %v979_v37 = vand.u32 2147483648, %v967_v30  ;;  %v977_v39 = vand.u32 2147483647, %v967_v30  ;;  %vm973_vm4 = vweird.f32 %v967_v30 }
 0x7e4   :  { %v980_v43 = vor.u32 1.1754944e-38, %v979_v37  ;;  %vm978_vm6 = vcmp.eq.f32.partialorder %v977_v39, 8.507059e+37 }
 0x7e8   :  { %v1154_v11 = vpop.eup %1153 }
 0x7e9   :  { %v969_v34 = vmul.f32 %v1154_v11, %v967_v30  ;;  %vm974_vm3 = vweird.f32 %v1154_v11 }
 0x7ea   :  { %vm975_vm5 = vmor %vm973_vm4, %vm974_vm3 }
 0x7eb   :  { %v970_v35 = vsub.f32 1.0, %v969_v34 }
 0x7ed   :  { %v971_v38 = vmul.f32 %v1154_v11, %v970_v35 }
 0x7ee   :  { %v778_v40 = vpop.f32.mrf.mxu1 }
 0x7ef   :  { %v972_v41 = vadd.f32 %v1154_v11, %v971_v38  ;;  %1094 = vmatmul.msk.f32.vlgmr.msrb.gmra.mxu3 %vm174_vm1, %v778_v40 }
 0x7f1   :  { %v976_v10 = vsel %vm975_vm5, %v1154_v11, %v972_v41 }
 0x7f2   :  { %v981_v42 = vsel %vm978_vm6, %v980_v43, %v976_v10 }
 0x7f3   :  { %v982_v45 = vmul.f32 %v1514_v63, %v981_v42 }
 0x7f4   :  { %v984_v46 = vpop.permute.xlu0 %983 }
 0x7f5   :  { %1004 = vmatpush.msrb.mxu0 %v984_v46 }
 0x7f6   :  { %1102 = vmatmul.msk.f32.vlgmr.msrb.gmra.mxu0 %vm174_vm1, %v982_v45 }
 0x7fc   :  { %v903_v47 = vpop.f32.mrf.mxu1 }
 0x7fd   :  { %1099 = vmatmul.msk.f32.vlgmr.msra.gmra.mxu3 %vm174_vm1, %v903_v47 }
 0x819   :  { %v603_v48 = vpop.xlane.xlu1 %602 }
 0x81a   :  { %v604_v50 = vmul.f32 %v603_v48, %v1523_v27 }
 0x81c   :  { %v605_v51 = vadd.f32 1e-05, %v604_v50 }
 0x81e   :  { %1155 = vrsqrt.f32 %v605_v51  ;;  %vm612_vm8 = vweird.f32 %v605_v51 }
 0x824   :  { %v1156_v52 = vpop.eup %1155 }
 0x825   :  { %v607_v53 = vmul.f32 %v1156_v52, %v605_v51  ;;  %vm613_vm7 = vweird.f32 %v1156_v52 }
 0x826   :  { %vm614_vm9 = vmor %vm612_vm8, %vm613_vm7 }
 0x827   :  { %v608_v54 = vmul.f32 %v1156_v52, %v607_v53 }
 0x829   :  { %v609_v55 = vmul.f32 0.5, %v608_v54 }
 0x82b   :  { %v610_v56 = vsub.f32 1.5, %v609_v55 }
 0x82d   :  { %v611_v57 = vmul.f32 %v1156_v52, %v610_v56 }
 0x82f   :  { %v615_v44 = vsel %vm614_vm9, %v1156_v52, %v611_v57 }
 0x830   :  { %v616_v59 = vmul.f32 %v615_v44, %v599_v32 }
 0x832   :  { %v620_v60 = vmul.f32 %v1119_v58, %v616_v59 }
 0x834   :  { %v624_v61 = vadd.f32 %v1120_v8, %v620_v60 }
 0x836   :  { %625 = vst.msk [vmem:[%s1559_s10] sm:$0xff] %vm100_vm0, %v624_v61 }
 0x872   :  { %v802_v63 = vpop.f32.mrf.mxu3 }
 0x873   :  { %v1006_v62 = vpop.f32.mrf.mxu0  ;;  %v826_v1 = vadd.f32 %v1496_v36, %v802_v63 }
 0x874   :  { %1103 = vmatmul.msk.f32.vlgmr.msrb.gmra.mxu1 %vm174_vm1, %v1006_v62 }
 0x880   :  { %v927_v0 = vpop.f32.mrf.mxu3 }
 0x881   :  { %v930_v2 = vadd.f32 %v927_v0, %v826_v1 }
 0x8f1   :  { %v1030_v15 = vpop.f32.mrf.mxu1 }
 0x8f2   :  { %v1033_v3 = vadd.f32 %v1030_v15, %v930_v2 }
 0x8f4   :  { %v1034_v4 = vadd.f32 %v1033_v3, %v1404_v28 }
 0x8f6   :  { %v1035_v5 = vadd.f32 %v1507_v49, %v1034_v4 }
 0x8f8   :  { %v1036_v6 = vsel %vm100_vm0, %v1035_v5, 0.0 }
 0x8f9   :  { %1037 = vadd.xlane.f32.xlu0 %v1036_v6 }
 0x96c   :  { %v1038_v7 = vpop.xlane.xlu0 %1037 }
 0x96d   :  { %v1039_v9 = vmul.f32 %v1038_v7, %v1523_v27 }
 0x96f   :  { %v1040_v12 = vsub.f32 %v1035_v5, %v1039_v9 }
 0x971   :  { %v1041_v13 = vmul.f32 %v1040_v12, %v1040_v12 }
 0x973   :  { %v1042_v14 = vsel %vm100_vm0, %v1041_v13, 0.0 }
 0x974   :  { %1043 = vadd.xlane.f32.xlu2 %v1042_v14 }
 0x9e7   :  { %v1044_v16 = vpop.xlane.xlu2 %1043 }
 0x9e8   :  { %v1045_v36 = vmul.f32 %v1044_v16, %v1523_v27 }
 0x9ea   :  { %v1046_v17 = vadd.f32 1e-05, %v1045_v36 }
 0x9ec   :  { %1157 = vrsqrt.f32 %v1046_v17  ;;  %vm1053_vm10 = vweird.f32 %v1046_v17 }
 0x9f2   :  { %v1158_v18 = vpop.eup %1157 }
 0x9f3   :  { %v1048_v28 = vmul.f32 %v1158_v18, %v1046_v17  ;;  %vm1054_vm1 = vweird.f32 %v1158_v18 }
 0x9f4   :  { %vm1055_vm11 = vmor %vm1053_vm10, %vm1054_vm1 }
 0x9f5   :  { %v1049_v19 = vmul.f32 %v1158_v18, %v1048_v28 }
 0x9f7   :  { %v1050_v49 = vmul.f32 0.5, %v1049_v19 }
 0x9f9   :  { %v1051_v20 = vsub.f32 1.5, %v1050_v49 }
 0x9fb   :  { %v1052_v21 = vmul.f32 %v1158_v18, %v1051_v20 }
 0x9fd   :  { %v1056_v22 = vsel %vm1055_vm11, %v1158_v18, %v1052_v21 }
 0x9fe   :  { %v1057_v23 = vmul.f32 %v1056_v22, %v1040_v12 }
 0xa00   :  { %v1058_v25 = vmul.f32 %v1119_v58, %v1057_v23 }
 0xa02   :  { %v1059_v26 = vadd.f32 %v1120_v8, %v1058_v25 }
 0xa04   :  { %1060 = vst.msk [vmem:[%s1559_s10 + $0x8] sm:$0xff] %vm100_vm0, %v1059_v26 }
 0xa05   :  { %1065 = vsyncpa [#allocation3], 1 }
 0xa06   :  { %1066 = vsyncpa [#allocation5], 1 }
 0xa07   :  { %1067 = vsyncpa [#allocation8], 1 }

</bundles_post_ra>
